<compile_context>
chip_gen: v7x
topology: tpu7x:2x2x1
jax: 0.10.0
libtpu: 0.0.40
codegen_flags: <defaults>
</compile_context>

<pallas_src>
import functools

import jax
import jax.numpy as jnp
from jax import lax
from jax.experimental import pallas as pl
from jax.experimental.pallas import tpu as pltpu


# ----------------------------------------------------------------------------
# geometry helpers
# ----------------------------------------------------------------------------
def _layer_dims(channels, height, width, ndf):
    dims = []
    cin, h, w = channels, height, width
    for cout in (ndf, 2 * ndf, 4 * ndf, 8 * ndf):
        oh, ow = h // 2, w // 2
        dims.append(dict(cin=cin, cout=cout, oh=oh, ow=ow))
        cin, h, w = cout, oh, ow
    return dims


# ----------------------------------------------------------------------------
# host-side packing (layout only, grid-invariant, built once under jit)
# ----------------------------------------------------------------------------
def _space_to_depth_pack(x_nhwc):
    """(N,H,W,C) -> (N, (H/2+1)*(W/2+1), 4*C) merged-K s2d of the 1-padded image.

    Row i*(W/2+1)+j, lane block s=di*2+dj holds x_pad[2i+di, 2j+dj, :].
    """
    n, h, w, c = x_nhwc.shape
    xp = jnp.pad(x_nhwc, ((0, 0), (1, 1), (1, 1), (0, 0)))
    ph, pw = (h + 2) // 2, (w + 2) // 2
    xs = xp.reshape(n, ph, 2, pw, 2, c)
    xs = jnp.transpose(xs, (0, 1, 3, 2, 4, 5))          # (n, i, j, di, dj, c)
    return xs.reshape(n, ph * pw, 4 * c)


def _pack_conv_weight(w_oihw):
    """(Cout,Cin,4,4) -> (4, 4*Cin, Cout): [a*2+b, (di*2+dj)*Cin+ci, co]."""
    cout, cin = w_oihw.shape[0], w_oihw.shape[1]
    w = jnp.transpose(w_oihw, (2, 3, 1, 0))             # (kh, kw, ci, co)
    w = w.reshape(2, 2, 2, 2, cin, cout)                # (a, di, b, dj, ci, co)
    w = jnp.transpose(w, (0, 2, 1, 3, 4, 5))            # (a, b, di, dj, ci, co)
    return w.reshape(4, 4 * cin, cout)


def _pack_head_weight(w_oihw):
    """(1,C,4,4) -> (4*C, 4): [(dp*2+dq)*C+c, oy*2+ox] = W[0,c,2-oy+dp,2-ox+dq]."""
    w = w_oihw[0]                                       # (C, 4, 4)
    cols = []
    for oy in range(2):
        for ox in range(2):
            taps = [w[:, dp + 2 - oy, dq + 2 - ox]
                    for dp in range(2) for dq in range(2)]
            cols.append(jnp.concatenate(taps, axis=0))  # (4*C,)
    return jnp.stack(cols, axis=1)                      # (4*C, 4)


def _pack_biases(biases):
    width = max(128, max(b.shape[0] for b in biases))
    width = ((width + 127) // 128) * 128
    rows = [jnp.pad(b.astype(jnp.float32), (0, width - b.shape[0]))
            for b in biases]
    return jnp.stack(rows, axis=0)                      # (5, width)


def _norm_row_masks(layers):
    """(max_rows, 4) f32; column l-1 marks the valid (non-pitch-junk) rows of
    the flat, pitched accumulator of normalized layer l (l = 1, 2, 3)."""
    rows = max(cfg["oh"] * (cfg["ow"] + 1) - 1 for cfg in layers[1:])
    cols = []
    for cfg in layers[1:]:
        pin, ow = cfg["ow"] + 1, cfg["ow"]
        r = jnp.arange(rows)
        cols.append(((r % pin) < ow).astype(jnp.float32))
    cols.append(jnp.zeros((rows,), jnp.float32))        # pad to 4 lanes
    return jnp.stack(cols, axis=1)


def _gather_mats(oh, ow):
    """(4, (oh/2+1)*(ow/2+1), oh*(ow+1)-1) bf16 0/1 matrices that scatter a
    layer's flat activations into the next layer's zero-padded merged-K s2d."""
    pin = ow + 1
    r_acc = oh * pin - 1
    ph, pw = oh // 2 + 1, ow // 2 + 1
    ii = jnp.arange(ph * pw) // pw
    jj = jnp.arange(ph * pw) % pw
    src_col = jnp.arange(r_acc)[None, :]
    mats = []
    for di in range(2):
        for dj in range(2):
            p = 2 * ii + di - 1
            q = 2 * jj + dj - 1
            valid = (p >= 0) & (p < oh) & (q >= 0) & (q < ow)
            src = jnp.where(valid, p * pin + q, -1)
            mats.append((src[:, None] == src_col).astype(jnp.bfloat16))
    return jnp.stack(mats, axis=0)


# ----------------------------------------------------------------------------
# fused kernel: 4 x (conv s2, bias, [InstanceNorm], LeakyReLU) + head + sigmoid
# ----------------------------------------------------------------------------
def _make_kernel(layers, block_b):

    def kernel(x_ref, w1_ref, w2_ref, w3_ref, w4_ref, w5_ref, b_ref, m_ref,
               g1_ref, g2_ref, g3_ref, o_ref, s2_ref, s3_ref, s4_ref):
        w_refs = (w1_ref, w2_ref, w3_ref, w4_ref)
        g_refs = (g1_ref, g2_ref, g3_ref)
        s_refs = (s2_ref, s3_ref, s4_ref)

        for bi in range(block_b):
            for li, cfg in enumerate(layers):
                oh, ow, cout = cfg["oh"], cfg["ow"], cfg["cout"]
                pin = ow + 1                 # acc pitch == source s2d pitch
                r_rows = oh * pin - 1
                w_ref = w_refs[li]

                # conv(k=4, s=2, p=1): 4 taps, each ONE matmul over the merged
                # (parity-slab x cin) contraction.  bf16 operands, f32 acc,
                # chained dots (no zeros+add) so MRB can accumulate in place.
                acc = None
                for a in range(2):
                    for tb in range(2):
                        shift = a * pin + tb
                        if li == 0:
                            xs = x_ref[bi, shift:shift + r_rows, :]
                        else:
                            xs = s_refs[li - 1][shift:shift + r_rows, :]
                        d = jnp.dot(xs, w_ref[a * 2 + tb],
                                    preferred_element_type=jnp.float32)
                        acc = d if acc is None else acc + d
                acc = acc + b_ref[li:li + 1, 0:cout]

                if li > 0:
                    # InstanceNorm2d (per sample, biased var, eps=1e-5, no
                    # affine) over the oh*ow valid rows; junk pitch rows are
                    # masked with the host-precomputed mask column.
                    mask = m_ref[0:r_rows, li - 1:li]
                    inv_count = 1.0 / float(oh * ow)
                    mean = jnp.sum(acc * mask, axis=0, keepdims=True) * inv_count
                    diff = (acc - mean) * mask
                    var = jnp.sum(diff * diff, axis=0, keepdims=True) * inv_count
                    acc = (acc - mean) * lax.rsqrt(var + 1e-5)

                acc = jnp.maximum(acc, 0.2 * acc)        # LeakyReLU(0.2)

                if li < 3:
                    # Repack into the next layer's zero-padded merged-K s2d
                    # layout with host-precomputed 0/1 gather matrices (bf16
                    # MXU), then one lane-dense store into bf16 scratch.
                    act = acc.astype(jnp.bfloat16)
                    g_ref = g_refs[li]
                    pieces = [
                        jnp.dot(g_ref[s], act,
                                preferred_element_type=jnp.float32
                                ).astype(jnp.bfloat16)
                        for s in range(4)
                    ]
                    s_refs[li][...] = jnp.concatenate(pieces, axis=1)
                else:
                    # head: ZeroPad2d((1,0,1,0)) + Conv2d(8*ndf,1,4,p=1) +
                    # Sigmoid on the 2x2 layer-4 map, folded into ONE dot.
                    y = jnp.concatenate(
                        [acc[0:1, :], acc[1:2, :],
                         acc[pin:pin + 1, :], acc[pin + 1:pin + 2, :]],
                        axis=1).astype(jnp.bfloat16)
                    logit = jnp.dot(y, w5_ref[...],
                                    preferred_element_type=jnp.float32)
                    out = jax.nn.sigmoid(logit + b_ref[4:5, 0:1])
                    o_ref[bi] = out.astype(o_ref.dtype)

    return kernel


# ----------------------------------------------------------------------------
# forward pass (matches the nn.Sequential of the PyTorch module)
# ----------------------------------------------------------------------------
def _pick_block_batch(n):
    # Amortize per-grid-step overhead over several samples while keeping at
    # least two grid steps so v7x's two TensorCores both get work.
    for b in (8, 4, 2):
        if n % b == 0 and n // b >= 2:
            return b
    return 1


def discriminator_forward(img_nchw, targets, params, ndf, block_batch=None):
    del targets  # unused in the PyTorch forward as well
    n, c, h, w = img_nchw.shape
    layers = _layer_dims(c, h, w, ndf)
    # TODO(synk): head stage is specialized to a 2x2 final map (32x32 inputs);
    # generalize the final stride-1 conv for larger resolutions.
    assert layers[3]["oh"] == 2 and layers[3]["ow"] == 2, "expects 32x32 inputs"

    block_b = block_batch if block_batch is not None else _pick_block_batch(n)
    assert n % block_b == 0

    x = jnp.transpose(img_nchw, (0, 2, 3, 1)).astype(jnp.float32)
    xpk = _space_to_depth_pack(x).astype(jnp.bfloat16)   # (N, RS1, 4*C)
    rs1 = xpk.shape[1]

    wp = [_pack_conv_weight(params[i][0]).astype(jnp.bfloat16) for i in range(4)]
    w5 = _pack_head_weight(params[4][0]).astype(jnp.bfloat16)
    bias = _pack_biases([params[i][1] for i in range(5)])
    masks = _norm_row_masks(layers)
    gmats = [_gather_mats(cfg["oh"], cfg["ow"]) for cfg in layers[:3]]

    scratch = []
    for cfg in layers[:3]:
        rs_next = (cfg["oh"] // 2 + 1) * (cfg["ow"] // 2 + 1)
        scratch.append(pltpu.VMEM((rs_next, 4 * cfg["cout"]), jnp.bfloat16))

    def full(arr):
        return pl.BlockSpec(arr.shape, lambda i, _nd=arr.ndim: (0,) * _nd)

    out = pl.pallas_call(
        _make_kernel(layers, block_b),
        out_shape=jax.ShapeDtypeStruct((n, 1, 4), jnp.float32),
        grid_spec=pltpu.PrefetchScalarGridSpec(
            num_scalar_prefetch=0,
            grid=(n // block_b,),
            in_specs=[
                pl.BlockSpec((block_b, rs1, 4 * c), lambda i: (i, 0, 0)),
                full(wp[0]), full(wp[1]), full(wp[2]), full(wp[3]),
                full(w5), full(bias), full(masks),
                full(gmats[0]), full(gmats[1]), full(gmats[2]),
            ],
            out_specs=pl.BlockSpec((block_b, 1, 4), lambda i: (i, 0, 0)),
            scratch_shapes=scratch,
        ),
        compiler_params=pltpu.CompilerParams(
            dimension_semantics=("parallel",),
        ),
    )(xpk, *wp, w5, bias, masks, *gmats)

    return out.reshape(n, 1, h // 16, w // 16)            # NCHW like PyTorch


# ----------------------------------------------------------------------------
# deterministic synthetic parameters (PyTorch-layout conv weights + biases)
# ----------------------------------------------------------------------------
def init_discriminator_params(key, channels, ndf):
    dims = [(channels, ndf), (ndf, 2 * ndf), (2 * ndf, 4 * ndf),
            (4 * ndf, 8 * ndf), (8 * ndf, 1)]
    params = []
    for cin, cout in dims:
        key, kw, kb = jax.random.split(key, 3)
        w = jax.random.normal(kw, (cout, cin, 4, 4), jnp.float32) * 0.05
        b = jax.random.normal(kb, (cout,), jnp.float32) * 0.05
        params.append((w, b))
    return params


# ----------------------------------------------------------------------------
# pure-JAX reference (f32) for correctness checking
# ----------------------------------------------------------------------------
def _reference_forward(img, params):
    def conv(x, w, b, stride, pad):
        y = lax.conv_general_dilated(
            x, w, window_strides=(stride, stride),
            padding=((pad, pad), (pad, pad)),
            dimension_numbers=("NCHW", "OIHW", "NCHW"))
        return y + b.reshape(1, -1, 1, 1)

    def inorm(x):
        mean = jnp.mean(x, axis=(2, 3), keepdims=True)
        var = jnp.mean((x - mean) ** 2, axis=(2, 3), keepdims=True)
        return (x - mean) * lax.rsqrt(var + 1e-5)

    def leaky(x):
        return jnp.where(x > 0, x, 0.2 * x)

    x = img.astype(jnp.float32)
    x = leaky(conv(x, *params[0], 2, 1))
    x = leaky(inorm(conv(x, *params[1], 2, 1)))
    x = leaky(inorm(conv(x, *params[2], 2, 1)))
    x = leaky(inorm(conv(x, *params[3], 2, 1)))
    x = jnp.pad(x, ((0, 0), (0, 0), (1, 0), (1, 0)))     # ZeroPad2d((1,0,1,0))
    x = conv(x, *params[4], 1, 1)
    return jax.nn.sigmoid(x)


if __name__ == "__main__":
    key = jax.random.PRNGKey(0)
    k_img, k_tgt, k_par = jax.random.split(key, 3)

    batch, channels, height, width, ndf = 2, 3, 32, 32, 8
    img = jax.random.normal(k_img, (batch, channels, height, width), jnp.float32)
    targets = jax.random.normal(k_tgt, (batch, channels, height, width), jnp.float32)
    params = init_discriminator_params(k_par, channels, ndf)

    fwd = jax.jit(functools.partial(discriminator_forward, ndf=ndf))
    out = jax.block_until_ready(fwd(img, targets, params))

    expected = (batch, 1, height // 2 ** 4, width // 2 ** 4)
    assert out.shape == expected, (out.shape, expected)
    assert bool(jnp.all(jnp.isfinite(out)))
    assert bool(jnp.all((out >= 0.0) & (out <= 1.0)))    # sigmoid range

    ref = _reference_forward(img, params)
    err = float(jnp.max(jnp.abs(out - ref)))
    assert err < 0.05, ("kernel/reference mismatch", err)

    print("KERNEL_OK")
</pallas_src>

<mosaic_0001>
module attributes {stable_mosaic.version = 11 : i64} {
  func.func @kernel(%arg0: i32, %arg1: memref<1x289x12xbf16, #tpu.memory_space<vmem>>, %arg2: memref<4x12x8xbf16, #tpu.memory_space<vmem>>, %arg3: memref<4x32x16xbf16, #tpu.memory_space<vmem>>, %arg4: memref<4x64x32xbf16, #tpu.memory_space<vmem>>, %arg5: memref<4x128x64xbf16, #tpu.memory_space<vmem>>, %arg6: memref<256x4xbf16, #tpu.memory_space<vmem>>, %arg7: memref<5x128xf32, #tpu.memory_space<vmem>>, %arg8: memref<71x4xf32, #tpu.memory_space<vmem>>, %arg9: memref<4x81x271xbf16, #tpu.memory_space<vmem>>, %arg10: memref<4x25x71xbf16, #tpu.memory_space<vmem>>, %arg11: memref<4x9x19xbf16, #tpu.memory_space<vmem>>, %arg12: memref<1x1x4xf32, #tpu.memory_space<vmem>>, %arg13: memref<81x32xbf16, #tpu.memory_space<vmem>>, %arg14: memref<25x64xbf16, #tpu.memory_space<vmem>>, %arg15: memref<9x128xbf16, #tpu.memory_space<vmem>>) attributes {dimension_semantics = [#tpu.dimension_semantics<parallel>], iteration_bounds = array<i64: 2>, scalar_prefetch = 0 : i64, scratch_operands = 3 : i64, tpu.core_type = #tpu.core_type<tc>, window_params = [{transform_indices = @transform_0, window_bounds = array<i64: 1, 289, 12>}, {pipeline_mode = #tpu.pipeline_mode<synchronous>, transform_indices = @transform_1, window_bounds = array<i64: 4, 12, 8>}, {pipeline_mode = #tpu.pipeline_mode<synchronous>, transform_indices = @transform_2, window_bounds = array<i64: 4, 32, 16>}, {pipeline_mode = #tpu.pipeline_mode<synchronous>, transform_indices = @transform_3, window_bounds = array<i64: 4, 64, 32>}, {pipeline_mode = #tpu.pipeline_mode<synchronous>, transform_indices = @transform_4, window_bounds = array<i64: 4, 128, 64>}, {pipeline_mode = #tpu.pipeline_mode<synchronous>, transform_indices = @transform_5, window_bounds = array<i64: 256, 4>}, {pipeline_mode = #tpu.pipeline_mode<synchronous>, transform_indices = @transform_6, window_bounds = array<i64: 5, 128>}, {pipeline_mode = #tpu.pipeline_mode<synchronous>, transform_indices = @transform_7, window_bounds = array<i64: 71, 4>}, {pipeline_mode = #tpu.pipeline_mode<synchronous>, transform_indices = @transform_8, window_bounds = array<i64: 4, 81, 271>}, {pipeline_mode = #tpu.pipeline_mode<synchronous>, transform_indices = @transform_9, window_bounds = array<i64: 4, 25, 71>}, {pipeline_mode = #tpu.pipeline_mode<synchronous>, transform_indices = @transform_10, window_bounds = array<i64: 4, 9, 19>}, {transform_indices = @transform_11, window_bounds = array<i64: 1, 1, 4>}]} {
    %c0 = arith.constant 0 : index
    %c0_0 = arith.constant 0 : index
    %c0_1 = arith.constant 0 : index
    %0 = vector.load %arg1[%c0, %c0_0, %c0_1] : memref<1x289x12xbf16, #tpu.memory_space<vmem>>, vector<1x271x12xbf16>
    %1 = vector.shape_cast %0 : vector<1x271x12xbf16> to vector<271x12xbf16>
    %c0_2 = arith.constant 0 : index
    %c0_3 = arith.constant 0 : index
    %c0_4 = arith.constant 0 : index
    %2 = vector.load %arg2[%c0_2, %c0_3, %c0_4] : memref<4x12x8xbf16, #tpu.memory_space<vmem>>, vector<1x12x8xbf16>
    %3 = vector.shape_cast %2 : vector<1x12x8xbf16> to vector<12x8xbf16>
    %cst = arith.constant dense<0.000000e+00> : vector<271x8xf32>
    %4 = tpu.matmul %1, %3, %cst {dimension_numbers = #tpu.dot_dimension_numbers<[1], [0], [0], [1], [0, 0, 1, 1], [], []>} : vector<271x12xbf16>, vector<12x8xbf16>, vector<271x8xf32> -> vector<271x8xf32>
    %c0_5 = arith.constant 0 : index
    %c1 = arith.constant 1 : index
    %c0_6 = arith.constant 0 : index
    %5 = vector.load %arg1[%c0_5, %c1, %c0_6] : memref<1x289x12xbf16, #tpu.memory_space<vmem>>, vector<1x271x12xbf16>
    %6 = vector.shape_cast %5 : vector<1x271x12xbf16> to vector<271x12xbf16>
    %c1_7 = arith.constant 1 : index
    %c0_8 = arith.constant 0 : index
    %c0_9 = arith.constant 0 : index
    %7 = vector.load %arg2[%c1_7, %c0_8, %c0_9] : memref<4x12x8xbf16, #tpu.memory_space<vmem>>, vector<1x12x8xbf16>
    %8 = vector.shape_cast %7 : vector<1x12x8xbf16> to vector<12x8xbf16>
    %cst_10 = arith.constant dense<0.000000e+00> : vector<271x8xf32>
    %9 = tpu.matmul %6, %8, %cst_10 {dimension_numbers = #tpu.dot_dimension_numbers<[1], [0], [0], [1], [0, 0, 1, 1], [], []>} : vector<271x12xbf16>, vector<12x8xbf16>, vector<271x8xf32> -> vector<271x8xf32>
    %10 = arith.addf %4, %9 : vector<271x8xf32>
    %c0_11 = arith.constant 0 : index
    %c17 = arith.constant 17 : index
    %c0_12 = arith.constant 0 : index
    %11 = vector.load %arg1[%c0_11, %c17, %c0_12] : memref<1x289x12xbf16, #tpu.memory_space<vmem>>, vector<1x271x12xbf16>
    %12 = vector.shape_cast %11 : vector<1x271x12xbf16> to vector<271x12xbf16>
    %c2 = arith.constant 2 : index
    %c0_13 = arith.constant 0 : index
    %c0_14 = arith.constant 0 : index
    %13 = vector.load %arg2[%c2, %c0_13, %c0_14] : memref<4x12x8xbf16, #tpu.memory_space<vmem>>, vector<1x12x8xbf16>
    %14 = vector.shape_cast %13 : vector<1x12x8xbf16> to vector<12x8xbf16>
    %cst_15 = arith.constant dense<0.000000e+00> : vector<271x8xf32>
    %15 = tpu.matmul %12, %14, %cst_15 {dimension_numbers = #tpu.dot_dimension_numbers<[1], [0], [0], [1], [0, 0, 1, 1], [], []>} : vector<271x12xbf16>, vector<12x8xbf16>, vector<271x8xf32> -> vector<271x8xf32>
    %16 = arith.addf %10, %15 : vector<271x8xf32>
    %c0_16 = arith.constant 0 : index
    %c18 = arith.constant 18 : index
    %c0_17 = arith.constant 0 : index
    %17 = vector.load %arg1[%c0_16, %c18, %c0_17] : memref<1x289x12xbf16, #tpu.memory_space<vmem>>, vector<1x271x12xbf16>
    %18 = vector.shape_cast %17 : vector<1x271x12xbf16> to vector<271x12xbf16>
    %c3 = arith.constant 3 : index
    %c0_18 = arith.constant 0 : index
    %c0_19 = arith.constant 0 : index
    %19 = vector.load %arg2[%c3, %c0_18, %c0_19] : memref<4x12x8xbf16, #tpu.memory_space<vmem>>, vector<1x12x8xbf16>
    %20 = vector.shape_cast %19 : vector<1x12x8xbf16> to vector<12x8xbf16>
    %cst_20 = arith.constant dense<0.000000e+00> : vector<271x8xf32>
    %21 = tpu.matmul %18, %20, %cst_20 {dimension_numbers = #tpu.dot_dimension_numbers<[1], [0], [0], [1], [0, 0, 1, 1], [], []>} : vector<271x12xbf16>, vector<12x8xbf16>, vector<271x8xf32> -> vector<271x8xf32>
    %22 = arith.addf %16, %21 : vector<271x8xf32>
    %c0_21 = arith.constant 0 : index
    %c0_22 = arith.constant 0 : index
    %23 = vector.load %arg7[%c0_21, %c0_22] : memref<5x128xf32, #tpu.memory_space<vmem>>, vector<1x8xf32>
    %24 = vector.broadcast %23 : vector<1x8xf32> to vector<271x8xf32>
    %25 = arith.addf %22, %24 : vector<271x8xf32>
    %cst_23 = arith.constant 2.000000e-01 : f32
    %26 = vector.broadcast %cst_23 : f32 to vector<271x8xf32>
    %27 = arith.mulf %26, %25 : vector<271x8xf32>
    %28 = arith.maximumf %25, %27 : vector<271x8xf32>
    %29 = arith.truncf %28 : vector<271x8xf32> to vector<271x8xbf16>
    %c0_24 = arith.constant 0 : index
    %c0_25 = arith.constant 0 : index
    %c0_26 = arith.constant 0 : index
    %30 = vector.load %arg9[%c0_24, %c0_25, %c0_26] : memref<4x81x271xbf16, #tpu.memory_space<vmem>>, vector<1x81x271xbf16>
    %31 = vector.shape_cast %30 : vector<1x81x271xbf16> to vector<81x271xbf16>
    %cst_27 = arith.constant dense<0.000000e+00> : vector<81x8xf32>
    %32 = tpu.matmul %31, %29, %cst_27 {dimension_numbers = #tpu.dot_dimension_numbers<[1], [0], [0], [1], [0, 0, 1, 1], [], []>} : vector<81x271xbf16>, vector<271x8xbf16>, vector<81x8xf32> -> vector<81x8xf32>
    %33 = arith.truncf %32 : vector<81x8xf32> to vector<81x8xbf16>
    %c1_28 = arith.constant 1 : index
    %c0_29 = arith.constant 0 : index
    %c0_30 = arith.constant 0 : index
    %34 = vector.load %arg9[%c1_28, %c0_29, %c0_30] : memref<4x81x271xbf16, #tpu.memory_space<vmem>>, vector<1x81x271xbf16>
    %35 = vector.shape_cast %34 : vector<1x81x271xbf16> to vector<81x271xbf16>
    %cst_31 = arith.constant dense<0.000000e+00> : vector<81x8xf32>
    %36 = tpu.matmul %35, %29, %cst_31 {dimension_numbers = #tpu.dot_dimension_numbers<[1], [0], [0], [1], [0, 0, 1, 1], [], []>} : vector<81x271xbf16>, vector<271x8xbf16>, vector<81x8xf32> -> vector<81x8xf32>
    %37 = arith.truncf %36 : vector<81x8xf32> to vector<81x8xbf16>
    %c2_32 = arith.constant 2 : index
    %c0_33 = arith.constant 0 : index
    %c0_34 = arith.constant 0 : index
    %38 = vector.load %arg9[%c2_32, %c0_33, %c0_34] : memref<4x81x271xbf16, #tpu.memory_space<vmem>>, vector<1x81x271xbf16>
    %39 = vector.shape_cast %38 : vector<1x81x271xbf16> to vector<81x271xbf16>
    %cst_35 = arith.constant dense<0.000000e+00> : vector<81x8xf32>
    %40 = tpu.matmul %39, %29, %cst_35 {dimension_numbers = #tpu.dot_dimension_numbers<[1], [0], [0], [1], [0, 0, 1, 1], [], []>} : vector<81x271xbf16>, vector<271x8xbf16>, vector<81x8xf32> -> vector<81x8xf32>
    %41 = arith.truncf %40 : vector<81x8xf32> to vector<81x8xbf16>
    %c3_36 = arith.constant 3 : index
    %c0_37 = arith.constant 0 : index
    %c0_38 = arith.constant 0 : index
    %42 = vector.load %arg9[%c3_36, %c0_37, %c0_38] : memref<4x81x271xbf16, #tpu.memory_space<vmem>>, vector<1x81x271xbf16>
    %43 = vector.shape_cast %42 : vector<1x81x271xbf16> to vector<81x271xbf16>
    %cst_39 = arith.constant dense<0.000000e+00> : vector<81x8xf32>
    %44 = tpu.matmul %43, %29, %cst_39 {dimension_numbers = #tpu.dot_dimension_numbers<[1], [0], [0], [1], [0, 0, 1, 1], [], []>} : vector<81x271xbf16>, vector<271x8xbf16>, vector<81x8xf32> -> vector<81x8xf32>
    %45 = arith.truncf %44 : vector<81x8xf32> to vector<81x8xbf16>
    %46 = tpu.concatenate %33, %37, %41, %45 in 1 : vector<81x8xbf16>, vector<81x8xbf16>, vector<81x8xbf16>, vector<81x8xbf16> -> vector<81x32xbf16>
    %c0_40 = arith.constant 0 : index
    %c0_41 = arith.constant 0 : index
    %47 = vector.load %arg13[%c0_40, %c0_41] : memref<81x32xbf16, #tpu.memory_space<vmem>>, vector<81x32xbf16>
    tpu.vector_store %arg13[%c0_40, %c0_41], %46 {strides = array<i32>} : memref<81x32xbf16, #tpu.memory_space<vmem>>, vector<81x32xbf16>,
    %c0_42 = arith.constant 0 : index
    %c0_43 = arith.constant 0 : index
    %48 = vector.load %arg13[%c0_42, %c0_43] : memref<81x32xbf16, #tpu.memory_space<vmem>>, vector<71x32xbf16>
    %c0_44 = arith.constant 0 : index
    %c0_45 = arith.constant 0 : index
    %c0_46 = arith.constant 0 : index
    %49 = vector.load %arg3[%c0_44, %c0_45, %c0_46] : memref<4x32x16xbf16, #tpu.memory_space<vmem>>, vector<1x32x16xbf16>
    %50 = vector.shape_cast %49 : vector<1x32x16xbf16> to vector<32x16xbf16>
    %cst_47 = arith.constant dense<0.000000e+00> : vector<71x16xf32>
    %51 = tpu.matmul %48, %50, %cst_47 {dimension_numbers = #tpu.dot_dimension_numbers<[1], [0], [0], [1], [0, 0, 1, 1], [], []>} : vector<71x32xbf16>, vector<32x16xbf16>, vector<71x16xf32> -> vector<71x16xf32>
    %c1_48 = arith.constant 1 : index
    %c0_49 = arith.constant 0 : index
    %52 = vector.load %arg13[%c1_48, %c0_49] : memref<81x32xbf16, #tpu.memory_space<vmem>>, vector<71x32xbf16>
    %c1_50 = arith.constant 1 : index
    %c0_51 = arith.constant 0 : index
    %c0_52 = arith.constant 0 : index
    %53 = vector.load %arg3[%c1_50, %c0_51, %c0_52] : memref<4x32x16xbf16, #tpu.memory_space<vmem>>, vector<1x32x16xbf16>
    %54 = vector.shape_cast %53 : vector<1x32x16xbf16> to vector<32x16xbf16>
    %cst_53 = arith.constant dense<0.000000e+00> : vector<71x16xf32>
    %55 = tpu.matmul %52, %54, %cst_53 {dimension_numbers = #tpu.dot_dimension_numbers<[1], [0], [0], [1], [0, 0, 1, 1], [], []>} : vector<71x32xbf16>, vector<32x16xbf16>, vector<71x16xf32> -> vector<71x16xf32>
    %56 = arith.addf %51, %55 : vector<71x16xf32>
    %c9 = arith.constant 9 : index
    %c0_54 = arith.constant 0 : index
    %57 = vector.load %arg13[%c9, %c0_54] : memref<81x32xbf16, #tpu.memory_space<vmem>>, vector<71x32xbf16>
    %c2_55 = arith.constant 2 : index
    %c0_56 = arith.constant 0 : index
    %c0_57 = arith.constant 0 : index
    %58 = vector.load %arg3[%c2_55, %c0_56, %c0_57] : memref<4x32x16xbf16, #tpu.memory_space<vmem>>, vector<1x32x16xbf16>
    %59 = vector.shape_cast %58 : vector<1x32x16xbf16> to vector<32x16xbf16>
    %cst_58 = arith.constant dense<0.000000e+00> : vector<71x16xf32>
    %60 = tpu.matmul %57, %59, %cst_58 {dimension_numbers = #tpu.dot_dimension_numbers<[1], [0], [0], [1], [0, 0, 1, 1], [], []>} : vector<71x32xbf16>, vector<32x16xbf16>, vector<71x16xf32> -> vector<71x16xf32>
    %61 = arith.addf %56, %60 : vector<71x16xf32>
    %c10 = arith.constant 10 : index
    %c0_59 = arith.constant 0 : index
    %62 = vector.load %arg13[%c10, %c0_59] : memref<81x32xbf16, #tpu.memory_space<vmem>>, vector<71x32xbf16>
    %c3_60 = arith.constant 3 : index
    %c0_61 = arith.constant 0 : index
    %c0_62 = arith.constant 0 : index
    %63 = vector.load %arg3[%c3_60, %c0_61, %c0_62] : memref<4x32x16xbf16, #tpu.memory_space<vmem>>, vector<1x32x16xbf16>
    %64 = vector.shape_cast %63 : vector<1x32x16xbf16> to vector<32x16xbf16>
    %cst_63 = arith.constant dense<0.000000e+00> : vector<71x16xf32>
    %65 = tpu.matmul %62, %64, %cst_63 {dimension_numbers = #tpu.dot_dimension_numbers<[1], [0], [0], [1], [0, 0, 1, 1], [], []>} : vector<71x32xbf16>, vector<32x16xbf16>, vector<71x16xf32> -> vector<71x16xf32>
    %66 = arith.addf %61, %65 : vector<71x16xf32>
    %c1_64 = arith.constant 1 : index
    %c0_65 = arith.constant 0 : index
    %67 = vector.load %arg7[%c1_64, %c0_65] : memref<5x128xf32, #tpu.memory_space<vmem>>, vector<1x16xf32>
    %68 = vector.broadcast %67 : vector<1x16xf32> to vector<71x16xf32>
    %69 = arith.addf %66, %68 : vector<71x16xf32>
    %c0_66 = arith.constant 0 : index
    %c0_67 = arith.constant 0 : index
    %70 = vector.load %arg8[%c0_66, %c0_67] : memref<71x4xf32, #tpu.memory_space<vmem>>, vector<71x1xf32>
    %71 = vector.broadcast %70 : vector<71x1xf32> to vector<71x16xf32>
    %72 = arith.mulf %69, %71 : vector<71x16xf32>
    %cst_68 = arith.constant dense<0.000000e+00> : vector<16xf32>
    %73 = vector.multi_reduction <add>, %72, %cst_68 [0] : vector<71x16xf32> to vector<16xf32>
    %74 = vector.shape_cast %73 : vector<16xf32> to vector<1x16xf32>
    %cst_69 = arith.constant 1.562500e-02 : f32
    %75 = vector.broadcast %cst_69 : f32 to vector<1x16xf32>
    %76 = arith.mulf %74, %75 : vector<1x16xf32>
    %77 = vector.broadcast %76 : vector<1x16xf32> to vector<71x16xf32>
    %78 = arith.subf %69, %77 : vector<71x16xf32>
    %79 = vector.broadcast %70 : vector<71x1xf32> to vector<71x16xf32>
    %80 = arith.mulf %78, %79 : vector<71x16xf32>
    %81 = arith.mulf %80, %80 : vector<71x16xf32>
    %cst_70 = arith.constant dense<0.000000e+00> : vector<16xf32>
    %82 = vector.multi_reduction <add>, %81, %cst_70 [0] : vector<71x16xf32> to vector<16xf32>
    %83 = vector.shape_cast %82 : vector<16xf32> to vector<1x16xf32>
    %cst_71 = arith.constant 1.562500e-02 : f32
    %84 = vector.broadcast %cst_71 : f32 to vector<1x16xf32>
    %85 = arith.mulf %83, %84 : vector<1x16xf32>
    %86 = vector.broadcast %76 : vector<1x16xf32> to vector<71x16xf32>
    %87 = arith.subf %69, %86 : vector<71x16xf32>
    %cst_72 = arith.constant 9.99999974E-6 : f32
    %88 = vector.broadcast %cst_72 : f32 to vector<1x16xf32>
    %89 = arith.addf %85, %88 : vector<1x16xf32>
    %90 = math.rsqrt %89 : vector<1x16xf32>
    %91 = vector.broadcast %90 : vector<1x16xf32> to vector<71x16xf32>
    %92 = arith.mulf %87, %91 : vector<71x16xf32>
    %cst_73 = arith.constant 2.000000e-01 : f32
    %93 = vector.broadcast %cst_73 : f32 to vector<71x16xf32>
    %94 = arith.mulf %93, %92 : vector<71x16xf32>
    %95 = arith.maximumf %92, %94 : vector<71x16xf32>
    %96 = arith.truncf %95 : vector<71x16xf32> to vector<71x16xbf16>
    %c0_74 = arith.constant 0 : index
    %c0_75 = arith.constant 0 : index
    %c0_76 = arith.constant 0 : index
    %97 = vector.load %arg10[%c0_74, %c0_75, %c0_76] : memref<4x25x71xbf16, #tpu.memory_space<vmem>>, vector<1x25x71xbf16>
    %98 = vector.shape_cast %97 : vector<1x25x71xbf16> to vector<25x71xbf16>
    %cst_77 = arith.constant dense<0.000000e+00> : vector<25x16xf32>
    %99 = tpu.matmul %98, %96, %cst_77 {dimension_numbers = #tpu.dot_dimension_numbers<[1], [0], [0], [1], [0, 0, 1, 1], [], []>} : vector<25x71xbf16>, vector<71x16xbf16>, vector<25x16xf32> -> vector<25x16xf32>
    %100 = arith.truncf %99 : vector<25x16xf32> to vector<25x16xbf16>
    %c1_78 = arith.constant 1 : index
    %c0_79 = arith.constant 0 : index
    %c0_80 = arith.constant 0 : index
    %101 = vector.load %arg10[%c1_78, %c0_79, %c0_80] : memref<4x25x71xbf16, #tpu.memory_space<vmem>>, vector<1x25x71xbf16>
    %102 = vector.shape_cast %101 : vector<1x25x71xbf16> to vector<25x71xbf16>
    %cst_81 = arith.constant dense<0.000000e+00> : vector<25x16xf32>
    %103 = tpu.matmul %102, %96, %cst_81 {dimension_numbers = #tpu.dot_dimension_numbers<[1], [0], [0], [1], [0, 0, 1, 1], [], []>} : vector<25x71xbf16>, vector<71x16xbf16>, vector<25x16xf32> -> vector<25x16xf32>
    %104 = arith.truncf %103 : vector<25x16xf32> to vector<25x16xbf16>
    %c2_82 = arith.constant 2 : index
    %c0_83 = arith.constant 0 : index
    %c0_84 = arith.constant 0 : index
    %105 = vector.load %arg10[%c2_82, %c0_83, %c0_84] : memref<4x25x71xbf16, #tpu.memory_space<vmem>>, vector<1x25x71xbf16>
    %106 = vector.shape_cast %105 : vector<1x25x71xbf16> to vector<25x71xbf16>
    %cst_85 = arith.constant dense<0.000000e+00> : vector<25x16xf32>
    %107 = tpu.matmul %106, %96, %cst_85 {dimension_numbers = #tpu.dot_dimension_numbers<[1], [0], [0], [1], [0, 0, 1, 1], [], []>} : vector<25x71xbf16>, vector<71x16xbf16>, vector<25x16xf32> -> vector<25x16xf32>
    %108 = arith.truncf %107 : vector<25x16xf32> to vector<25x16xbf16>
    %c3_86 = arith.constant 3 : index
    %c0_87 = arith.constant 0 : index
    %c0_88 = arith.constant 0 : index
    %109 = vector.load %arg10[%c3_86, %c0_87, %c0_88] : memref<4x25x71xbf16, #tpu.memory_space<vmem>>, vector<1x25x71xbf16>
    %110 = vector.shape_cast %109 : vector<1x25x71xbf16> to vector<25x71xbf16>
    %cst_89 = arith.constant dense<0.000000e+00> : vector<25x16xf32>
    %111 = tpu.matmul %110, %96, %cst_89 {dimension_numbers = #tpu.dot_dimension_numbers<[1], [0], [0], [1], [0, 0, 1, 1], [], []>} : vector<25x71xbf16>, vector<71x16xbf16>, vector<25x16xf32> -> vector<25x16xf32>
    %112 = arith.truncf %111 : vector<25x16xf32> to vector<25x16xbf16>
    %113 = tpu.concatenate %100, %104, %108, %112 in 1 : vector<25x16xbf16>, vector<25x16xbf16>, vector<25x16xbf16>, vector<25x16xbf16> -> vector<25x64xbf16>
    %c0_90 = arith.constant 0 : index
    %c0_91 = arith.constant 0 : index
    %114 = vector.load %arg14[%c0_90, %c0_91] : memref<25x64xbf16, #tpu.memory_space<vmem>>, vector<25x64xbf16>
    tpu.vector_store %arg14[%c0_90, %c0_91], %113 {strides = array<i32>} : memref<25x64xbf16, #tpu.memory_space<vmem>>, vector<25x64xbf16>,
    %c0_92 = arith.constant 0 : index
    %c0_93 = arith.constant 0 : index
    %115 = vector.load %arg14[%c0_92, %c0_93] : memref<25x64xbf16, #tpu.memory_space<vmem>>, vector<19x64xbf16>
    %c0_94 = arith.constant 0 : index
    %c0_95 = arith.constant 0 : index
    %c0_96 = arith.constant 0 : index
    %116 = vector.load %arg4[%c0_94, %c0_95, %c0_96] : memref<4x64x32xbf16, #tpu.memory_space<vmem>>, vector<1x64x32xbf16>
    %117 = vector.shape_cast %116 : vector<1x64x32xbf16> to vector<64x32xbf16>
    %cst_97 = arith.constant dense<0.000000e+00> : vector<19x32xf32>
    %118 = tpu.matmul %115, %117, %cst_97 {dimension_numbers = #tpu.dot_dimension_numbers<[1], [0], [0], [1], [0, 0, 1, 1], [], []>} : vector<19x64xbf16>, vector<64x32xbf16>, vector<19x32xf32> -> vector<19x32xf32>
    %c1_98 = arith.constant 1 : index
    %c0_99 = arith.constant 0 : index
    %119 = vector.load %arg14[%c1_98, %c0_99] : memref<25x64xbf16, #tpu.memory_space<vmem>>, vector<19x64xbf16>
    %c1_100 = arith.constant 1 : index
    %c0_101 = arith.constant 0 : index
    %c0_102 = arith.constant 0 : index
    %120 = vector.load %arg4[%c1_100, %c0_101, %c0_102] : memref<4x64x32xbf16, #tpu.memory_space<vmem>>, vector<1x64x32xbf16>
    %121 = vector.shape_cast %120 : vector<1x64x32xbf16> to vector<64x32xbf16>
    %cst_103 = arith.constant dense<0.000000e+00> : vector<19x32xf32>
    %122 = tpu.matmul %119, %121, %cst_103 {dimension_numbers = #tpu.dot_dimension_numbers<[1], [0], [0], [1], [0, 0, 1, 1], [], []>} : vector<19x64xbf16>, vector<64x32xbf16>, vector<19x32xf32> -> vector<19x32xf32>
    %123 = arith.addf %118, %122 : vector<19x32xf32>
    %c5 = arith.constant 5 : index
    %c0_104 = arith.constant 0 : index
    %124 = vector.load %arg14[%c5, %c0_104] : memref<25x64xbf16, #tpu.memory_space<vmem>>, vector<19x64xbf16>
    %c2_105 = arith.constant 2 : index
    %c0_106 = arith.constant 0 : index
    %c0_107 = arith.constant 0 : index
    %125 = vector.load %arg4[%c2_105, %c0_106, %c0_107] : memref<4x64x32xbf16, #tpu.memory_space<vmem>>, vector<1x64x32xbf16>
    %126 = vector.shape_cast %125 : vector<1x64x32xbf16> to vector<64x32xbf16>
    %cst_108 = arith.constant dense<0.000000e+00> : vector<19x32xf32>
    %127 = tpu.matmul %124, %126, %cst_108 {dimension_numbers = #tpu.dot_dimension_numbers<[1], [0], [0], [1], [0, 0, 1, 1], [], []>} : vector<19x64xbf16>, vector<64x32xbf16>, vector<19x32xf32> -> vector<19x32xf32>
    %128 = arith.addf %123, %127 : vector<19x32xf32>
    %c6 = arith.constant 6 : index
    %c0_109 = arith.constant 0 : index
    %129 = vector.load %arg14[%c6, %c0_109] : memref<25x64xbf16, #tpu.memory_space<vmem>>, vector<19x64xbf16>
    %c3_110 = arith.constant 3 : index
    %c0_111 = arith.constant 0 : index
    %c0_112 = arith.constant 0 : index
    %130 = vector.load %arg4[%c3_110, %c0_111, %c0_112] : memref<4x64x32xbf16, #tpu.memory_space<vmem>>, vector<1x64x32xbf16>
    %131 = vector.shape_cast %130 : vector<1x64x32xbf16> to vector<64x32xbf16>
    %cst_113 = arith.constant dense<0.000000e+00> : vector<19x32xf32>
    %132 = tpu.matmul %129, %131, %cst_113 {dimension_numbers = #tpu.dot_dimension_numbers<[1], [0], [0], [1], [0, 0, 1, 1], [], []>} : vector<19x64xbf16>, vector<64x32xbf16>, vector<19x32xf32> -> vector<19x32xf32>
    %133 = arith.addf %128, %132 : vector<19x32xf32>
    %c2_114 = arith.constant 2 : index
    %c0_115 = arith.constant 0 : index
    %134 = vector.load %arg7[%c2_114, %c0_115] : memref<5x128xf32, #tpu.memory_space<vmem>>, vector<1x32xf32>
    %135 = vector.broadcast %134 : vector<1x32xf32> to vector<19x32xf32>
    %136 = arith.addf %133, %135 : vector<19x32xf32>
    %c0_116 = arith.constant 0 : index
    %c1_117 = arith.constant 1 : index
    %137 = vector.load %arg8[%c0_116, %c1_117] : memref<71x4xf32, #tpu.memory_space<vmem>>, vector<19x1xf32>
    %138 = vector.broadcast %137 : vector<19x1xf32> to vector<19x32xf32>
    %139 = arith.mulf %136, %138 : vector<19x32xf32>
    %cst_118 = arith.constant dense<0.000000e+00> : vector<32xf32>
    %140 = vector.multi_reduction <add>, %139, %cst_118 [0] : vector<19x32xf32> to vector<32xf32>
    %141 = vector.shape_cast %140 : vector<32xf32> to vector<1x32xf32>
    %cst_119 = arith.constant 6.250000e-02 : f32
    %142 = vector.broadcast %cst_119 : f32 to vector<1x32xf32>
    %143 = arith.mulf %141, %142 : vector<1x32xf32>
    %144 = vector.broadcast %143 : vector<1x32xf32> to vector<19x32xf32>
    %145 = arith.subf %136, %144 : vector<19x32xf32>
    %146 = vector.broadcast %137 : vector<19x1xf32> to vector<19x32xf32>
    %147 = arith.mulf %145, %146 : vector<19x32xf32>
    %148 = arith.mulf %147, %147 : vector<19x32xf32>
    %cst_120 = arith.constant dense<0.000000e+00> : vector<32xf32>
    %149 = vector.multi_reduction <add>, %148, %cst_120 [0] : vector<19x32xf32> to vector<32xf32>
    %150 = vector.shape_cast %149 : vector<32xf32> to vector<1x32xf32>
    %cst_121 = arith.constant 6.250000e-02 : f32
    %151 = vector.broadcast %cst_121 : f32 to vector<1x32xf32>
    %152 = arith.mulf %150, %151 : vector<1x32xf32>
    %153 = vector.broadcast %143 : vector<1x32xf32> to vector<19x32xf32>
    %154 = arith.subf %136, %153 : vector<19x32xf32>
    %cst_122 = arith.constant 9.99999974E-6 : f32
    %155 = vector.broadcast %cst_122 : f32 to vector<1x32xf32>
    %156 = arith.addf %152, %155 : vector<1x32xf32>
    %157 = math.rsqrt %156 : vector<1x32xf32>
    %158 = vector.broadcast %157 : vector<1x32xf32> to vector<19x32xf32>
    %159 = arith.mulf %154, %158 : vector<19x32xf32>
    %cst_123 = arith.constant 2.000000e-01 : f32
    %160 = vector.broadcast %cst_123 : f32 to vector<19x32xf32>
    %161 = arith.mulf %160, %159 : vector<19x32xf32>
    %162 = arith.maximumf %159, %161 : vector<19x32xf32>
    %163 = arith.truncf %162 : vector<19x32xf32> to vector<19x32xbf16>
    %c0_124 = arith.constant 0 : index
    %c0_125 = arith.constant 0 : index
    %c0_126 = arith.constant 0 : index
    %164 = vector.load %arg11[%c0_124, %c0_125, %c0_126] : memref<4x9x19xbf16, #tpu.memory_space<vmem>>, vector<1x9x19xbf16>
    %165 = vector.shape_cast %164 : vector<1x9x19xbf16> to vector<9x19xbf16>
    %cst_127 = arith.constant dense<0.000000e+00> : vector<9x32xf32>
    %166 = tpu.matmul %165, %163, %cst_127 {dimension_numbers = #tpu.dot_dimension_numbers<[1], [0], [0], [1], [0, 0, 1, 1], [], []>} : vector<9x19xbf16>, vector<19x32xbf16>, vector<9x32xf32> -> vector<9x32xf32>
    %167 = arith.truncf %166 : vector<9x32xf32> to vector<9x32xbf16>
    %c1_128 = arith.constant 1 : index
    %c0_129 = arith.constant 0 : index
    %c0_130 = arith.constant 0 : index
    %168 = vector.load %arg11[%c1_128, %c0_129, %c0_130] : memref<4x9x19xbf16, #tpu.memory_space<vmem>>, vector<1x9x19xbf16>
    %169 = vector.shape_cast %168 : vector<1x9x19xbf16> to vector<9x19xbf16>
    %cst_131 = arith.constant dense<0.000000e+00> : vector<9x32xf32>
    %170 = tpu.matmul %169, %163, %cst_131 {dimension_numbers = #tpu.dot_dimension_numbers<[1], [0], [0], [1], [0, 0, 1, 1], [], []>} : vector<9x19xbf16>, vector<19x32xbf16>, vector<9x32xf32> -> vector<9x32xf32>
    %171 = arith.truncf %170 : vector<9x32xf32> to vector<9x32xbf16>
    %c2_132 = arith.constant 2 : index
    %c0_133 = arith.constant 0 : index
    %c0_134 = arith.constant 0 : index
    %172 = vector.load %arg11[%c2_132, %c0_133, %c0_134] : memref<4x9x19xbf16, #tpu.memory_space<vmem>>, vector<1x9x19xbf16>
    %173 = vector.shape_cast %172 : vector<1x9x19xbf16> to vector<9x19xbf16>
    %cst_135 = arith.constant dense<0.000000e+00> : vector<9x32xf32>
    %174 = tpu.matmul %173, %163, %cst_135 {dimension_numbers = #tpu.dot_dimension_numbers<[1], [0], [0], [1], [0, 0, 1, 1], [], []>} : vector<9x19xbf16>, vector<19x32xbf16>, vector<9x32xf32> -> vector<9x32xf32>
    %175 = arith.truncf %174 : vector<9x32xf32> to vector<9x32xbf16>
    %c3_136 = arith.constant 3 : index
    %c0_137 = arith.constant 0 : index
    %c0_138 = arith.constant 0 : index
    %176 = vector.load %arg11[%c3_136, %c0_137, %c0_138] : memref<4x9x19xbf16, #tpu.memory_space<vmem>>, vector<1x9x19xbf16>
    %177 = vector.shape_cast %176 : vector<1x9x19xbf16> to vector<9x19xbf16>
    %cst_139 = arith.constant dense<0.000000e+00> : vector<9x32xf32>
    %178 = tpu.matmul %177, %163, %cst_139 {dimension_numbers = #tpu.dot_dimension_numbers<[1], [0], [0], [1], [0, 0, 1, 1], [], []>} : vector<9x19xbf16>, vector<19x32xbf16>, vector<9x32xf32> -> vector<9x32xf32>
    %179 = arith.truncf %178 : vector<9x32xf32> to vector<9x32xbf16>
    %180 = tpu.concatenate %167, %171, %175, %179 in 1 : vector<9x32xbf16>, vector<9x32xbf16>, vector<9x32xbf16>, vector<9x32xbf16> -> vector<9x128xbf16>
    %c0_140 = arith.constant 0 : index
    %c0_141 = arith.constant 0 : index
    %181 = vector.load %arg15[%c0_140, %c0_141] : memref<9x128xbf16, #tpu.memory_space<vmem>>, vector<9x128xbf16>
    tpu.vector_store %arg15[%c0_140, %c0_141], %180 {strides = array<i32>} : memref<9x128xbf16, #tpu.memory_space<vmem>>, vector<9x128xbf16>,
    %c0_142 = arith.constant 0 : index
    %c0_143 = arith.constant 0 : index
    %182 = vector.load %arg15[%c0_142, %c0_143] : memref<9x128xbf16, #tpu.memory_space<vmem>>, vector<5x128xbf16>
    %c0_144 = arith.constant 0 : index
    %c0_145 = arith.constant 0 : index
    %c0_146 = arith.constant 0 : index
    %183 = vector.load %arg5[%c0_144, %c0_145, %c0_146] : memref<4x128x64xbf16, #tpu.memory_space<vmem>>, vector<1x128x64xbf16>
    %184 = vector.shape_cast %183 : vector<1x128x64xbf16> to vector<128x64xbf16>
    %cst_147 = arith.constant dense<0.000000e+00> : vector<5x64xf32>
    %185 = tpu.matmul %182, %184, %cst_147 {dimension_numbers = #tpu.dot_dimension_numbers<[1], [0], [0], [1], [0, 0, 1, 1], [], []>} : vector<5x128xbf16>, vector<128x64xbf16>, vector<5x64xf32> -> vector<5x64xf32>
    %c1_148 = arith.constant 1 : index
    %c0_149 = arith.constant 0 : index
    %186 = vector.load %arg15[%c1_148, %c0_149] : memref<9x128xbf16, #tpu.memory_space<vmem>>, vector<5x128xbf16>
    %c1_150 = arith.constant 1 : index
    %c0_151 = arith.constant 0 : index
    %c0_152 = arith.constant 0 : index
    %187 = vector.load %arg5[%c1_150, %c0_151, %c0_152] : memref<4x128x64xbf16, #tpu.memory_space<vmem>>, vector<1x128x64xbf16>
    %188 = vector.shape_cast %187 : vector<1x128x64xbf16> to vector<128x64xbf16>
    %cst_153 = arith.constant dense<0.000000e+00> : vector<5x64xf32>
    %189 = tpu.matmul %186, %188, %cst_153 {dimension_numbers = #tpu.dot_dimension_numbers<[1], [0], [0], [1], [0, 0, 1, 1], [], []>} : vector<5x128xbf16>, vector<128x64xbf16>, vector<5x64xf32> -> vector<5x64xf32>
    %190 = arith.addf %185, %189 : vector<5x64xf32>
    %c3_154 = arith.constant 3 : index
    %c0_155 = arith.constant 0 : index
    %191 = vector.load %arg15[%c3_154, %c0_155] : memref<9x128xbf16, #tpu.memory_space<vmem>>, vector<5x128xbf16>
    %c2_156 = arith.constant 2 : index
    %c0_157 = arith.constant 0 : index
    %c0_158 = arith.constant 0 : index
    %192 = vector.load %arg5[%c2_156, %c0_157, %c0_158] : memref<4x128x64xbf16, #tpu.memory_space<vmem>>, vector<1x128x64xbf16>
    %193 = vector.shape_cast %192 : vector<1x128x64xbf16> to vector<128x64xbf16>
    %cst_159 = arith.constant dense<0.000000e+00> : vector<5x64xf32>
    %194 = tpu.matmul %191, %193, %cst_159 {dimension_numbers = #tpu.dot_dimension_numbers<[1], [0], [0], [1], [0, 0, 1, 1], [], []>} : vector<5x128xbf16>, vector<128x64xbf16>, vector<5x64xf32> -> vector<5x64xf32>
    %195 = arith.addf %190, %194 : vector<5x64xf32>
    %c4 = arith.constant 4 : index
    %c0_160 = arith.constant 0 : index
    %196 = vector.load %arg15[%c4, %c0_160] : memref<9x128xbf16, #tpu.memory_space<vmem>>, vector<5x128xbf16>
    %c3_161 = arith.constant 3 : index
    %c0_162 = arith.constant 0 : index
    %c0_163 = arith.constant 0 : index
    %197 = vector.load %arg5[%c3_161, %c0_162, %c0_163] : memref<4x128x64xbf16, #tpu.memory_space<vmem>>, vector<1x128x64xbf16>
    %198 = vector.shape_cast %197 : vector<1x128x64xbf16> to vector<128x64xbf16>
    %cst_164 = arith.constant dense<0.000000e+00> : vector<5x64xf32>
    %199 = tpu.matmul %196, %198, %cst_164 {dimension_numbers = #tpu.dot_dimension_numbers<[1], [0], [0], [1], [0, 0, 1, 1], [], []>} : vector<5x128xbf16>, vector<128x64xbf16>, vector<5x64xf32> -> vector<5x64xf32>
    %200 = arith.addf %195, %199 : vector<5x64xf32>
    %c3_165 = arith.constant 3 : index
    %c0_166 = arith.constant 0 : index
    %201 = vector.load %arg7[%c3_165, %c0_166] : memref<5x128xf32, #tpu.memory_space<vmem>>, vector<1x64xf32>
    %202 = vector.broadcast %201 : vector<1x64xf32> to vector<5x64xf32>
    %203 = arith.addf %200, %202 : vector<5x64xf32>
    %c0_167 = arith.constant 0 : index
    %c2_168 = arith.constant 2 : index
    %204 = vector.load %arg8[%c0_167, %c2_168] : memref<71x4xf32, #tpu.memory_space<vmem>>, vector<5x1xf32>
    %205 = vector.broadcast %204 : vector<5x1xf32> to vector<5x64xf32>
    %206 = arith.mulf %203, %205 : vector<5x64xf32>
    %cst_169 = arith.constant dense<0.000000e+00> : vector<64xf32>
    %207 = vector.multi_reduction <add>, %206, %cst_169 [0] : vector<5x64xf32> to vector<64xf32>
    %208 = vector.shape_cast %207 : vector<64xf32> to vector<1x64xf32>
    %cst_170 = arith.constant 2.500000e-01 : f32
    %209 = vector.broadcast %cst_170 : f32 to vector<1x64xf32>
    %210 = arith.mulf %208, %209 : vector<1x64xf32>
    %211 = vector.broadcast %210 : vector<1x64xf32> to vector<5x64xf32>
    %212 = arith.subf %203, %211 : vector<5x64xf32>
    %213 = vector.broadcast %204 : vector<5x1xf32> to vector<5x64xf32>
    %214 = arith.mulf %212, %213 : vector<5x64xf32>
    %215 = arith.mulf %214, %214 : vector<5x64xf32>
    %cst_171 = arith.constant dense<0.000000e+00> : vector<64xf32>
    %216 = vector.multi_reduction <add>, %215, %cst_171 [0] : vector<5x64xf32> to vector<64xf32>
    %217 = vector.shape_cast %216 : vector<64xf32> to vector<1x64xf32>
    %cst_172 = arith.constant 2.500000e-01 : f32
    %218 = vector.broadcast %cst_172 : f32 to vector<1x64xf32>
    %219 = arith.mulf %217, %218 : vector<1x64xf32>
    %220 = vector.broadcast %210 : vector<1x64xf32> to vector<5x64xf32>
    %221 = arith.subf %203, %220 : vector<5x64xf32>
    %cst_173 = arith.constant 9.99999974E-6 : f32
    %222 = vector.broadcast %cst_173 : f32 to vector<1x64xf32>
    %223 = arith.addf %219, %222 : vector<1x64xf32>
    %224 = math.rsqrt %223 : vector<1x64xf32>
    %225 = vector.broadcast %224 : vector<1x64xf32> to vector<5x64xf32>
    %226 = arith.mulf %221, %225 : vector<5x64xf32>
    %cst_174 = arith.constant 2.000000e-01 : f32
    %227 = vector.broadcast %cst_174 : f32 to vector<5x64xf32>
    %228 = arith.mulf %227, %226 : vector<5x64xf32>
    %229 = arith.maximumf %226, %228 : vector<5x64xf32>
    %230 = vector.extract_strided_slice %229 {offsets = [0, 0], sizes = [1, 64], strides = [1, 1]} : vector<5x64xf32> to vector<1x64xf32>
    %231 = vector.extract_strided_slice %229 {offsets = [1, 0], sizes = [1, 64], strides = [1, 1]} : vector<5x64xf32> to vector<1x64xf32>
    %232 = vector.extract_strided_slice %229 {offsets = [3, 0], sizes = [1, 64], strides = [1, 1]} : vector<5x64xf32> to vector<1x64xf32>
    %233 = vector.extract_strided_slice %229 {offsets = [4, 0], sizes = [1, 64], strides = [1, 1]} : vector<5x64xf32> to vector<1x64xf32>
    %234 = tpu.concatenate %230, %231, %232, %233 in 1 : vector<1x64xf32>, vector<1x64xf32>, vector<1x64xf32>, vector<1x64xf32> -> vector<1x256xf32>
    %235 = arith.truncf %234 : vector<1x256xf32> to vector<1x256xbf16>
    %c0_175 = arith.constant 0 : index
    %c0_176 = arith.constant 0 : index
    %236 = vector.load %arg6[%c0_175, %c0_176] : memref<256x4xbf16, #tpu.memory_space<vmem>>, vector<256x4xbf16>
    %cst_177 = arith.constant dense<0.000000e+00> : vector<1x4xf32>
    %237 = tpu.matmul %235, %236, %cst_177 {dimension_numbers = #tpu.dot_dimension_numbers<[1], [0], [0], [1], [0, 0, 1, 1], [], []>} : vector<1x256xbf16>, vector<256x4xbf16>, vector<1x4xf32> -> vector<1x4xf32>
    %c4_178 = arith.constant 4 : index
    %c0_179 = arith.constant 0 : index
    %238 = vector.load %arg7[%c4_178, %c0_179] : memref<5x128xf32, #tpu.memory_space<vmem>>, vector<1x1xf32>
    %239 = vector.broadcast %238 : vector<1x1xf32> to vector<1x4xf32>
    %240 = arith.addf %237, %239 : vector<1x4xf32>
    %241 = arith.negf %240 : vector<1x4xf32>
    %242 = math.exp %241 : vector<1x4xf32>
    %cst_180 = arith.constant 1.000000e+00 : f32
    %243 = vector.broadcast %cst_180 : f32 to vector<1x4xf32>
    %244 = arith.addf %243, %242 : vector<1x4xf32>
    %245 = arith.divf %243, %244 : vector<1x4xf32>
    %c0_181 = arith.constant 0 : index
    %c0_182 = arith.constant 0 : index
    %c0_183 = arith.constant 0 : index
    %246 = vector.load %arg12[%c0_181, %c0_182, %c0_183] : memref<1x1x4xf32, #tpu.memory_space<vmem>>, vector<1x1x4xf32>
    %247 = vector.shape_cast %246 : vector<1x1x4xf32> to vector<1x4xf32>
    %248 = vector.shape_cast %245 : vector<1x4xf32> to vector<1x1x4xf32>
    tpu.vector_store %arg12[%c0_181, %c0_182, %c0_183], %248 {strides = array<i32>} : memref<1x1x4xf32, #tpu.memory_space<vmem>>, vector<1x1x4xf32>,
    return
  }
  func.func @transform_0(%arg0: i32) -> (i32, i32, i32) {
    %c0_i32 = arith.constant 0 : i32
    %c0_i32_0 = arith.constant 0 : i32
    %c0_i32_1 = arith.constant 0 : i32
    return %arg0, %c0_i32, %c0_i32_0 : i32, i32, i32
  }
  func.func @transform_1(%arg0: i32) -> (i32, i32, i32) {
    %c0_i32 = arith.constant 0 : i32
    %c0_i32_0 = arith.constant 0 : i32
    %c0_i32_1 = arith.constant 0 : i32
    %c0_i32_2 = arith.constant 0 : i32
    return %c0_i32, %c0_i32_0, %c0_i32_1 : i32, i32, i32
  }
  func.func @transform_2(%arg0: i32) -> (i32, i32, i32) {
    %c0_i32 = arith.constant 0 : i32
    %c0_i32_0 = arith.constant 0 : i32
    %c0_i32_1 = arith.constant 0 : i32
    %c0_i32_2 = arith.constant 0 : i32
    return %c0_i32, %c0_i32_0, %c0_i32_1 : i32, i32, i32
  }
  func.func @transform_3(%arg0: i32) -> (i32, i32, i32) {
    %c0_i32 = arith.constant 0 : i32
    %c0_i32_0 = arith.constant 0 : i32
    %c0_i32_1 = arith.constant 0 : i32
    %c0_i32_2 = arith.constant 0 : i32
    return %c0_i32, %c0_i32_0, %c0_i32_1 : i32, i32, i32
  }
  func.func @transform_4(%arg0: i32) -> (i32, i32, i32) {
    %c0_i32 = arith.constant 0 : i32
    %c0_i32_0 = arith.constant 0 : i32
    %c0_i32_1 = arith.constant 0 : i32
    %c0_i32_2 = arith.constant 0 : i32
    return %c0_i32, %c0_i32_0, %c0_i32_1 : i32, i32, i32
  }
  func.func @transform_5(%arg0: i32) -> (i32, i32) {
    %c0_i32 = arith.constant 0 : i32
    %c0_i32_0 = arith.constant 0 : i32
    %c0_i32_1 = arith.constant 0 : i32
    return %c0_i32, %c0_i32_0 : i32, i32
  }
  func.func @transform_6(%arg0: i32) -> (i32, i32) {
    %c0_i32 = arith.constant 0 : i32
    %c0_i32_0 = arith.constant 0 : i32
    %c0_i32_1 = arith.constant 0 : i32
    return %c0_i32, %c0_i32_0 : i32, i32
  }
  func.func @transform_7(%arg0: i32) -> (i32, i32) {
    %c0_i32 = arith.constant 0 : i32
    %c0_i32_0 = arith.constant 0 : i32
    %c0_i32_1 = arith.constant 0 : i32
    return %c0_i32, %c0_i32_0 : i32, i32
  }
  func.func @transform_8(%arg0: i32) -> (i32, i32, i32) {
    %c0_i32 = arith.constant 0 : i32
    %c0_i32_0 = arith.constant 0 : i32
    %c0_i32_1 = arith.constant 0 : i32
    %c0_i32_2 = arith.constant 0 : i32
    return %c0_i32, %c0_i32_0, %c0_i32_1 : i32, i32, i32
  }
  func.func @transform_9(%arg0: i32) -> (i32, i32, i32) {
    %c0_i32 = arith.constant 0 : i32
    %c0_i32_0 = arith.constant 0 : i32
    %c0_i32_1 = arith.constant 0 : i32
    %c0_i32_2 = arith.constant 0 : i32
    return %c0_i32, %c0_i32_0, %c0_i32_1 : i32, i32, i32
  }
  func.func @transform_10(%arg0: i32) -> (i32, i32, i32) {
    %c0_i32 = arith.constant 0 : i32
    %c0_i32_0 = arith.constant 0 : i32
    %c0_i32_1 = arith.constant 0 : i32
    %c0_i32_2 = arith.constant 0 : i32
    return %c0_i32, %c0_i32_0, %c0_i32_1 : i32, i32, i32
  }
  func.func @transform_11(%arg0: i32) -> (i32, i32, i32) {
    %c0_i32 = arith.constant 0 : i32
    %c0_i32_0 = arith.constant 0 : i32
    %c0_i32_1 = arith.constant 0 : i32
    return %arg0, %c0_i32, %c0_i32_0 : i32, i32, i32
  }
}

</mosaic_0001>

<bundles_post_ra>
// kernel: discriminator_forward.1
= control target key start
LH: loop header
LB: loop body
LE: loop exit
PB: predicated region body
PF: predicated region fallthrough
CT: control target
= control target key end

     0   :  { %s8181_s17 = smov 0   ;;  %s9802_s0 = inlined_call_operand.vmem [shape: bf16[2,289,12], index: 0, kind: input, shape index: {}]   ;;  %s9803_s1 = inlined_call_operand.vmem [shape: bf16[4,12,8], index: 1, kind: input, shape index: {}]   ;;  %s9804_s2 = inlined_call_operand.vmem [shape: bf16[4,32,16], index: 2, kind: input, shape index: {}]   ;;  %s9805_s3 = inlined_call_operand.vmem [shape: bf16[4,64,32], index: 3, kind: input, shape index: {}]   ;;  %s9806_s4 = inlined_call_operand.vmem [shape: bf16[4,128,64], index: 4, kind: input, shape index: {}]   ;;  %s9807_s5 = inlined_call_operand.vmem [shape: bf16[256,4], index: 5, kind: input, shape index: {}]   ;;  %s9808_s6 = inlined_call_operand.vmem [shape: f32[5,128], index: 6, kind: input, shape index: {}]   ;;  %s9809_s7 = inlined_call_operand.vmem [shape: f32[71,4], index: 7, kind: input, shape index: {}]   ;;  %s9810_s8 = inlined_call_operand.vmem [shape: bf16[4,81,271], index: 8, kind: input, shape index: {}]   ;;  %s9811_s9 = inlined_call_operand.vmem [shape: bf16[4,25,71], index: 9, kind: input, shape index: {}]   ;;  %s9812_s10 = inlined_call_operand.vmem [shape: bf16[4,9,19], index: 10, kind: input, shape index: {}]   ;;  %s9813_s11 = inlined_call_operand.vmem [shape: f32[2,1,4], index: 11, kind: output, shape index: {}]  }
   0x1 LB: > { %s6119_s18 = sadd.s32 4294967295, %s8106_s17   ;;  %p6123_p0 = scmp.ge.s32.totalorder %s8106_s17, 1  ;;  %s8106_s17 = sphi %s8181_s17, %s21_s17  }
   0x2   : > { %p337_p1 = scmp.lt.s32.totalorder %s8106_s17, 3 }
   0x4   : > { %p338_p2 = pnand %p6123_p0, %p337_p1 }
   0x5   : > { %vm701_vm0 = vcmask (!%p338_p2), 1045504   ;;  %v8108_v0 = vmov (!%p338_p2), 0.0   ;;  %v7833_v1 = vld [vmem:[%s9803_s1 + $0x8] sm:$0x3f] (!%p338_p2)   ;;  %p375_p3 = scmp.lt.s32.totalorder (!%p338_p2), %s6119_s18, 1  ;;  %vm8109_vm1 = vmmov (!%p338_p2), 0  }
   0x6   : > { %341 = sbr.rel (%p338_p2) target bundleno = 3118 (0xc2e), region = 64  ;;  %7149 = vmatprep.subr.bf16.mxu0 (!%p338_p2), %v8108_v0  ;;  %7797 = vmatprep.subr.bf16.mxu1 (!%p338_p2), %v8108_v0  ;;  %v703_v2 = vsel (!%p338_p2), %vm701_vm0, %v7833_v1, 0  ;;  %v7836_v3 = vld [vmem:[%s9803_s1] sm:$0x3f] (!%p338_p2)   ;;  %vm649_vm2 = vcmask (!%p338_p2), 97280   ;;  %vm1730_vm4 = vcmask (!%p338_p2), 1046528  }
   0x7   : > { %7151 = vmatprep.mubr.msk.bf16.mxu0 (!%p338_p2), %vm8109_vm1, %v8108_v0  ;;  %7225 = vmatprep.mubr.msk.bf16.mxu1 (!%p338_p2), %vm8109_vm1, %v8108_v0  ;;  %v914_v4 = vsel (!%p338_p2), %vm701_vm0, %v7836_v3, 0  ;;  %vm508_vm3 = vsmask.f32 (!%p338_p2), 7424  ;;  %v7852_v27 = vld [vmem:[%s9803_s1 + $0x18] sm:$0x3f] (!%p338_p2)   ;;  %vm2259_vm5 = vcmask (!%p338_p2), 121856  }
   0x8   : > { %7150 = vmatpush3.bf16.msra.mxu0 (!%p338_p2), %v703_v2  ;;  %7798 = vmatpush3.bf16.msra.mxu1 (!%p338_p2), %v914_v4  ;;  %v1823_v30 = vsel (!%p338_p2), %vm701_vm0, %v7852_v27, 0  ;;  %vm2279_vm6 = vcmask (!%p338_p2), 1047552   ;;  %s8111_s14 = smov (!%p338_p2), 8   ;;  %s8112_s15 = smov (!%p338_p2), 16   ;;  %vm3381_vm7 = vcmask (!%p338_p2), 64512   ;;  %vm3400_vm8 = vcmask (!%p338_p2), 130048  }
   0x9   : > { %7219 = vmatprep.subr.bf16.mxu0 (!%p338_p2), %v8108_v0  ;;  %7359 = vmatprep.subr.bf16.mxu1 (!%p338_p2), %v8108_v0  ;;  %s8113_s24 = smov (!%p338_p2), 24   ;;  %vm3413_vm9 = vcmask (!%p338_p2), 195584   ;;  %vm3465_vm10 = vcmask (!%p338_p2), 257024   ;;  %vm3574_vm11 = vcmask (!%p338_p2), 261120   ;;  %vm3476_vm12 = vcmask (!%p338_p2), 253952   ;;  %s8115_s30 = smov (!%p338_p2), 32  }
   0xa   : > { %vm3477_vm13 = vsmask.f32 (!%p338_p2), 256  ;;  %vm4298_vm15 = vcmask (!%p338_p2), 580608   ;;  %s8116_s21 = smov (!%p338_p2), 48   ;;  %s8118_s28 = smov (!%p338_p2), 64  }
   0xb   : > { %vm3478_vm14 = vmand (!%p338_p2), %vm3476_vm12, %vm3477_vm13  ;;  %vm4850_vm12 = vsmask.f32 (!%p338_p2), 5376  ;;  %s8119_s22 = smov (!%p338_p2), 96  }
   0xd   : > { %s9815_s18 = smov (!%p375_p3, %s6119_s18), 1 }
   0xe   : > { %s7799_s23 = smul.u32 148, %s9815_s18 }
  0x10   : > { %s8210_s26 = scalar_lea.vmem %s9802_s0, %s7799_s23 }
  0x11   : > { %v7834_v5 = vld [vmem:[%s8210_s26] sm:$0xff]   ;;  %v7835_v6 = vld [vmem:[%s8210_s26 + $0x8] sm:$0xff]   ;;  %v7837_v10 = vld [vmem:[%s8210_s26 + $0x10] sm:$0xff]  }
  0x12   : > { %v510_v7 = vshrl.u32 %v7834_v5, 16  ;;  %v512_v8 = vshll.u32 %v7834_v5, 16  ;;  %v517_v9 = vshll.u32 %v7835_v6, 16  ;;  %7226 = vmatmul.mubr.msk.bf16.vlgmr.msra.gmra.mrb[0].mxu1 %vm649_vm2, %v7835_v6  ;;  %v521_v14 = vshrl.u32 %v7835_v6, 16  ;;  %v7838_v19 = vld [vmem:[%s8210_s26 + $0x18] sm:$0xff]   ;;  %v7839_v23 = vld [vmem:[%s8210_s26 + $0x20] sm:$0xff]  }
  0x13   : > { %7229 = vmatprep.mubr.msk.bf16.mxu1 %vm8109_vm1, %v8108_v0  ;;  %v525_v15 = vshll.u32 %v7837_v10, 16  ;;  %v529_v21 = vshrl.u32 %v7837_v10, 16  ;;  %v533_v22 = vshll.u32 %v7838_v19, 16  ;;  %v541_v26 = vshll.u32 %v7839_v23, 16  ;;  %7360 = vmatpush3.bf16.msra.mxu1 %v1823_v30  ;;  %v7840_v32 = vld [vmem:[%s8210_s26 + $0x28] sm:$0xff]   ;;  %v7841_v39 = vld [vmem:[%s8210_s26 + $0x30] sm:$0xff]  }
  0x14   : > { %v514_v11 = vrot.slane %v512_v8, 1  ;;  %v519_v12 = vrot.slane %v517_v9, 1  ;;  %v537_v29 = vshrl.u32 %v7838_v19, 16  ;;  %v545_v35 = vshrl.u32 %v7839_v23, 16  ;;  %v7842_v45 = vld [vmem:[%s8210_s26 + $0x38] sm:$0xff]   ;;  %v7843_v51 = vld [vmem:[%s8210_s26 + $0x40] sm:$0xff]  }
  0x15   : > { %v527_v18 = vrot.slane %v525_v15, 1  ;;  %v535_v25 = vrot.slane %v533_v22, 1  ;;  %v543_v31 = vrot.slane %v541_v26, 1  ;;  %v549_v36 = vshll.u32 %v7840_v32, 16  ;;  %v7844_v57 = vld [vmem:[%s8210_s26 + $0x48] sm:$0xff]   ;;  %v7845_v63 = vld [vmem:[%s8210_s26 + $0x50] sm:$0xff]  }
  0x16   : > { %v515_v13 = vor.u32 %v514_v11, %v510_v7  ;;  %v523_v17 = vor.u32 %v521_v14, %v519_v12  ;;  %v553_v40 = vshrl.u32 %v7840_v32, 16  ;;  %v557_v42 = vshll.u32 %v7841_v39, 16  ;;  %v7846_v6 = vld [vmem:[%s8210_s26 + $0x58] sm:$0xff]  }
  0x17   : > { %v531_v24 = vor.u32 %v529_v21, %v527_v18  ;;  %v539_v33 = vor.u32 %v537_v29, %v535_v25  ;;  %v547_v37 = vor.u32 %v545_v35, %v543_v31  ;;  %v551_v38 = vrot.slane %v549_v36, 1  ;;  %v7850_v30 = vld [vmem:[%s8210_s26 + $0x78] sm:$0xff]  }
  0x18   : > { %v520_v16 = vsel %vm508_vm3, %v515_v13, %v519_v12  ;;  %v528_v20 = vsel %vm508_vm3, %v523_v17, %v527_v18  ;;  %v559_v44 = vrot.slane %v557_v42, 1  ;;  %v561_v46 = vshrl.u32 %v7841_v39, 16  ;;  %v7847_v12 = vld [vmem:[%s8210_s26 + $0x60] sm:$0xff]   ;;  %v7848_v18 = vld [vmem:[%s8210_s26 + $0x68] sm:$0xff]  }
  0x19   : > { %7152 = vmatmul.mubr.msk.bf16.vlgmr.msra.gmra.mrb[0].mxu0 %vm649_vm2, %v520_v16  ;;  %v536_v28 = vsel %vm508_vm3, %v531_v24, %v535_v25  ;;  %v544_v34 = vsel %vm508_vm3, %v539_v33, %v543_v31  ;;  %v552_v41 = vsel %vm508_vm3, %v547_v37, %v551_v38  ;;  %v555_v43 = vor.u32 %v553_v40, %v551_v38  ;;  %v7849_v24 = vld [vmem:[%s8210_s26 + $0x70] sm:$0xff]  }
  0x1a   : > { %7155 = vmatprep.mubr.msk.bf16.mxu0 %vm8109_vm1, %v8108_v0  ;;  %7230 = vmatmul.mubr.msk.bf16.gmra.mrb[4].mxu1 %vm649_vm2, %v7837_v10  ;;  %v565_v48 = vshll.u32 %v7842_v45, 16  ;;  %v563_v49 = vor.u32 %v561_v46, %v559_v44  ;;  %v569_v52 = vshrl.u32 %v7842_v45, 16  ;;  %v573_v54 = vshll.u32 %v7843_v51, 16 }
  0x1b   : > { %7233 = vmatprep.mubr.msk.bf16.mxu1 %vm8109_vm1, %v8108_v0  ;;  %7220 = vmatpush3.bf16.msra.mxu0 %v914_v4  ;;  %v560_v47 = vsel %vm508_vm3, %v555_v43, %v559_v44  ;;  %v577_v58 = vshrl.u32 %v7843_v51, 16  ;;  %v581_v60 = vshll.u32 %v7844_v57, 16  ;;  %v585_v1 = vshrl.u32 %v7844_v57, 16 }
  0x1c   : > { %7289 = vmatprep.subr.bf16.mxu0 %v8108_v0  ;;  %v567_v50 = vrot.slane %v565_v48, 1  ;;  %v575_v56 = vrot.slane %v573_v54, 1  ;;  %v589_v3 = vshll.u32 %v7845_v63, 16  ;;  %v593_v7 = vshrl.u32 %v7845_v63, 16  ;;  %v7858_v48 = vld [vmem:[%s8210_s26 + $0x18] sm:$0xff]  }
  0x1d   : > { %v583_v62 = vrot.slane %v581_v60, 1  ;;  %v597_v9 = vshll.u32 %v7846_v6, 16  ;;  %v601_v14 = vshrl.u32 %v7846_v6, 16  ;;  %v605_v15 = vshll.u32 %v7847_v12, 16  ;;  %v7853_v54 = vld [vmem:[%s9803_s1 + $0x10] sm:$0x3f]  }
  0x1e   : > { %v568_v53 = vsel %vm508_vm3, %v563_v49, %v567_v50  ;;  %v571_v55 = vor.u32 %v569_v52, %v567_v50  ;;  %v579_v61 = vor.u32 %v577_v58, %v575_v56  ;;  %v591_v5 = vrot.slane %v589_v3, 1  ;;  %v7856_v50 = vld [vmem:[%s8210_s26 + $0x8] sm:$0xff]  }
  0x1f   : > { %v587_v4 = vor.u32 %v585_v1, %v583_v62  ;;  %v599_v11 = vrot.slane %v597_v9, 1  ;;  %v607_v17 = vrot.slane %v605_v15, 1  ;;  %v613_v21 = vshll.u32 %v7848_v18, 16  ;;  %v7862_v1 = vld [vmem:[%s8210_s26 + $0x28] sm:$0xff]  }
  0x20   : > { %v576_v59 = vsel %vm508_vm3, %v571_v55, %v575_v56  ;;  %v584_v2 = vsel %vm508_vm3, %v579_v61, %v583_v62  ;;  %v595_v10 = vor.u32 %v593_v7, %v591_v5  ;;  %v617_v26 = vshrl.u32 %v7848_v18, 16  ;;  %v7860_v56 = vld [vmem:[%s8210_s26 + $0x20] sm:$0xff]  }
  0x21   : > { %7156 = vmatmul.mubr.msk.bf16.gmra.mrb[4].mxu0 %vm649_vm2, %v528_v20  ;;  %v592_v8 = vsel %vm508_vm3, %v587_v4, %v591_v5  ;;  %v603_v16 = vor.u32 %v601_v14, %v599_v11  ;;  %v609_v20 = vshrl.u32 %v7847_v12, 16  ;;  %v621_v27 = vshll.u32 %v7849_v24, 16  ;;  %v8099_v4 = vld [vmem:[%s8210_s26] sm:$0xff]  }
  0x22   : > { %7159 = vmatprep.mubr.msk.bf16.mxu0 %vm8109_vm1, %v8108_v0  ;;  %7234 = vmatmul.mubr.msk.bf16.gmra.mrb[8].mxu1 %vm649_vm2, %v7838_v19  ;;  %v600_v13 = vsel %vm508_vm3, %v595_v10, %v599_v11  ;;  %v629_v33 = vshll.u32 %v7850_v30, 16  ;;  %v633_v37 = vshrl.u32 %v7850_v30, 16  ;;  %v1210_v55 = vshll.u32 %v7856_v50, 16  ;;  %v7864_v11 = vld [vmem:[%s8210_s26 + $0x30] sm:$0xff]   ;;  %v7861_v14 = vld [vmem:[%s8210_s26 + $0x20] sm:$0xff]  }
  0x23   : > { %7237 = vmatprep.mubr.msk.bf16.mxu1 %vm8109_vm1, %v8108_v0  ;;  %v608_v19 = vsel %vm508_vm3, %v603_v16, %v607_v17  ;;  %v611_v22 = vor.u32 %v609_v20, %v607_v17  ;;  %v623_v29 = vrot.slane %v621_v27, 1  ;;  %v1736_v60 = vrot.slane %v7860_v56, 1  ;;  %v7866_v20 = vld [vmem:[%s8210_s26 + $0x38] sm:$0xff]  }
  0x24   : > { %v631_v36 = vrot.slane %v629_v33, 1  ;;  %v1208_v61 = vshrl.u32 %v7856_v50, 16  ;;  %v1212_v62 = vrot.slane %v1210_v55, 1  ;;  %v1740_v15 = vrot.slane %v7864_v11, 1  ;;  %v7869_v50 = vld [vmem:[%s8210_s26 + $0x40] sm:$0xff]   ;;  %v7874_v56 = vld [vmem:[%s8210_s26 + $0x58] sm:$0xff]  }
  0x25   : > { %v7878_v11 = vld [vmem:[%s8210_s26 + $0x68] sm:$0xff]  }
  0x26   : > { %v635_v42 = vor.u32 %v633_v37, %v631_v36  ;;  %v1213_v5 = vor.u32 %v1212_v62, %v1208_v61  ;;  %v1267_v62 = vshrl.u32 %v7869_v50, 16 }
  0x29   : > { %7160 = vmatmul.mubr.msk.bf16.gmra.mrb[8].mxu0 %vm649_vm2, %v536_v28 }
  0x2a   : > { %7163 = vmatprep.mubr.msk.bf16.mxu0 %vm8109_vm1, %v8108_v0  ;;  %7238 = vmatmul.mubr.msk.bf16.gmra.mrb[12].mxu1 %vm649_vm2, %v7839_v23  ;;  %v615_v23 = vrot.slane %v613_v21, 1 }
  0x2b   : > { %7241 = vmatprep.mubr.msk.bf16.mxu1 %vm8109_vm1, %v8108_v0 }
  0x2c   : > { %v616_v25 = vsel %vm508_vm3, %v611_v22, %v615_v23  ;;  %v619_v28 = vor.u32 %v617_v26, %v615_v23  ;;  %v7863_v23 = vld [vmem:[%s8210_s26 + $0x28] sm:$0xff]   ;;  %v1235_v26 = vshrl.u32 %v7861_v14, 16 }
  0x2d   : > { %v1239_v27 = vshll.u32 %v7863_v23, 16 }
  0x2e   : > { %v624_v31 = vsel %vm508_vm3, %v619_v28, %v623_v29 }
  0x31   : > { %7164 = vmatmul.mubr.msk.bf16.gmra.mrb[12].mxu0 %vm649_vm2, %v544_v34  ;;  %v7851_v34 = vld [vmem:[%s8210_s26 + $0x80] sm:$0xff]  }
  0x32   : > { %7167 = vmatprep.mubr.msk.bf16.mxu0 %vm8109_vm1, %v8108_v0  ;;  %7242 = vmatmul.mubr.msk.bf16.gmra.mrb[16].mxu1 %vm649_vm2, %v7840_v32  ;;  %v625_v32 = vshrl.u32 %v7849_v24, 16  ;;  %v637_v38 = vshll.u32 %v7851_v34, 16 }
  0x33   : > { %7245 = vmatprep.mubr.msk.bf16.mxu1 %vm8109_vm1, %v8108_v0 }
  0x34   : > { %v627_v35 = vor.u32 %v625_v32, %v623_v29  ;;  %v639_v43 = vrot.slane %v637_v38, 1  ;;  %v7868_v29 = vld [vmem:[%s8210_s26 + $0x40] sm:$0xff]   ;;  %v7865_v32 = vld [vmem:[%s8210_s26 + $0x30] sm:$0xff]   ;;  %v7870_v38 = vld [vmem:[%s8210_s26 + $0x48] sm:$0xff]  }
  0x35   : > { %v1744_v33 = vrot.slane %v7868_v29, 1 }
  0x36   : > { %v632_v40 = vsel %vm508_vm3, %v627_v35, %v631_v36  ;;  %v640_v46 = vsel %vm508_vm3, %v635_v42, %v639_v43  ;;  %v1243_v35 = vshrl.u32 %v7863_v23, 16  ;;  %v1247_v36 = vshll.u32 %v7865_v32, 16 }
  0x37   : > { %v1746_v42 = vrot.slane %v7870_v38, 1 }
  0x39   : > { %7168 = vmatmul.mubr.msk.bf16.gmra.mrb[16].mxu0 %vm649_vm2, %v552_v41  ;;  %v7854_v41 = vld [vmem:[%s8210_s26 + $0x8] sm:$0xfe]  }
  0x3a   : > { %7171 = vmatprep.mubr.msk.bf16.mxu0 %vm8109_vm1, %v8108_v0  ;;  %7246 = vmatmul.mubr.msk.bf16.gmra.mrb[20].mxu1 %vm649_vm2, %v7841_v39  ;;  %v7855_v39 = vld [vmem:[%s8210_s26 + $0x10] sm:$0xff]   ;;  %v1731_v44 = vrot.slane %v7854_v41, 1  ;;  %v7867_v41 = vld [vmem:[%s8210_s26 + $0x38] sm:$0xff]  }
  0x3b   : > { %7249 = vmatprep.mubr.msk.bf16.mxu1 %vm8109_vm1, %v8108_v0 }
  0x41   : > { %7172 = vmatmul.mubr.msk.bf16.gmra.mrb[20].mxu0 %vm649_vm2, %v560_v47  ;;  %v641_v47 = vshrl.u32 %v7851_v34, 16 }
  0x42   : > { %7175 = vmatprep.mubr.msk.bf16.mxu0 %vm8109_vm1, %v8108_v0  ;;  %7250 = vmatmul.mubr.msk.bf16.gmra.mrb[24].mxu1 %vm649_vm2, %v7842_v45  ;;  %v1732_v45 = vrot.slane %v7855_v39, 1 }
  0x43   : > { %7253 = vmatprep.mubr.msk.bf16.mxu1 %vm8109_vm1, %v8108_v0  ;;  %v643_v52 = vor.u32 %v641_v47, %v639_v43  ;;  %v7872_v47 = vld [vmem:[%s8210_s26 + $0x50] sm:$0xff]  }
  0x44   : > { %v1733_v49 = vsel %vm1730_vm4, %v1731_v44, %v1732_v45  ;;  %v1251_v44 = vshrl.u32 %v7865_v32, 16 }
  0x49   : > { %7176 = vmatmul.mubr.msk.bf16.gmra.mrb[24].mxu0 %vm649_vm2, %v568_v53  ;;  %v7857_v53 = vld [vmem:[%s8210_s26 + $0x10] sm:$0xff]  }
  0x4a   : > { %7179 = vmatprep.mubr.msk.bf16.mxu0 %vm8109_vm1, %v8108_v0  ;;  %7254 = vmatmul.mubr.msk.bf16.gmra.mrb[28].mxu1 %vm649_vm2, %v7843_v51  ;;  %v1734_v51 = vrot.slane %v7858_v48, 1  ;;  %v1215_v58 = vshll.u32 %v7857_v53, 16 }
  0x4b   : > { %7257 = vmatprep.mubr.msk.bf16.mxu1 %vm8109_vm1, %v8108_v0 }
  0x4c   : > { %v1737_v3 = vsel %vm1730_vm4, %v1734_v51, %v1736_v60 }
  0x51   : > { %7180 = vmatmul.mubr.msk.bf16.gmra.mrb[28].mxu0 %vm649_vm2, %v576_v59  ;;  %v1399_v59 = vsel %vm701_vm0, %v7853_v54, 0  ;;  %v1263_v54 = vshll.u32 %v7869_v50, 16  ;;  %vm4189_vm0 = vcmask 129024  }
  0x52   : > { %7183 = vmatprep.mubr.msk.bf16.mxu0 %vm8109_vm1, %v8108_v0  ;;  %7258 = vmatmul.mubr.msk.bf16.gmra.mrb[32].mxu1 %vm649_vm2, %v7844_v57  ;;  %v1735_v57 = vsel %vm1730_vm4, %v1732_v45, %v1734_v51  ;;  %v1255_v45 = vshll.u32 %v7867_v41, 16  ;;  %v1748_v51 = vrot.slane %v7872_v47, 1 }
  0x53   : > { %7261 = vmatprep.mubr.msk.bf16.mxu1 %vm8109_vm1, %v8108_v0 }
  0x54   : > { %v1749_v55 = vsel %vm1730_vm4, %v1746_v42, %v1748_v51 }
  0x59   : > { %7184 = vmatmul.mubr.msk.bf16.gmra.mrb[32].mxu0 %vm649_vm2, %v584_v2  ;;  %v7859_v2 = vld [vmem:[%s8210_s26 + $0x18] sm:$0xff]  }
  0x5a   : > { %7187 = vmatprep.mubr.msk.bf16.mxu0 %vm8109_vm1, %v8108_v0  ;;  %7262 = vmatmul.mubr.msk.bf16.gmra.mrb[36].mxu1 %vm649_vm2, %v7845_v63  ;;  %v1217_v63 = vrot.slane %v1215_v58, 1  ;;  %v1223_v9 = vshll.u32 %v7859_v2, 16  ;;  %v1227_v17 = vshrl.u32 %v7859_v2, 16  ;;  %v1265_v58 = vrot.slane %v1263_v54, 1  ;;  %v7876_v2 = vld [vmem:[%s8210_s26 + $0x60] sm:$0xff]  }
  0x5b   : > { %7265 = vmatprep.mubr.msk.bf16.mxu1 %vm8109_vm1, %v8108_v0 }
  0x5c   : > { %v1218_v7 = vsel %vm508_vm3, %v1213_v5, %v1217_v63  ;;  %v7873_v5 = vld [vmem:[%s8210_s26 + $0x50] sm:$0xff]  }
  0x61   : > { %7188 = vmatmul.mubr.msk.bf16.gmra.mrb[36].mxu0 %vm649_vm2, %v592_v8  ;;  %v1219_v8 = vshrl.u32 %v7857_v53, 16  ;;  %v1259_v53 = vshrl.u32 %v7867_v41, 16  ;;  %v7882_v41 = vld [vmem:[%s8210_s26 + $0x78] sm:$0xff]  }
  0x62   : > { %7191 = vmatprep.mubr.msk.bf16.mxu0 %vm8109_vm1, %v8108_v0  ;;  %7266 = vmatmul.mubr.msk.bf16.gmra.mrb[40].mxu1 %vm649_vm2, %v7846_v6  ;;  %v1738_v6 = vrot.slane %v7862_v1, 1 }
  0x63   : > { %7269 = vmatprep.mubr.msk.bf16.mxu1 %vm8109_vm1, %v8108_v0 }
  0x64   : > { %v1739_v10 = vsel %vm1730_vm4, %v1736_v60, %v1738_v6  ;;  %v1750_v60 = vrot.slane %v7874_v56, 1 }
  0x66   : > { %v1751_v1 = vsel %vm1730_vm4, %v1748_v51, %v1750_v60 }
  0x69   : > { %7192 = vmatmul.mubr.msk.bf16.gmra.mrb[40].mxu0 %vm649_vm2, %v600_v13  ;;  %v1225_v13 = vrot.slane %v1223_v9, 1  ;;  %v1279_v9 = vshll.u32 %v7873_v5, 16 }
  0x6a   : > { %7195 = vmatprep.mubr.msk.bf16.mxu0 %vm8109_vm1, %v8108_v0  ;;  %7270 = vmatmul.mubr.msk.bf16.gmra.mrb[44].mxu1 %vm649_vm2, %v7847_v12  ;;  %v1221_v12 = vor.u32 %v1219_v8, %v1217_v63 }
  0x6b   : > { %7273 = vmatprep.mubr.msk.bf16.mxu1 %vm8109_vm1, %v8108_v0  ;;  %v1229_v21 = vor.u32 %v1227_v17, %v1225_v13 }
  0x6c   : > { %v1226_v16 = vsel %vm508_vm3, %v1221_v12, %v1225_v13  ;;  %v1281_v13 = vrot.slane %v1279_v9, 1 }
  0x71   : > { %7196 = vmatmul.mubr.msk.bf16.gmra.mrb[44].mxu0 %vm649_vm2, %v608_v19  ;;  %v1741_v19 = vsel %vm1730_vm4, %v1738_v6, %v1740_v15  ;;  %v1752_v6 = vrot.slane %v7876_v2, 1 }
  0x72   : > { %7199 = vmatprep.mubr.msk.bf16.mxu0 %vm8109_vm1, %v8108_v0  ;;  %7274 = vmatmul.mubr.msk.bf16.gmra.mrb[48].mxu1 %vm649_vm2, %v7848_v18  ;;  %v1231_v18 = vshll.u32 %v7861_v14, 16  ;;  %v7875_v14 = vld [vmem:[%s8210_s26 + $0x58] sm:$0xff]  }
  0x73   : > { %7277 = vmatprep.mubr.msk.bf16.mxu1 %vm8109_vm1, %v8108_v0 }
  0x74   : > { %v1233_v22 = vrot.slane %v1231_v18, 1  ;;  %v1283_v18 = vshrl.u32 %v7873_v5, 16 }
  0x79   : > { %7200 = vmatmul.mubr.msk.bf16.gmra.mrb[48].mxu0 %vm649_vm2, %v616_v25  ;;  %v1234_v25 = vsel %vm508_vm3, %v1229_v21, %v1233_v22 }
  0x7a   : > { %7203 = vmatprep.mubr.msk.bf16.mxu0 %vm8109_vm1, %v8108_v0  ;;  %7278 = vmatmul.mubr.msk.bf16.gmra.mrb[52].mxu1 %vm649_vm2, %v7849_v24  ;;  %v1742_v24 = vrot.slane %v7866_v20, 1 }
  0x7b   : > { %7281 = vmatprep.mubr.msk.bf16.mxu1 %vm8109_vm1, %v8108_v0 }
  0x7c   : > { %v1743_v28 = vsel %vm1730_vm4, %v1740_v15, %v1742_v24  ;;  %v1745_v37 = vsel %vm1730_vm4, %v1742_v24, %v1744_v33  ;;  %v1754_v15 = vrot.slane %v7878_v11, 1  ;;  %v7880_v24 = vld [vmem:[%s8210_s26 + $0x70] sm:$0xff]  }
  0x7d   : > { %v1756_v29 = vrot.slane %v7880_v24, 1 }
  0x7e   : > { %v1755_v23 = vsel %vm1730_vm4, %v1752_v6, %v1754_v15 }
  0x81   : > { %7204 = vmatmul.mubr.msk.bf16.gmra.mrb[52].mxu0 %vm649_vm2, %v624_v31  ;;  %v1241_v31 = vrot.slane %v1239_v27, 1  ;;  %v7877_v27 = vld [vmem:[%s8210_s26 + $0x60] sm:$0xff]  }
  0x82   : > { %7207 = vmatprep.mubr.msk.bf16.mxu0 %vm8109_vm1, %v8108_v0  ;;  %7282 = vmatmul.mubr.msk.bf16.gmra.mrb[56].mxu1 %vm649_vm2, %v7850_v30  ;;  %v1237_v30 = vor.u32 %v1235_v26, %v1233_v22 }
  0x83   : > { %7285 = vmatprep.mubr.msk.bf16.mxu1 %vm8109_vm1, %v8108_v0  ;;  %v1245_v39 = vor.u32 %v1243_v35, %v1241_v31  ;;  %v1295_v35 = vshll.u32 %v7877_v27, 16 }
  0x89   : > { %7208 = vmatmul.mubr.msk.bf16.gmra.mrb[56].mxu0 %vm649_vm2, %v632_v40  ;;  %v1249_v40 = vrot.slane %v1247_v36, 1 }
  0x8a   : > { %7211 = vmatprep.mubr.msk.bf16.mxu0 %vm8109_vm1, %v8108_v0  ;;  %7286 = vmatmul.mubr.msk.bf16.gmra.mrb[60].mxu1 %vm649_vm2, %v7851_v34  ;;  %v1242_v34 = vsel %vm508_vm3, %v1237_v30, %v1241_v31 }
  0x8b   : > { %7361 = vmatprep.mubr.msk.bf16.mxu1 %vm8109_vm1, %v8108_v0  ;;  %v1250_v43 = vsel %vm508_vm3, %v1245_v39, %v1249_v40  ;;  %v1253_v48 = vor.u32 %v1251_v44, %v1249_v40  ;;  %v1757_v40 = vsel %vm1730_vm4, %v1754_v15, %v1756_v29  ;;  %v7879_v44 = vld [vmem:[%s8210_s26 + $0x68] sm:$0xff]  }
  0x91   : > { %7212 = vmatmul.mubr.msk.bf16.gmra.mrb[60].mxu0 %vm649_vm2, %v640_v46  ;;  %v1747_v46 = vsel %vm1730_vm4, %v1744_v33, %v1746_v42 }
  0x92   : > { %7215 = vmatprep.mubr.msk.bf16.mxu0 %vm8109_vm1, %v8108_v0  ;;  %7362 = vmatmul.mubr.msk.bf16.vlgmr.msra.gmra.mrb[64].mxu1 %vm649_vm2, %v1733_v49  ;;  %v1257_v49 = vrot.slane %v1255_v45, 1 }
  0x93   : > { %7365 = vmatprep.mubr.msk.bf16.mxu1 %vm8109_vm1, %v8108_v0 }
  0x99   : > { %7216 = vmatmul.mubr.msk.bf16.gmra.mrb[64].mxu0 %vm649_vm2, %v643_v52  ;;  %v1258_v52 = vsel %vm508_vm3, %v1253_v48, %v1257_v49 }
  0x9a   : > { %7221 = vmatprep.mubr.msk.bf16.mxu0 %vm8109_vm1, %v8108_v0  ;;  %7366 = vmatmul.mubr.msk.bf16.gmra.mrb[68].mxu1 %vm649_vm2, %v1735_v57  ;;  %v1261_v57 = vor.u32 %v1259_v53, %v1257_v49  ;;  %v1303_v53 = vshll.u32 %v7879_v44, 16 }
  0x9b   : > { %7369 = vmatprep.mubr.msk.bf16.mxu1 %vm8109_vm1, %v8108_v0 }
  0x9c   : > { %v1266_v61 = vsel %vm508_vm3, %v1261_v57, %v1265_v58 }
  0xa1   : > { %7222 = vmatmul.mubr.msk.bf16.vlgmr.msra.gmra.mrb[68].mxu0 %vm649_vm2, %v8099_v4 }
  0xa2   : > { %7290 = vmatpush3.bf16.msra.mxu0 %v1399_v59  ;;  %7291 = vmatprep.mubr.msk.bf16.mxu0 %vm8109_vm1, %v8108_v0  ;;  %v7871_v59 = vld [vmem:[%s8210_s26 + $0x48] sm:$0xff]  }
  0xa3   : > { %7370 = vmatmul.mubr.msk.bf16.gmra.mrb[72].mxu1 %vm649_vm2, %v1737_v3  ;;  %v1271_v63 = vshll.u32 %v7871_v59, 16  ;;  %v1269_v3 = vor.u32 %v1267_v62, %v1265_v58  ;;  %v1275_v8 = vshrl.u32 %v7871_v59, 16  ;;  %v1305_v62 = vrot.slane %v1303_v53, 1 }
  0xa4   : > { %7373 = vmatprep.mubr.msk.bf16.mxu1 %vm8109_vm1, %v8108_v0 }
  0xa5   : > { %v1273_v4 = vrot.slane %v1271_v63, 1  ;;  %v7881_v63 = vld [vmem:[%s8210_s26 + $0x70] sm:$0xff]  }
  0xa6   : > { %v1311_v9 = vshll.u32 %v7881_v63, 16 }
  0xa7   : > { %v1277_v12 = vor.u32 %v1275_v8, %v1273_v4  ;;  %v1307_v8 = vshrl.u32 %v7879_v44, 16 }
  0xa9   : > { %7292 = vmatmul.mubr.msk.bf16.vlgmr.msra.gmra.mrb[72].mxu0 %vm649_vm2, %v1218_v7  ;;  %v1274_v7 = vsel %vm508_vm3, %v1269_v3, %v1273_v4  ;;  %v1282_v17 = vsel %vm508_vm3, %v1277_v12, %v1281_v13 }
  0xaa   : > { %7295 = vmatprep.mubr.msk.bf16.mxu0 %vm8109_vm1, %v8108_v0 }
  0xab   : > { %7374 = vmatmul.mubr.msk.bf16.gmra.mrb[76].mxu1 %vm649_vm2, %v1739_v10  ;;  %v1753_v10 = vsel %vm1730_vm4, %v1750_v60, %v1752_v6  ;;  %v7884_v60 = vld [vmem:[%s8210_s26 + $0x80] sm:$0xff]  }
  0xac   : > { %7377 = vmatprep.mubr.msk.bf16.mxu1 %vm8109_vm1, %v8108_v0  ;;  %v1760_v2 = vrot.slane %v7884_v60, 1  ;;  %v7887_v60 = vld [vmem:[%s8210_s26 + $0x88] sm:$0xff]  }
  0xb1   : > { %7296 = vmatmul.mubr.msk.bf16.gmra.mrb[76].mxu0 %vm649_vm2, %v1226_v16 }
  0xb2   : > { %7299 = vmatprep.mubr.msk.bf16.mxu0 %vm8109_vm1, %v8108_v0 }
  0xb3   : > { %7378 = vmatmul.mubr.msk.bf16.gmra.mrb[80].mxu1 %vm649_vm2, %v1741_v19  ;;  %v1287_v19 = vshll.u32 %v7875_v14, 16 }
  0xb4   : > { %7381 = vmatprep.mubr.msk.bf16.mxu1 %vm8109_vm1, %v8108_v0 }
  0xb5   : > { %v1289_v26 = vrot.slane %v1287_v19, 1  ;;  %v7883_v19 = vld [vmem:[%s8210_s26 + $0x78] sm:$0xff]  }
  0xb9   : > { %7300 = vmatmul.mubr.msk.bf16.gmra.mrb[80].mxu0 %vm649_vm2, %v1234_v25  ;;  %v1285_v25 = vor.u32 %v1283_v18, %v1281_v13  ;;  %v1313_v18 = vrot.slane %v1311_v9, 1 }
  0xba   : > { %7303 = vmatprep.mubr.msk.bf16.mxu0 %vm8109_vm1, %v8108_v0 }
  0xbb   : > { %7382 = vmatmul.mubr.msk.bf16.gmra.mrb[84].mxu1 %vm649_vm2, %v1743_v28  ;;  %v1290_v33 = vsel %vm508_vm3, %v1285_v25, %v1289_v26 }
  0xbc   : > { %7385 = vmatprep.mubr.msk.bf16.mxu1 %vm8109_vm1, %v8108_v0 }
  0xc1   : > { %7304 = vmatmul.mubr.msk.bf16.gmra.mrb[84].mxu0 %vm649_vm2, %v1242_v34  ;;  %v1291_v34 = vshrl.u32 %v7875_v14, 16 }
  0xc2   : > { %7307 = vmatprep.mubr.msk.bf16.mxu0 %vm8109_vm1, %v8108_v0 }
  0xc3   : > { %7386 = vmatmul.mubr.msk.bf16.gmra.mrb[88].mxu1 %vm649_vm2, %v1745_v37  ;;  %v1293_v42 = vor.u32 %v1291_v34, %v1289_v26 }
  0xc4   : > { %7389 = vmatprep.mubr.msk.bf16.mxu1 %vm8109_vm1, %v8108_v0 }
  0xc9   : > { %7308 = vmatmul.mubr.msk.bf16.gmra.mrb[88].mxu0 %vm649_vm2, %v1250_v43  ;;  %v1297_v43 = vrot.slane %v1295_v35, 1 }
  0xca   : > { %7311 = vmatprep.mubr.msk.bf16.mxu0 %vm8109_vm1, %v8108_v0 }
  0xcb   : > { %7390 = vmatmul.mubr.msk.bf16.gmra.mrb[92].mxu1 %vm649_vm2, %v1747_v46  ;;  %v1758_v46 = vrot.slane %v7882_v41, 1  ;;  %v1298_v51 = vsel %vm508_vm3, %v1293_v42, %v1297_v43 }
  0xcc   : > { %7393 = vmatprep.mubr.msk.bf16.mxu1 %vm8109_vm1, %v8108_v0 }
  0xcd   : > { %v1759_v59 = vsel %vm1730_vm4, %v1756_v29, %v1758_v46  ;;  %v1761_v15 = vsel %vm1730_vm4, %v1758_v46, %v1760_v2  ;;  %v1319_v29 = vshll.u32 %v7883_v19, 16 }
  0xd1   : > { %7312 = vmatmul.mubr.msk.bf16.gmra.mrb[92].mxu0 %vm649_vm2, %v1258_v52  ;;  %v1299_v52 = vshrl.u32 %v7877_v27, 16  ;;  %v1315_v27 = vshrl.u32 %v7881_v63, 16 }
  0xd2   : > { %7315 = vmatprep.mubr.msk.bf16.mxu0 %vm8109_vm1, %v8108_v0 }
  0xd3   : > { %7394 = vmatmul.mubr.msk.bf16.gmra.mrb[96].mxu1 %vm649_vm2, %v1749_v55 }
  0xd4   : > { %7397 = vmatprep.mubr.msk.bf16.mxu1 %vm8109_vm1, %v8108_v0 }
  0xd9   : > { %7316 = vmatmul.mubr.msk.bf16.gmra.mrb[96].mxu0 %vm649_vm2, %v1266_v61  ;;  %v1301_v61 = vor.u32 %v1299_v52, %v1297_v43 }
  0xda   : > { %7319 = vmatprep.mubr.msk.bf16.mxu0 %vm8109_vm1, %v8108_v0 }
  0xdb   : > { %7398 = vmatmul.mubr.msk.bf16.gmra.mrb[100].mxu1 %vm649_vm2, %v1751_v1 }
  0xdc   : > { %7401 = vmatprep.mubr.msk.bf16.mxu1 %vm8109_vm1, %v8108_v0 }
  0xe1   : > { %7320 = vmatmul.mubr.msk.bf16.gmra.mrb[100].mxu0 %vm649_vm2, %v1274_v7  ;;  %v1306_v7 = vsel %vm508_vm3, %v1301_v61, %v1305_v62 }
  0xe2   : > { %7323 = vmatprep.mubr.msk.bf16.mxu0 %vm8109_vm1, %v8108_v0 }
  0xe3   : > { %7402 = vmatmul.mubr.msk.bf16.gmra.mrb[104].mxu1 %vm649_vm2, %v1753_v10 }
  0xe4   : > { %7405 = vmatprep.mubr.msk.bf16.mxu1 %vm8109_vm1, %v8108_v0 }
  0xe5   : > { %v958_v16 = vpop.f32.mrb[0].mxu1 }
  0xe6   : > { %v7227_v20 = vpop.f32.mrb[1].mxu1 }
  0xe7   : > { %v961_v21 = vpop.f32.mrb[2].mxu1 }
  0xe8   : > { %v7228_v22 = vpop.f32.mrb[3].mxu1 }
  0xe9   : > { %7324 = vmatmul.mubr.msk.bf16.gmra.mrb[104].mxu0 %vm649_vm2, %v1282_v17  ;;  %v1309_v17 = vor.u32 %v1307_v8, %v1305_v62 }
  0xea   : > { %7327 = vmatprep.mubr.msk.bf16.mxu0 %vm8109_vm1, %v8108_v0 }
  0xeb   : > { %7406 = vmatmul.mubr.msk.bf16.gmra.mrb[108].mxu1 %vm649_vm2, %v1755_v23  ;;  %v1314_v26 = vsel %vm508_vm3, %v1309_v17, %v1313_v18 }
  0xec   : > { %v8466_v28 = vpop.f32.mrb[0].mxu0  ;;  %7409 = vmatprep.mubr.msk.bf16.mxu1 %vm8109_vm1, %v8108_v0 }
  0xed   : > { %v7153_v30 = vpop.f32.mrb[1].mxu0  ;;  %v966_v31 = vpop.f32.mrb[4].mxu1 }
  0xee   : > { %v8470_v32 = vpop.f32.mrb[2].mxu0  ;;  %v7231_v36 = vpop.f32.mrb[5].mxu1 }
  0xef   : > { %v7154_v37 = vpop.f32.mrb[3].mxu0  ;;  %v969_v38 = vpop.f32.mrb[6].mxu1 }
  0xf0   : > { %v7232_v39 = vpop.f32.mrb[7].mxu1  ;;  %v7888_v37 = vld [vmem:[%s8210_s26 + $0x90] ss:$0 sps:$4 sm:$0x11]  }
  0xf1   : > { %7328 = vmatmul.mubr.msk.bf16.gmra.mrb[108].mxu0 %vm649_vm2, %v1290_v33  ;;  %v1321_v39 = vrot.slane %v1319_v29, 1  ;;  %v1764_v42 = vrot.slane %v7888_v37, 1 }
  0xf2   : > { %7331 = vmatprep.mubr.msk.bf16.mxu0 %vm8109_vm1, %v8108_v0 }
  0xf3   : > { %7410 = vmatmul.mubr.msk.bf16.gmra.mrb[112].mxu1 %vm649_vm2, %v1757_v40  ;;  %v7885_v40 = vld [vmem:[%s8210_s26 + $0x80] sm:$0xff]  }
  0xf4   : > { %v747_v45 = vpop.f32.mrb[4].mxu0  ;;  %7413 = vmatprep.mubr.msk.bf16.mxu1 %vm8109_vm1, %v8108_v0 }
  0xf5   : > { %v7157_v47 = vpop.f32.mrb[5].mxu0  ;;  %v974_v48 = vpop.f32.mrb[8].mxu1  ;;  %v8482_v49 = vadd.f32 %v958_v16, %v747_v45  ;;  %v7886_v16 = vld [vmem:[%s8210_s26 + $0x88] sm:$0xff]  }
  0xf6   : > { %v750_v50 = vpop.f32.mrb[6].mxu0  ;;  %v7235_v54 = vpop.f32.mrb[9].mxu1 }
  0xf7   : > { %v7158_v55 = vpop.f32.mrb[7].mxu0  ;;  %v977_v56 = vpop.f32.mrb[10].mxu1  ;;  %v8485_v57 = vadd.f32 %v961_v21, %v750_v50  ;;  %v1762_v21 = vrot.slane %v7886_v16, 1  ;;  %v1327_v50 = vshll.u32 %v7885_v40, 16 }
  0xf8   : > { %v7236_v58 = vpop.f32.mrb[11].mxu1 }
  0xf9   : > { %7332 = vmatmul.mubr.msk.bf16.gmra.mrb[112].mxu0 %vm649_vm2, %v1298_v51  ;;  %v1763_v36 = vsel %vm1730_vm4, %v1760_v2, %v1762_v21 }
  0xfa   : > { %7335 = vmatprep.mubr.msk.bf16.mxu0 %vm8109_vm1, %v8108_v0 }
  0xfb   : > { %7414 = vmatmul.mubr.msk.bf16.gmra.mrb[116].mxu1 %vm649_vm2, %v1759_v59  ;;  %v1329_v59 = vrot.slane %v1327_v50, 1 }
  0xfc   : > { %v755_v1 = vpop.f32.mrb[8].mxu0  ;;  %7417 = vmatprep.mubr.msk.bf16.mxu1 %vm8109_vm1, %v8108_v0 }
  0xfd   : > { %v7161_v3 = vpop.f32.mrb[9].mxu0  ;;  %v982_v4 = vpop.f32.mrb[12].mxu1  ;;  %v8496_v5 = vadd.f32 %v966_v31, %v755_v1 }
  0xfe   : > { %v758_v6 = vpop.f32.mrb[10].mxu0  ;;  %v7239_v10 = vpop.f32.mrb[13].mxu1 }
  0xff   : > { %v7162_v11 = vpop.f32.mrb[11].mxu0  ;;  %v985_v12 = vpop.f32.mrb[14].mxu1  ;;  %v8499_v13 = vadd.f32 %v969_v38, %v758_v6  ;;  %v1317_v38 = vor.u32 %v1315_v27, %v1313_v18  ;;  %v1335_v6 = vshll.u32 %v7887_v60, 16  ;;  %v1339_v27 = vshrl.u32 %v7887_v60, 16 }
 0x100   : > { %v7240_v14 = vpop.f32.mrb[15].mxu1 }
 0x101   : > { %7336 = vmatmul.mubr.msk.bf16.gmra.mrb[116].mxu0 %vm649_vm2, %v1306_v7  ;;  %v1322_v47 = vsel %vm508_vm3, %v1317_v38, %v1321_v39  ;;  %v1337_v14 = vrot.slane %v1335_v6, 1 }
 0x102   : > { %7339 = vmatprep.mubr.msk.bf16.mxu0 %vm8109_vm1, %v8108_v0 }
 0x103   : > { %7418 = vmatmul.mubr.msk.bf16.gmra.mrb[120].mxu1 %vm649_vm2, %v1761_v15 }
 0x104   : > { %v763_v20 = vpop.f32.mrb[12].mxu0  ;;  %7421 = vmatprep.mubr.msk.bf16.mxu1 %vm8109_vm1, %v8108_v0 }
 0x105   : > { %v7165_v22 = vpop.f32.mrb[13].mxu0  ;;  %v990_v23 = vpop.f32.mrb[16].mxu1  ;;  %v8510_v24 = vadd.f32 %v974_v48, %v763_v20  ;;  %v1323_v48 = vshrl.u32 %v7883_v19, 16 }
 0x106   : > { %v766_v25 = vpop.f32.mrb[14].mxu0  ;;  %v7243_v30 = vpop.f32.mrb[17].mxu1 }
 0x107   : > { %v7166_v31 = vpop.f32.mrb[15].mxu0  ;;  %v993_v33 = vpop.f32.mrb[18].mxu1  ;;  %v8513_v34 = vadd.f32 %v977_v56, %v766_v25  ;;  %v1765_v56 = vsel %vm1730_vm4, %v1762_v21, %v1764_v42  ;;  %v1325_v58 = vor.u32 %v1323_v48, %v1321_v39 }
 0x108   : > { %v7244_v35 = vpop.f32.mrb[19].mxu1 }
 0x109   : > { %7340 = vmatmul.mubr.msk.bf16.gmra.mrb[120].mxu0 %vm649_vm2, %v1314_v26  ;;  %v1330_v3 = vsel %vm508_vm3, %v1325_v58, %v1329_v59 }
 0x10a   : > { %7343 = vmatprep.mubr.msk.bf16.mxu0 %vm8109_vm1, %v8108_v0 }
 0x10b   : > { %7422 = vmatmul.mubr.msk.bf16.gmra.mrb[124].mxu1 %vm649_vm2, %v1763_v36 }
 0x10c   : > { %v771_v41 = vpop.f32.mrb[16].mxu0  ;;  %7425 = vmatprep.mubr.msk.bf16.mxu1 %vm8109_vm1, %v8108_v0 }
 0x10d   : > { %v7169_v43 = vpop.f32.mrb[17].mxu0  ;;  %v998_v44 = vpop.f32.mrb[20].mxu1  ;;  %v8524_v45 = vadd.f32 %v982_v4, %v771_v41  ;;  %v1331_v4 = vshrl.u32 %v7885_v40, 16 }
 0x10e   : > { %v774_v46 = vpop.f32.mrb[18].mxu0  ;;  %v7247_v51 = vpop.f32.mrb[21].mxu1 }
 0x10f   : > { %v7170_v52 = vpop.f32.mrb[19].mxu0  ;;  %v1001_v53 = vpop.f32.mrb[22].mxu1  ;;  %v8527_v54 = vadd.f32 %v985_v12, %v774_v46  ;;  %v1333_v12 = vor.u32 %v1331_v4, %v1329_v59 }
 0x110   : > { %v7248_v55 = vpop.f32.mrb[23].mxu1 }
 0x111   : > { %7344 = vmatmul.mubr.msk.bf16.gmra.mrb[124].mxu0 %vm649_vm2, %v1322_v47  ;;  %v1338_v20 = vsel %vm508_vm3, %v1333_v12, %v1337_v14 }
 0x112   : > { %7347 = vmatprep.mubr.msk.bf16.mxu0 %vm8109_vm1, %v8108_v0 }
 0x113   : > { %7426 = vmatmul.mubr.msk.bf16.gmra.mrb[128].mxu1 %vm649_vm2, %v1765_v56 }
 0x114   : > { %v779_v61 = vpop.f32.mrb[20].mxu0 }
 0x115   : > { %v7173_v62 = vpop.f32.mrb[21].mxu0  ;;  %v1006_v63 = vpop.f32.mrb[24].mxu1  ;;  %v8535_v1 = vadd.f32 %v990_v23, %v779_v61 }
 0x116   : > { %v782_v2 = vpop.f32.mrb[22].mxu0  ;;  %v7251_v7 = vpop.f32.mrb[25].mxu1 }
 0x117   : > { %v7174_v8 = vpop.f32.mrb[23].mxu0  ;;  %v1009_v9 = vpop.f32.mrb[26].mxu1  ;;  %v8538_v10 = vadd.f32 %v993_v33, %v782_v2  ;;  %v1341_v33 = vor.u32 %v1339_v27, %v1337_v14 }
 0x118   : > { %v7252_v11 = vpop.f32.mrb[27].mxu1 }
 0x119   : > { %7348 = vmatmul.mubr.msk.bf16.gmra.mrb[128].mxu0 %vm649_vm2, %v1330_v3 }
 0x11a   : > { %7351 = vmatprep.mubr.msk.bf16.mxu0 %vm8109_vm1, %v8108_v0 }
 0x11c   : > { %v787_v15 = vpop.f32.mrb[24].mxu0 }
 0x11d   : > { %v8543_v16 = vadd.f32 %v998_v44, %v787_v15  ;;  %v7177_v17 = vpop.f32.mrb[25].mxu0  ;;  %v1014_v18 = vpop.f32.mrb[28].mxu1 }
 0x11e   : > { %v790_v19 = vpop.f32.mrb[26].mxu0  ;;  %v7255_v21 = vpop.f32.mrb[29].mxu1 }
 0x11f   : > { %v8546_v22 = vadd.f32 %v1001_v53, %v790_v19  ;;  %v7178_v23 = vpop.f32.mrb[27].mxu0  ;;  %v1017_v25 = vpop.f32.mrb[30].mxu1 }
 0x120   : > { %v7256_v26 = vpop.f32.mrb[31].mxu1 }
 0x121   : > { %7352 = vmatmul.mubr.msk.bf16.gmra.mrb[132].mxu0 %vm649_vm2, %v1338_v20 }
 0x122   : > { %7355 = vmatprep.mubr.msk.bf16.mxu0 %vm8109_vm1, %v8108_v0 }
 0x124   : > { %v795_v29 = vpop.f32.mrb[28].mxu0 }
 0x125   : > { %v8551_v30 = vadd.f32 %v1006_v63, %v795_v29  ;;  %v7181_v31 = vpop.f32.mrb[29].mxu0  ;;  %v1022_v35 = vpop.f32.mrb[32].mxu1 }
 0x126   : > { %v798_v36 = vpop.f32.mrb[30].mxu0  ;;  %v7259_v37 = vpop.f32.mrb[33].mxu1 }
 0x127   : > { %v8553_v38 = vadd.f32 %v1009_v9, %v798_v36  ;;  %v7182_v39 = vpop.f32.mrb[31].mxu0  ;;  %v1025_v40 = vpop.f32.mrb[34].mxu1 }
 0x128   : > { %v7260_v41 = vpop.f32.mrb[35].mxu1 }
 0x129   : > { %7356 = vmatmul.mubr.msk.bf16.gmra.mrb[136].mxu0 %vm649_vm2, %v1341_v33  ;;  %vm4305_vm2 = vcmask 1042432  }
 0x12c   : > { %v803_v42 = vpop.f32.mrb[32].mxu0 }
 0x12d   : > { %v8556_v43 = vadd.f32 %v1014_v18, %v803_v42  ;;  %v7185_v44 = vpop.f32.mrb[33].mxu0  ;;  %v1030_v46 = vpop.f32.mrb[36].mxu1 }
 0x12e   : > { %v806_v47 = vpop.f32.mrb[34].mxu0  ;;  %v7263_v48 = vpop.f32.mrb[37].mxu1 }
 0x12f   : > { %v8558_v50 = vadd.f32 %v1017_v25, %v806_v47  ;;  %v7186_v51 = vpop.f32.mrb[35].mxu0  ;;  %v1033_v52 = vpop.f32.mrb[38].mxu1 }
 0x130   : > { %v7264_v53 = vpop.f32.mrb[39].mxu1 }
 0x134   : > { %v811_v55 = vpop.f32.mrb[36].mxu0 }
 0x135   : > { %v8560_v56 = vadd.f32 %v1022_v35, %v811_v55  ;;  %v7189_v58 = vpop.f32.mrb[37].mxu0  ;;  %v1038_v59 = vpop.f32.mrb[40].mxu1 }
 0x136   : > { %v814_v60 = vpop.f32.mrb[38].mxu0  ;;  %v7267_v61 = vpop.f32.mrb[41].mxu1 }
 0x137   : > { %v8562_v62 = vadd.f32 %v1025_v40, %v814_v60  ;;  %v7190_v63 = vpop.f32.mrb[39].mxu0  ;;  %v1041_v2 = vpop.f32.mrb[42].mxu1 }
 0x138   : > { %v7268_v3 = vpop.f32.mrb[43].mxu1 }
 0x13c   : > { %v819_v4 = vpop.f32.mrb[40].mxu0 }
 0x13d   : > { %v8564_v6 = vadd.f32 %v1030_v46, %v819_v4  ;;  %v7193_v7 = vpop.f32.mrb[41].mxu0  ;;  %v1046_v8 = vpop.f32.mrb[44].mxu1 }
 0x13e   : > { %v822_v9 = vpop.f32.mrb[42].mxu0  ;;  %v7271_v11 = vpop.f32.mrb[45].mxu1 }
 0x13f   : > { %v8566_v12 = vadd.f32 %v1033_v52, %v822_v9  ;;  %v7194_v14 = vpop.f32.mrb[43].mxu0  ;;  %v1049_v15 = vpop.f32.mrb[46].mxu1 }
 0x140   : > { %v7272_v17 = vpop.f32.mrb[47].mxu1 }
 0x144   : > { %v827_v18 = vpop.f32.mrb[44].mxu0 }
 0x145   : > { %v8568_v19 = vadd.f32 %v1038_v59, %v827_v18  ;;  %v7197_v20 = vpop.f32.mrb[45].mxu0  ;;  %v1054_v21 = vpop.f32.mrb[48].mxu1 }
 0x146   : > { %v830_v23 = vpop.f32.mrb[46].mxu0  ;;  %v7275_v25 = vpop.f32.mrb[49].mxu1 }
 0x147   : > { %v8570_v26 = vadd.f32 %v1041_v2, %v830_v23  ;;  %v7198_v27 = vpop.f32.mrb[47].mxu0  ;;  %v1057_v29 = vpop.f32.mrb[50].mxu1 }
 0x148   : > { %v7276_v31 = vpop.f32.mrb[51].mxu1 }
 0x14c   : > { %v835_v33 = vpop.f32.mrb[48].mxu0 }
 0x14d   : > { %v8572_v35 = vadd.f32 %v1046_v8, %v835_v33  ;;  %v7201_v36 = vpop.f32.mrb[49].mxu0  ;;  %v1062_v37 = vpop.f32.mrb[52].mxu1 }
 0x14e   : > { %v838_v39 = vpop.f32.mrb[50].mxu0  ;;  %v7279_v40 = vpop.f32.mrb[53].mxu1 }
 0x14f   : > { %v8574_v41 = vadd.f32 %v1049_v15, %v838_v39  ;;  %v7202_v42 = vpop.f32.mrb[51].mxu0  ;;  %v1065_v44 = vpop.f32.mrb[54].mxu1 }
 0x150   : > { %v7280_v46 = vpop.f32.mrb[55].mxu1 }
 0x154   : > { %v843_v47 = vpop.f32.mrb[52].mxu0 }
 0x155   : > { %v8576_v48 = vadd.f32 %v1054_v21, %v843_v47  ;;  %v7205_v51 = vpop.f32.mrb[53].mxu0  ;;  %v1070_v52 = vpop.f32.mrb[56].mxu1 }
 0x156   : > { %v846_v53 = vpop.f32.mrb[54].mxu0  ;;  %v7283_v55 = vpop.f32.mrb[57].mxu1 }
 0x157   : > { %v8578_v58 = vadd.f32 %v1057_v29, %v846_v53  ;;  %v7206_v59 = vpop.f32.mrb[55].mxu0  ;;  %v1073_v60 = vpop.f32.mrb[58].mxu1 }
 0x158   : > { %v7284_v61 = vpop.f32.mrb[59].mxu1 }
 0x15c   : > { %v851_v63 = vpop.f32.mrb[56].mxu0 }
 0x15d   : > { %v8580_v2 = vadd.f32 %v1062_v37, %v851_v63  ;;  %v7209_v3 = vpop.f32.mrb[57].mxu0  ;;  %v1078_v4 = vpop.f32.mrb[60].mxu1 }
 0x15e   : > { %v854_v7 = vpop.f32.mrb[58].mxu0  ;;  %v7287_v8 = vpop.f32.mrb[61].mxu1 }
 0x15f   : > { %v8582_v9 = vadd.f32 %v1065_v44, %v854_v7  ;;  %v7210_v11 = vpop.f32.mrb[59].mxu0  ;;  %v1081_v14 = vpop.f32.mrb[62].mxu1 }
 0x160   : > { %v7288_v15 = vpop.f32.mrb[63].mxu1 }
 0x164   : > { %v859_v17 = vpop.f32.mrb[60].mxu0 }
 0x165   : > { %v8584_v18 = vadd.f32 %v1070_v52, %v859_v17  ;;  %v7213_v20 = vpop.f32.mrb[61].mxu0  ;;  %v1859_v21 = vpop.f32.mrb[64].mxu1 }
 0x166   : > { %v862_v23 = vpop.f32.mrb[62].mxu0  ;;  %v7363_v25 = vpop.f32.mrb[65].mxu1 }
 0x167   : > { %v8586_v27 = vadd.f32 %v1073_v60, %v862_v23  ;;  %v7214_v29 = vpop.f32.mrb[63].mxu0  ;;  %v1862_v31 = vpop.f32.mrb[66].mxu1 }
 0x168   : > { %v7364_v33 = vpop.f32.mrb[67].mxu1 }
 0x16c   : > { %v867_v36 = vpop.f32.mrb[64].mxu0 }
 0x16d   : > { %v8588_v37 = vadd.f32 %v1078_v4, %v867_v36  ;;  %v7217_v39 = vpop.f32.mrb[65].mxu0  ;;  %v1867_v40 = vpop.f32.mrb[68].mxu1 }
 0x16e   : > { %v870_v42 = vpop.f32.mrb[66].mxu0  ;;  %v7367_v44 = vpop.f32.mrb[69].mxu1 }
 0x16f   : > { %v8590_v46 = vadd.f32 %v1081_v14, %v870_v42  ;;  %v7218_v47 = vpop.f32.mrb[67].mxu0  ;;  %v1870_v51 = vpop.f32.mrb[70].mxu1  ;;  %v8597_v14 = vld [vmem:[%s9808_s6] ss:$0 sm:$0xff] }
 0x170   : > { %v7368_v52 = vpop.f32.mrb[71].mxu1 }
 0x174   : > { %v950_v53 = vpop.f32.mrb[68].mxu0 }
 0x175   : > { %v951_v55 = vadd.f32 %v950_v53, %v8466_v28  ;;  %v7223_v59 = vpop.f32.mrb[69].mxu0  ;;  %v7891_v53 = vld [vmem:[%s9810_s8 + $0x4] ss:$12 sps:$4 sm:$0xff]  }
 0x176   : > { %v953_v60 = vpop.f32.mrb[70].mxu0  ;;  %v1875_v61 = vpop.f32.mrb[72].mxu1  ;;  %2317 = vmatprep.mubr.bf16.mxu0 %v7891_v53 }
 0x177   : > { %v954_v63 = vadd.f32 %v953_v60, %v8470_v32  ;;  %v7224_v3 = vpop.f32.mrb[71].mxu0  ;;  %v7371_v4 = vpop.f32.mrb[73].mxu1 }
 0x178   : > { %v1878_v7 = vpop.f32.mrb[74].mxu1 }
 0x179   : > { %v7372_v8 = vpop.f32.mrb[75].mxu1 }
 0x17c   : > { %v1435_v11 = vpop.f32.mrb[72].mxu0 }
 0x17d   : > { %v1570_v15 = vadd.f32 %v1435_v11, %v951_v55  ;;  %v7293_v17 = vpop.f32.mrb[73].mxu0 }
 0x17e   : > { %v1438_v20 = vpop.f32.mrb[74].mxu0  ;;  %v1883_v23 = vpop.f32.mrb[76].mxu1 }
 0x17f   : > { %v1994_v28 = vadd.f32 %v1859_v21, %v1570_v15  ;;  %v1571_v25 = vadd.f32 %v1438_v20, %v954_v63  ;;  %v7294_v29 = vpop.f32.mrb[75].mxu0  ;;  %v7375_v33 = vpop.f32.mrb[77].mxu1 }
 0x180   : > { %v8599_v36 = vpop.f32.mrb[78].mxu1 }
 0x181   : > { %v2033_v32 = vadd.f32 %v8597_v14, %v1994_v28  ;;  %v1995_v39 = vadd.f32 %v1862_v31, %v1571_v25  ;;  %v7376_v42 = vpop.f32.mrb[79].mxu1 }
 0x183   : > { %v2067_v44 = vmul.f32 0.2, %v2033_v32  ;;  %v2034_v47 = vadd.f32 %v8597_v14, %v1995_v39 }
 0x184   : > { %v1443_v52 = vpop.f32.mrb[76].mxu0 }
 0x185   : > { %v2068_v55 = vmul.f32 0.2, %v2034_v47  ;;  %v1572_v21 = vadd.f32 %v1443_v52, %v8482_v49  ;;  %v7297_v59 = vpop.f32.mrb[77].mxu0  ;;  %v2101_v3 = vmax.f32 %v2033_v32, %v2067_v44 }
 0x186   : > { %v1446_v60 = vpop.f32.mrb[78].mxu0  ;;  %v8607_v63 = vpop.f32.mrb[80].mxu1  ;;  %v7895_v59 = vld [vmem:[%s9810_s8 + $0x8] ss:$12 sps:$4 sm:$0xff]  }
 0x187   : > { %v2102_v4 = vmax.f32 %v2034_v47, %v2068_v55  ;;  %v1996_v31 = vadd.f32 %v1867_v40, %v1572_v21  ;;  %v1573_v8 = vadd.f32 %v1446_v60, %v8485_v57  ;;  %v7298_v11 = vpop.f32.mrb[79].mxu0  ;;  %v7379_v15 = vpop.f32.mrb[81].mxu1  ;;  %7431 = vmatprep.mubr.msk.bf16.mxu1 %vm2259_vm5, %v7895_v59 }
 0x188   : > { %v1894_v17 = vpop.f32.mrb[82].mxu1 }
 0x189   : > { %v2035_v20 = vadd.f32 %v8597_v14, %v1996_v31  ;;  %v1997_v28 = vadd.f32 %v1870_v51, %v1573_v8  ;;  %v7380_v25 = vpop.f32.mrb[83].mxu1  ;;  %v8611_v29 = vpack.c.bf16 %v2102_v4, %v2101_v3 }
 0x18b   : > { %v2069_v49 = vmul.f32 0.2, %v2035_v20  ;;  %v2036_v33 = vadd.f32 %v8597_v14, %v1997_v28 }
 0x18c   : > { %v1451_v39 = vpop.f32.mrb[80].mxu0 }
 0x18d   : > { %v2070_v42 = vmul.f32 0.2, %v2036_v33  ;;  %v1574_v32 = vadd.f32 %v1451_v39, %v8496_v5  ;;  %v7301_v44 = vpop.f32.mrb[81].mxu0  ;;  %v2103_v57 = vmax.f32 %v2035_v20, %v2069_v49 }
 0x18e   : > { %v1454_v40 = vpop.f32.mrb[82].mxu0  ;;  %v8615_v47 = vpop.f32.mrb[84].mxu1 }
 0x18f   : > { %v2104_v52 = vmax.f32 %v2036_v33, %v2070_v42  ;;  %v1998_v53 = vadd.f32 %v1875_v61, %v1574_v32  ;;  %v1575_v55 = vadd.f32 %v1454_v40, %v8499_v13  ;;  %v7302_v51 = vpop.f32.mrb[83].mxu0  ;;  %v7383_v21 = vpop.f32.mrb[85].mxu1 }
 0x190   : > { %v1902_v60 = vpop.f32.mrb[86].mxu1 }
 0x191   : > { %v2037_v3 = vadd.f32 %v8597_v14, %v1998_v53  ;;  %v1999_v5 = vadd.f32 %v1878_v7, %v1575_v55  ;;  %v7384_v4 = vpop.f32.mrb[87].mxu1  ;;  %v8622_v31 = vpack.c.bf16 %v2104_v52, %v2103_v57 }
 0x193   : > { %v2071_v8 = vmul.f32 0.2, %v2037_v3  ;;  %v2038_v61 = vadd.f32 %v8597_v14, %v1999_v5 }
 0x194   : > { %v1459_v13 = vpop.f32.mrb[84].mxu0 }
 0x195   : > { %v2072_v11 = vmul.f32 0.2, %v2038_v61  ;;  %v1576_v15 = vadd.f32 %v1459_v13, %v8510_v24  ;;  %v7305_v20 = vpop.f32.mrb[85].mxu0  ;;  %v2105_v49 = vmax.f32 %v2037_v3, %v2071_v8 }
 0x196   : > { %v1462_v28 = vpop.f32.mrb[86].mxu0  ;;  %v1907_v25 = vpop.f32.mrb[88].mxu1 }
 0x197   : > { %v2106_v33 = vmax.f32 %v2038_v61, %v2072_v11  ;;  %v2000_v39 = vadd.f32 %v1883_v23, %v1576_v15  ;;  %v1577_v7 = vadd.f32 %v1462_v28, %v8513_v34  ;;  %v7306_v42 = vpop.f32.mrb[87].mxu0  ;;  %v7387_v32 = vpop.f32.mrb[89].mxu1 }
 0x198   : > { %v1910_v44 = vpop.f32.mrb[90].mxu1 }
 0x199   : > { %v2039_v40 = vadd.f32 %v8597_v14, %v2000_v39  ;;  %v2001_v57 = vadd.f32 %v8599_v36, %v1577_v7  ;;  %v7388_v52 = vpop.f32.mrb[91].mxu1  ;;  %v8630_v53 = vpack.c.bf16 %v2106_v33, %v2105_v49 }
 0x19b   : > { %v2073_v55 = vmul.f32 0.2, %v2039_v40  ;;  %v2040_v24 = vadd.f32 %v8597_v14, %v2001_v57 }
 0x19c   : > { %v1467_v51 = vpop.f32.mrb[88].mxu0 }
 0x19d   : > { %v2074_v21 = vmul.f32 0.2, %v2040_v24  ;;  %v1578_v59 = vadd.f32 %v1467_v51, %v8524_v45  ;;  %v7309_v23 = vpop.f32.mrb[89].mxu0  ;;  %v2107_v5 = vmax.f32 %v2039_v40, %v2073_v55 }
 0x19e   : > { %v1470_v3 = vpop.f32.mrb[90].mxu0  ;;  %v1915_v34 = vpop.f32.mrb[92].mxu1 }
 0x19f   : > { %v2108_v4 = vmax.f32 %v2040_v24, %v2074_v21  ;;  %v2002_v8 = vadd.f32 %v8607_v63, %v1578_v59  ;;  %v1579_v61 = vadd.f32 %v1470_v3, %v8527_v54  ;;  %v7310_v36 = vpop.f32.mrb[91].mxu0  ;;  %v7391_v13 = vpop.f32.mrb[93].mxu1 }
 0x1a0   : > { %v1918_v11 = vpop.f32.mrb[94].mxu1 }
 0x1a1   : > { %v2041_v15 = vadd.f32 %v8597_v14, %v2002_v8  ;;  %v2003_v20 = vadd.f32 %v1894_v17, %v1579_v61  ;;  %v7392_v28 = vpop.f32.mrb[95].mxu1  ;;  %v8637_v49 = vpack.c.bf16 %v2108_v4, %v2107_v5 }
 0x1a3   : > { %v2075_v33 = vmul.f32 0.2, %v2041_v15  ;;  %v2042_v45 = vadd.f32 %v8597_v14, %v2003_v20 }
 0x1a4   : > { %v1475_v39 = vpop.f32.mrb[92].mxu0 }
 0x1a5   : > { %v2076_v7 = vmul.f32 0.2, %v2042_v45  ;;  %v1580_v42 = vadd.f32 %v1475_v39, %v8535_v1  ;;  %v7313_v32 = vpop.f32.mrb[93].mxu0  ;;  %v2109_v54 = vmax.f32 %v2041_v15, %v2075_v33 }
 0x1a6   : > { %v1478_v63 = vpop.f32.mrb[94].mxu0  ;;  %v1923_v40 = vpop.f32.mrb[96].mxu1 }
 0x1a7   : > { %v2110_v57 = vmax.f32 %v2042_v45, %v2076_v7  ;;  %v2004_v52 = vadd.f32 %v8615_v47, %v1580_v42  ;;  %v1581_v55 = vadd.f32 %v1478_v63, %v8538_v10  ;;  %v7314_v17 = vpop.f32.mrb[95].mxu0  ;;  %v7395_v24 = vpop.f32.mrb[97].mxu1 }
 0x1a8   : > { %v1926_v51 = vpop.f32.mrb[98].mxu1 }
 0x1a9   : > { %v2043_v21 = vadd.f32 %v8597_v14, %v2004_v52  ;;  %v2005_v59 = vadd.f32 %v1902_v60, %v1581_v55  ;;  %v7396_v23 = vpop.f32.mrb[99].mxu1  ;;  %v8644_v3 = vpack.c.bf16 %v2110_v57, %v2109_v54 }
 0x1ab   : > { %v2077_v5 = vmul.f32 0.2, %v2043_v21  ;;  %v2044_v1 = vadd.f32 %v8597_v14, %v2005_v59 }
 0x1ac   : > { %v1483_v4 = vpop.f32.mrb[96].mxu0 }
 0x1ad   : > { %v2078_v8 = vmul.f32 0.2, %v2044_v1  ;;  %v1582_v61 = vadd.f32 %v1483_v4, %v8543_v16  ;;  %v7317_v36 = vpop.f32.mrb[97].mxu0  ;;  %v2111_v10 = vmax.f32 %v2043_v21, %v2077_v5 }
 0x1ae   : > { %v1486_v47 = vpop.f32.mrb[98].mxu0  ;;  %v1931_v13 = vpop.f32.mrb[100].mxu1 }
 0x1af   : > { %v2112_v15 = vmax.f32 %v2044_v1, %v2078_v8  ;;  %v2006_v20 = vadd.f32 %v1907_v25, %v1582_v61  ;;  %v1583_v28 = vadd.f32 %v1486_v47, %v8546_v22  ;;  %v7318_v33 = vpop.f32.mrb[99].mxu0  ;;  %v7399_v60 = vpop.f32.mrb[101].mxu1 }
 0x1b0   : > { %v1934_v45 = vpop.f32.mrb[102].mxu1 }
 0x1b1   : > { %v2045_v39 = vadd.f32 %v8597_v14, %v2006_v20  ;;  %v2007_v7 = vadd.f32 %v1910_v44, %v1583_v28  ;;  %v7400_v42 = vpop.f32.mrb[103].mxu1  ;;  %v8650_v32 = vpack.c.bf16 %v2112_v15, %v2111_v10 }
 0x1b3   : > { %v2079_v63 = vmul.f32 0.2, %v2045_v39  ;;  %v2046_v16 = vadd.f32 %v8597_v14, %v2007_v7 }
 0x1b4   : > { %v1491_v54 = vpop.f32.mrb[100].mxu0 }
 0x1b5   : > { %v2080_v57 = vmul.f32 0.2, %v2046_v16  ;;  %v1584_v52 = vadd.f32 %v1491_v54, %v8551_v30  ;;  %v7321_v55 = vpop.f32.mrb[101].mxu0  ;;  %v2113_v22 = vmax.f32 %v2045_v39, %v2079_v63 }
 0x1b6   : > { %v1494_v25 = vpop.f32.mrb[102].mxu0  ;;  %v1939_v17 = vpop.f32.mrb[104].mxu1 }
 0x1b7   : > { %v2114_v24 = vmax.f32 %v2046_v16, %v2080_v57  ;;  %v2008_v21 = vadd.f32 %v1915_v34, %v1584_v52  ;;  %v1585_v59 = vadd.f32 %v1494_v25, %v8553_v38  ;;  %v7322_v23 = vpop.f32.mrb[103].mxu0  ;;  %v7403_v44 = vpop.f32.mrb[105].mxu1 }
 0x1b8   : > { %v1942_v5 = vpop.f32.mrb[106].mxu1 }
 0x1b9   : > { %v2047_v1 = vadd.f32 %v8597_v14, %v2008_v21  ;;  %v2009_v4 = vadd.f32 %v1918_v11, %v1585_v59  ;;  %v7404_v8 = vpop.f32.mrb[107].mxu1  ;;  %v8656_v61 = vpack.c.bf16 %v2114_v24, %v2113_v22 }
 0x1bb   : > { %v2081_v36 = vmul.f32 0.2, %v2047_v1  ;;  %v2048_v30 = vadd.f32 %v8597_v14, %v2009_v4 }
 0x1bc   : > { %v1499_v47 = vpop.f32.mrb[104].mxu0 }
 0x1bd   : > { %v2082_v10 = vmul.f32 0.2, %v2048_v30  ;;  %v1586_v15 = vadd.f32 %v1499_v47, %v8556_v43  ;;  %v7325_v20 = vpop.f32.mrb[105].mxu0  ;;  %v2115_v38 = vmax.f32 %v2047_v1, %v2081_v36 }
 0x1be   : > { %v1502_v34 = vpop.f32.mrb[106].mxu0  ;;  %v8660_v28 = vpop.f32.mrb[108].mxu1 }
 0x1bf   : > { %v2116_v33 = vmax.f32 %v2048_v30, %v2082_v10  ;;  %v2010_v60 = vadd.f32 %v1923_v40, %v1586_v15  ;;  %v1587_v39 = vadd.f32 %v1502_v34, %v8558_v50  ;;  %v7326_v11 = vpop.f32.mrb[107].mxu0  ;;  %v7407_v7 = vpop.f32.mrb[109].mxu1 }
 0x1c0   : > { %v8663_v42 = vpop.f32.mrb[110].mxu1 }
 0x1c1   : > { %v2049_v63 = vadd.f32 %v8597_v14, %v2010_v60  ;;  %v2011_v16 = vadd.f32 %v1926_v51, %v1587_v39  ;;  %v7408_v54 = vpop.f32.mrb[111].mxu1  ;;  %v8666_v57 = vpack.c.bf16 %v2116_v33, %v2115_v38 }
 0x1c3   : > { %v2083_v43 = vmul.f32 0.2, %v2049_v63  ;;  %v2050_v52 = vadd.f32 %v8597_v14, %v2011_v16 }
 0x1c4   : > { %v1507_v55 = vpop.f32.mrb[108].mxu0 }
 0x1c5   : > { %v2084_v25 = vmul.f32 0.2, %v2050_v52  ;;  %v1588_v22 = vadd.f32 %v1507_v55, %v8560_v56  ;;  %v7329_v40 = vpop.f32.mrb[109].mxu0  ;;  %v2117_v21 = vmax.f32 %v2049_v63, %v2083_v43 }
 0x1c6   : > { %v1510_v24 = vpop.f32.mrb[110].mxu0  ;;  %v8670_v50 = vpop.f32.mrb[112].mxu1 }
 0x1c7   : > { %v2118_v59 = vmax.f32 %v2050_v52, %v2084_v25  ;;  %v2012_v23 = vadd.f32 %v1931_v13, %v1588_v22  ;;  %v1589_v44 = vadd.f32 %v1510_v24, %v8562_v62  ;;  %v7330_v51 = vpop.f32.mrb[111].mxu0  ;;  %v7411_v1 = vpop.f32.mrb[113].mxu1 }
 0x1c8   : > { %v8673_v4 = vpop.f32.mrb[114].mxu1 }
 0x1c9   : > { %v2051_v8 = vadd.f32 %v8597_v14, %v2012_v23  ;;  %v2013_v36 = vadd.f32 %v1934_v45, %v1589_v44  ;;  %v8676_v30 = vpack.c.bf16 %v2118_v59, %v2117_v21  ;;  %v7412_v47 = vpop.f32.mrb[115].mxu1 }
 0x1cb   : > { %v2085_v56 = vmul.f32 0.2, %v2051_v8  ;;  %v2052_v10 = vadd.f32 %v8597_v14, %v2013_v36  ;;  %6763 = vmatprep.subr.bf16.mxu0 %v8676_v30 }
 0x1cc   : > { %v1515_v15 = vpop.f32.mrb[112].mxu0  ;;  %6764 = vmatpush3.bf16.msra.mxu0 %v8611_v29 }
 0x1cd   : > { %v2086_v13 = vmul.f32 0.2, %v2052_v10  ;;  %v1590_v62 = vadd.f32 %v1515_v15, %v8564_v6  ;;  %v7333_v20 = vpop.f32.mrb[113].mxu0  ;;  %v2119_v33 = vmax.f32 %v2051_v8, %v2085_v56 }
 0x1ce   : > { %v1518_v34 = vpop.f32.mrb[114].mxu0  ;;  %v8682_v38 = vpop.f32.mrb[116].mxu1 }
 0x1cf   : > { %v2120_v45 = vmax.f32 %v2052_v10, %v2086_v13  ;;  %v2014_v60 = vadd.f32 %v1939_v17, %v1590_v62  ;;  %v1591_v39 = vadd.f32 %v1518_v34, %v8566_v12  ;;  %v7334_v11 = vpop.f32.mrb[115].mxu0  ;;  %v7415_v7 = vpop.f32.mrb[117].mxu1 }
 0x1d0   : > { %v8685_v63 = vpop.f32.mrb[118].mxu1 }
 0x1d1   : > { %v2053_v16 = vadd.f32 %v8597_v14, %v2014_v60  ;;  %v2015_v54 = vadd.f32 %v1942_v5, %v1591_v39  ;;  %v8688_v43 = vpack.c.bf16 %v2120_v45, %v2119_v33  ;;  %v7416_v52 = vpop.f32.mrb[119].mxu1 }
 0x1d3   : > { %v2087_v6 = vmul.f32 0.2, %v2053_v16  ;;  %v2054_v55 = vadd.f32 %v8597_v14, %v2015_v54  ;;  %6765 = vmatprep.subr.bf16.mxu0 %v8688_v43 }
 0x1d4   : > { %v1523_v25 = vpop.f32.mrb[116].mxu0  ;;  %6766 = vmatpush3.bf16.msra.mxu0 %v8622_v31 }
 0x1d5   : > { %v2088_v17 = vmul.f32 0.2, %v2054_v55  ;;  %v1592_v12 = vadd.f32 %v1523_v25, %v8568_v19  ;;  %v7337_v22 = vpop.f32.mrb[117].mxu0  ;;  %v2121_v21 = vmax.f32 %v2053_v16, %v2087_v6 }
 0x1d6   : > { %v1526_v40 = vpop.f32.mrb[118].mxu0  ;;  %v8694_v24 = vpop.f32.mrb[120].mxu1 }
 0x1d7   : > { %v2122_v5 = vmax.f32 %v2054_v55, %v2088_v17  ;;  %v2016_v59 = vadd.f32 %v8660_v28, %v1592_v12  ;;  %v1593_v23 = vadd.f32 %v1526_v40, %v8570_v26  ;;  %v7338_v44 = vpop.f32.mrb[119].mxu0  ;;  %v7419_v51 = vpop.f32.mrb[121].mxu1 }
 0x1d8   : > { %v1974_v1 = vpop.f32.mrb[122].mxu1 }
 0x1d9   : > { %v2055_v8 = vadd.f32 %v8597_v14, %v2016_v59  ;;  %v2017_v36 = vadd.f32 %v8663_v42, %v1593_v23  ;;  %v8700_v47 = vpack.c.bf16 %v2122_v5, %v2121_v21  ;;  %v7420_v19 = vpop.f32.mrb[123].mxu1 }
 0x1db   : > { %v2089_v56 = vmul.f32 0.2, %v2055_v8  ;;  %v2056_v10 = vadd.f32 %v8597_v14, %v2017_v36  ;;  %6767 = vmatprep.subr.bf16.mxu0 %v8700_v47 }
 0x1dc   : > { %v1531_v15 = vpop.f32.mrb[120].mxu0  ;;  %6768 = vmatpush3.bf16.msra.mxu0 %v8630_v53 }
 0x1dd   : > { %v2090_v28 = vmul.f32 0.2, %v2056_v10  ;;  %v1594_v26 = vadd.f32 %v1531_v15, %v8572_v35  ;;  %v7341_v13 = vpop.f32.mrb[121].mxu0  ;;  %v2123_v34 = vmax.f32 %v2055_v8, %v2089_v56 }
 0x1de   : > { %v1534_v62 = vpop.f32.mrb[122].mxu0  ;;  %v1979_v20 = vpop.f32.mrb[124].mxu1 }
 0x1df   : > { %v2124_v33 = vmax.f32 %v2056_v10, %v2090_v28  ;;  %v2018_v42 = vadd.f32 %v8670_v50, %v1594_v26  ;;  %v1595_v45 = vadd.f32 %v1534_v62, %v8574_v41  ;;  %v7342_v60 = vpop.f32.mrb[123].mxu0  ;;  %v7423_v39 = vpop.f32.mrb[125].mxu1 }
 0x1e0   : > { %v1982_v11 = vpop.f32.mrb[126].mxu1 }
 0x1e1   : > { %v2057_v7 = vadd.f32 %v8597_v14, %v2018_v42  ;;  %v2019_v16 = vadd.f32 %v8673_v4, %v1595_v45  ;;  %v8710_v54 = vpack.c.bf16 %v2124_v33, %v2123_v34  ;;  %v7424_v52 = vpop.f32.mrb[127].mxu1 }
 0x1e3   : > { %v2091_v35 = vmul.f32 0.2, %v2057_v7  ;;  %v2058_v6 = vadd.f32 %v8597_v14, %v2019_v16  ;;  %6769 = vmatprep.subr.bf16.mxu0 %v8710_v54 }
 0x1e4   : > { %v1539_v55 = vpop.f32.mrb[124].mxu0  ;;  %6770 = vmatpush3.bf16.msra.mxu0 %v8637_v49 }
 0x1e5   : > { %v2092_v50 = vmul.f32 0.2, %v2058_v6  ;;  %v1596_v41 = vadd.f32 %v1539_v55, %v8576_v48  ;;  %v7345_v25 = vpop.f32.mrb[125].mxu0  ;;  %v2125_v22 = vmax.f32 %v2057_v7, %v2091_v35 }
 0x1e6   : > { %v1542_v17 = vpop.f32.mrb[126].mxu0  ;;  %v1987_v12 = vpop.f32.mrb[128].mxu1 }
 0x1e7   : > { %v2126_v40 = vmax.f32 %v2058_v6, %v2092_v50  ;;  %v2020_v4 = vadd.f32 %v8682_v38, %v1596_v41  ;;  %v1597_v21 = vadd.f32 %v1542_v17, %v8578_v58  ;;  %v7346_v5 = vpop.f32.mrb[127].mxu0  ;;  %v7427_v59 = vpop.f32.mrb[129].mxu1 }
 0x1e8   : > { %v1990_v23 = vpop.f32.mrb[130].mxu1 }
 0x1e9   : > { %v2059_v44 = vadd.f32 %v8597_v14, %v2020_v4  ;;  %v2021_v51 = vadd.f32 %v8685_v63, %v1597_v21  ;;  %v8720_v8 = vpack.c.bf16 %v2126_v40, %v2125_v22  ;;  %v7428_v36 = vpop.f32.mrb[131].mxu1 }
 0x1eb   : > { %v2093_v48 = vmul.f32 0.2, %v2059_v44  ;;  %v2060_v19 = vadd.f32 %v8597_v14, %v2021_v51  ;;  %6771 = vmatprep.subr.bf16.mxu0 %v8720_v8 }
 0x1ec   : > { %v1547_v56 = vpop.f32.mrb[128].mxu0  ;;  %6772 = vmatpush3.bf16.msra.mxu0 %v8644_v3 }
 0x1ed   : > { %v2094_v38 = vmul.f32 0.2, %v2060_v19  ;;  %v1598_v58 = vadd.f32 %v1547_v56, %v8580_v2  ;;  %v7349_v10 = vpop.f32.mrb[129].mxu0  ;;  %v2127_v28 = vmax.f32 %v2059_v44, %v2093_v48 }
 0x1ee   : > { %v1550_v15 = vpop.f32.mrb[130].mxu0 }
 0x1ef   : > { %v2128_v26 = vmax.f32 %v2060_v19, %v2094_v38  ;;  %v2022_v63 = vadd.f32 %v8694_v24, %v1598_v58  ;;  %v1599_v13 = vadd.f32 %v1550_v15, %v8582_v9  ;;  %v7350_v62 = vpop.f32.mrb[131].mxu0 }
 0x1f0   : > { %v7899_v62 = vld [vmem:[%s9810_s8 + $0x30] ss:$12 sps:$4 sm:$0xff]  }
 0x1f1   : > { %v2061_v34 = vadd.f32 %v8597_v14, %v2022_v63  ;;  %v2023_v33 = vadd.f32 %v1974_v1, %v1599_v13  ;;  %v8729_v42 = vpack.c.bf16 %v2128_v26, %v2127_v28  ;;  %v7894_v28 = vld [vmem:[%s9810_s8 + $0x18] ss:$12 sps:$4 sm:$0xff]   ;;  %v7897_v26 = vld [vmem:[%s9810_s8 + $0x34] ss:$12 sps:$4 sm:$0xff]  }
 0x1f2   : > { %v7896_v63 = vld [vmem:[%s9810_s8 + $0x20] ss:$12 sps:$4 sm:$0xff]   ;;  %v7903_v13 = vld [vmem:[%s9810_s8 + $0x38] ss:$12 sps:$4 sm:$0xff]  }
 0x1f3   : > { %v2095_v45 = vmul.f32 0.2, %v2061_v34  ;;  %v2062_v60 = vadd.f32 %v8597_v14, %v2023_v33  ;;  %6773 = vmatprep.subr.bf16.mxu0 %v8729_v42  ;;  %v7904_v33 = vld [vmem:[%s9810_s8 + $0x50] ss:$12 sps:$4 sm:$0xff]  }
 0x1f4   : > { %v1555_v2 = vpop.f32.mrb[132].mxu0  ;;  %6774 = vmatpush3.bf16.msra.mxu0 %v8650_v32 }
 0x1f5   : > { %v2096_v39 = vmul.f32 0.2, %v2062_v60  ;;  %v1600_v7 = vadd.f32 %v1555_v2, %v8584_v18  ;;  %v7353_v24 = vpop.f32.mrb[133].mxu0  ;;  %v2129_v9 = vmax.f32 %v2061_v34, %v2095_v45  ;;  %v7900_v34 = vld [vmem:[%s9810_s8 + $0x4c] ss:$12 sps:$4 sm:$0xff]  }
 0x1f6   : > { %v1558_v16 = vpop.f32.mrb[134].mxu0  ;;  %v7908_v45 = vld [vmem:[%s9810_s8 + $0x68] ss:$12 sps:$4 sm:$0xff]   ;;  %v7905_v2 = vld [vmem:[%s9810_s8 + $0x64] ss:$12 sps:$4 sm:$0xff]  }
 0x1f7   : > { %v2130_v52 = vmax.f32 %v2062_v60, %v2096_v39  ;;  %v2024_v35 = vadd.f32 %v1979_v20, %v1600_v7  ;;  %v1601_v1 = vadd.f32 %v1558_v16, %v8586_v27  ;;  %v7354_v6 = vpop.f32.mrb[135].mxu0  ;;  %v7902_v60 = vld [vmem:[%s9810_s8 + $0x48] ss:$12 sps:$4 sm:$0xff]   ;;  %v7909_v39 = vld [vmem:[%s9810_s8 + $0x80] ss:$0 sps:$4 sm:$0x11]  }
 0x1f8   : > { %v7914_v7 = vld [vmem:[%s9810_s8 + $0x88] ss:$12 sps:$4 sm:$0xff]   ;;  %v2172_v24 = vld [vmem:[%s9810_s8 + $0x78] sm:$0x11]  ;;  %v7907_v16 = vld [vmem:[%s9810_s8 + $0x60] ss:$12 sps:$4 sm:$0xff]  }
 0x1f9   : > { %v2063_v55 = vadd.f32 %v8597_v14, %v2024_v35  ;;  %v2025_v50 = vadd.f32 %v1982_v11, %v1601_v1  ;;  %v8737_v41 = vpack.c.bf16 %v2130_v52, %v2129_v9  ;;  %v6272_v9 = vcombine.high %v2172_v24, %v2172_v24  ;;  %v7915_v35 = vld [vmem:[%s9810_s8 + $0x8c] ss:$12 sps:$4 sm:$0xff]   ;;  %v7912_v1 = vld [vmem:[%s9810_s8 + $0x84] ss:$12 sps:$4 sm:$0xff]  }
 0x1fa   : > { %v6271_v52 = vcombine.low %v2172_v24, %v2172_v24  ;;  %v7917_v6 = vld [vmem:[%s9810_s8 + $0xa0] ss:$12 sps:$4 sm:$0xff]  }
 0x1fb   : > { %v2097_v25 = vmul.f32 0.2, %v2063_v55  ;;  %v2064_v17 = vadd.f32 %v8597_v14, %v2025_v50  ;;  %6775 = vmatprep.subr.bf16.mxu0 %v8737_v41  ;;  %v7923_v50 = vld [vmem:[%s9810_s8 + $0xbc] ss:$12 sps:$4 sm:$0xff]  }
 0x1fc   : > { %v1563_v22 = vpop.f32.mrb[136].mxu0  ;;  %6776 = vmatpush3.bf16.msra.mxu0 %v8656_v61 }
 0x1fd   : > { %v2098_v18 = vmul.f32 0.2, %v2064_v17  ;;  %v1602_v40 = vadd.f32 %v1563_v22, %v8588_v37  ;;  %v7357_v20 = vpop.f32.mrb[137].mxu0  ;;  %v2131_v27 = vmax.f32 %v2063_v55, %v2097_v25  ;;  %v7889_v37 = vld [vmem:[%s9810_s8] ss:$12 sps:$4 sm:$0xff]  }
 0x1fe   : > { %v1566_v4 = vpop.f32.mrb[138].mxu0  ;;  %v7916_v55 = vld [vmem:[%s9810_s8 + $0xa4] ss:$12 sps:$4 sm:$0xff]   ;;  %v7919_v25 = vld [vmem:[%s9810_s8 + $0x9c] ss:$12 sps:$4 sm:$0xff]  }
 0x1ff   : > { %v2132_v21 = vmax.f32 %v2064_v17, %v2098_v18  ;;  %v2026_v5 = vadd.f32 %v1987_v12, %v1602_v40  ;;  %v1603_v11 = vadd.f32 %v1566_v4, %v8590_v46  ;;  %v7358_v59 = vpop.f32.mrb[139].mxu0  ;;  %v7892_v46 = vld [vmem:[%s9810_s8 + $0x1c] ss:$12 sps:$4 sm:$0xff]   ;;  %v7920_v17 = vld [vmem:[%s9810_s8 + $0xb8] ss:$12 sps:$4 sm:$0xff]  }
 0x200   : > { %v7928_v22 = vld [vmem:[%s9810_s8 + $0xec] ss:$12 sps:$4 sm:$0xff]   ;;  %v7922_v18 = vld [vmem:[%s9810_s8 + $0xb4] ss:$12 sps:$4 sm:$0xff]   ;;  %v7925_v40 = vld [vmem:[%s9810_s8 + $0xd0] ss:$12 sps:$4 sm:$0xff]  }
 0x201   : > { %v2065_v44 = vadd.f32 %v8597_v14, %v2026_v5  ;;  %v2027_v51 = vadd.f32 %v1990_v23, %v1603_v11  ;;  %v8745_v36 = vpack.c.bf16 %v2132_v21, %v2131_v27  ;;  %v8110_v23 = vmov 65535   ;;  %v7929_v20 = vld [vmem:[%s9810_s8 + $0x104] ss:$0 sps:$4 sm:$0x11]   ;;  %v7935_v4 = vld [vmem:[%s9810_s8 + $0x10c] ss:$12 sps:$4 sm:$0xff]  }
 0x202   : > { %v2280_v56 = vsel %vm1730_vm4, 4294967295, %v8110_v23  ;;  %v7927_v27 = vld [vmem:[%s9810_s8 + $0xcc] ss:$12 sps:$4 sm:$0xff]   ;;  %v7930_v21 = vld [vmem:[%s9810_s8 + $0xe8] ss:$12 sps:$4 sm:$0xff]  }
 0x203   : > { %v2099_v48 = vmul.f32 0.2, %v2065_v44  ;;  %v2066_v19 = vadd.f32 %v8597_v14, %v2027_v51  ;;  %6777 = vmatprep.subr.bf16.mxu0 %v8745_v36  ;;  %v2281_v58 = vsel %vm2279_vm6, %v2280_v56, 0  ;;  %v6300_v5 = vld [vmem:[%s9810_s8 + $0xfc] sm:$0x11]  ;;  %vm4626_vm6 = vcmask 519168  }
 0x204   : > { %6778 = vmatpush3.bf16.msra.mxu0 %v8666_v57  ;;  %v7932_v11 = vld [vmem:[%s9810_s8 + $0xe4] ss:$12 sps:$4 sm:$0xff]   ;;  %v6318_v59 = vcombine.high %v6300_v5, %v6300_v5  ;;  %v7949_v56 = vld [vmem:[%s9810_s8 + $0x140] ss:$12 sps:$4 sm:$0xff]  }
 0x205   : > { %v2100_v12 = vmul.f32 0.2, %v2066_v19  ;;  %v2133_v38 = vmax.f32 %v2065_v44, %v2099_v48  ;;  %v7933_v44 = vld [vmem:[%s9810_s8 + $0x108] ss:$12 sps:$4 sm:$0xff]   ;;  %v7938_v51 = vld [vmem:[%s9810_s8 + $0x124] ss:$12 sps:$4 sm:$0xff]   ;;  %v6317_v48 = vcombine.low %v6300_v5, %v6300_v5 }
 0x207   : > { %v2134_v14 = vmax.f32 %v2066_v19, %v2100_v12  ;;  %2318 = vmatmul.mubr.bf16.vlgmr.msra.gmra.mrb[140].mxu0 %v7889_v37  ;;  %v7941_v19 = vld [vmem:[%s9810_s8 + $0x110] ss:$12 sps:$4 sm:$0xff]   ;;  %v7940_v37 = vld [vmem:[%s9810_s8 + $0x120] ss:$12 sps:$4 sm:$0xff]   ;;  %v7942_v12 = vld [vmem:[%s9810_s8 + $0x128] ss:$12 sps:$4 sm:$0xff]  }
 0x208   : > { %2325 = vmatprep.mubr.bf16.mxu0 %v7892_v46  ;;  %v7943_v46 = vld [vmem:[%s9810_s8 + $0x13c] ss:$12 sps:$4 sm:$0xff]  }
 0x209   : > { %v2151_v10 = vpack.c.bf16 %v2134_v14, %v2133_v38  ;;  %v7945_v38 = vld [vmem:[%s9810_s8 + $0x138] ss:$12 sps:$4 sm:$0xff]   ;;  %v7946_v14 = vld [vmem:[%s9810_s8 + $0x154] ss:$12 sps:$4 sm:$0xff]  }
 0x20b   : > { %v8758_v15 = vand.u32 %v2281_v58, %v2151_v10  ;;  %v7950_v58 = vld [vmem:[%s9810_s8 + $0x158] ss:$12 sps:$4 sm:$0xff]  }
 0x20d   : > { %7429 = vmatprep.subr.bf16.mxu1 %v8758_v15  ;;  %7443 = vmatprep.subr.bf16.mxu0 %v8758_v15 }
 0x20e   : > { %7430 = vmatpush3.bf16.msra.mxu1 %v8758_v15  ;;  %7444 = vmatpush3.bf16.msra.mxu0 %v8758_v15 }
 0x20f   : > { %2326 = vmatmul.mubr.bf16.gmra.mrb[144].mxu0 %v7894_v28  ;;  %6822 = vmatprep.subr.bf16.mxu1 %v8676_v30  ;;  %v7977_v28 = vld [vmem:[%s9810_s8 + $0x1f4] ss:$12 sps:$4 sm:$0xff]  }
 0x210   : > { %6881 = vmatprep.subr.bf16.mxu0 %v8676_v30  ;;  %2333 = vmatprep.mubr.bf16.mxu0 %v7897_v26  ;;  %v7968_v26 = vld [vmem:[%s9810_s8 + $0x1bc] ss:$12 sps:$4 sm:$0xff]  }
 0x211   : > { %7432 = vmatmul.mubr.msk.bf16.vlgmr.msra.gmra.mrb[132].mxu1 %vm2259_vm5, %v7896_v63  ;;  %v7971_v63 = vld [vmem:[%s9810_s8 + $0x1d8] ss:$12 sps:$4 sm:$0xff]  }
 0x212   : > { %6823 = vmatpush3.bf16.msra.mxu1 %v8611_v29  ;;  %7435 = vmatprep.mubr.msk.bf16.mxu1 %vm2259_vm5, %v7903_v13  ;;  %v7978_v13 = vld [vmem:[%s9810_s8 + $0x20c] ss:$0 sps:$4 sm:$0x11]  }
 0x213   : > { %6824 = vmatprep.subr.bf16.mxu1 %v8688_v43 }
 0x216   : > { %6825 = vmatpush3.bf16.msra.mxu1 %v8622_v31 }
 0x217   : > { %2334 = vmatmul.mubr.bf16.gmra.mrb[148].mxu0 %v7899_v62  ;;  %6826 = vmatprep.subr.bf16.mxu1 %v8700_v47  ;;  %v7973_v62 = vld [vmem:[%s9810_s8 + $0x1d4] ss:$12 sps:$4 sm:$0xff]  }
 0x218   : > { %2341 = vmatprep.mubr.bf16.mxu0 %v7900_v34  ;;  %v7974_v34 = vld [vmem:[%s9810_s8 + $0x1f0] ss:$12 sps:$4 sm:$0xff]  }
 0x219   : > { %7436 = vmatmul.mubr.msk.bf16.gmra.mrb[136].mxu1 %vm2259_vm5, %v7904_v33  ;;  %v6392_v33 = vld [vmem:[%s9810_s8 + $0x204] sm:$0x11] }
 0x21a   : > { %6827 = vmatpush3.bf16.msra.mxu1 %v8630_v53  ;;  %7439 = vmatprep.mubr.msk.bf16.mxu1 %vm2259_vm5, %v7908_v45  ;;  %v7976_v45 = vld [vmem:[%s9810_s8 + $0x1ec] ss:$12 sps:$4 sm:$0xff]  }
 0x21b   : > { %6828 = vmatprep.subr.bf16.mxu1 %v8710_v54 }
 0x21e   : > { %6829 = vmatpush3.bf16.msra.mxu1 %v8637_v49 }
 0x21f   : > { %2342 = vmatmul.mubr.bf16.gmra.mrb[152].mxu0 %v7902_v60  ;;  %6830 = vmatprep.subr.bf16.mxu1 %v8720_v8  ;;  %v6410_v60 = vcombine.high %v6392_v33, %v6392_v33 }
 0x220   : > { %2349 = vmatprep.mubr.bf16.mxu0 %v7905_v2  ;;  %v6409_v2 = vcombine.low %v6392_v33, %v6392_v33 }
 0x221   : > { %7440 = vmatmul.mubr.msk.bf16.gmra.mrb[140].mxu1 %vm2259_vm5, %v7909_v39 }
 0x222   : > { %6831 = vmatpush3.bf16.msra.mxu1 %v8644_v3  ;;  %2609 = vmatprep.mubr.bf16.mxu1 %v7914_v7 }
 0x223   : > { %6832 = vmatprep.subr.bf16.mxu1 %v8729_v42 }
 0x226   : > { %6833 = vmatpush3.bf16.msra.mxu1 %v8650_v32 }
 0x227   : > { %2350 = vmatmul.mubr.bf16.gmra.mrb[156].mxu0 %v7907_v16  ;;  %6834 = vmatprep.subr.bf16.mxu1 %v8737_v41 }
 0x228   : > { %2357 = vmatprep.mubr.bf16.mxu0 %v6272_v9 }
 0x22a   : > { %6835 = vmatpush3.bf16.msra.mxu1 %v8656_v61 }
 0x22b   : > { %6836 = vmatprep.subr.bf16.mxu1 %v8745_v36 }
 0x22e   : > { %6837 = vmatpush3.bf16.msra.mxu1 %v8666_v57 }
 0x22f   : > { %2358 = vmatmul.mubr.bf16.gmra.mrb[160].mxu0 %v6271_v52  ;;  %7457 = vmatprep.subr.bf16.mxu1 %v8758_v15 }
 0x230   : > { %7445 = vmatprep.mubr.msk.bf16.mxu0 %vm2259_vm5, %v7915_v35 }
 0x231   : > { %2610 = vmatmul.mubr.bf16.vlgmr.msra.gmra.mrb[144].mxu1 %v7912_v1 }
 0x232   : > { %7458 = vmatpush3.bf16.msra.mxu1 %v8758_v15  ;;  %2617 = vmatprep.mubr.bf16.mxu1 %v7917_v6 }
 0x233   : > { %6940 = vmatprep.subr.bf16.mxu1 %v8676_v30  ;;  %v7924_v30 = vld [vmem:[%s9810_s8 + $0xd4] ss:$12 sps:$4 sm:$0xff]  }
 0x237   : > { %7446 = vmatmul.mubr.msk.bf16.vlgmr.msra.gmra.mrb[164].mxu0 %vm2259_vm5, %v7916_v55 }
 0x238   : > { %6882 = vmatpush3.bf16.msra.mxu0 %v8611_v29  ;;  %7449 = vmatprep.mubr.msk.bf16.mxu0 %vm2259_vm5, %v7923_v50 }
 0x239   : > { %6883 = vmatprep.subr.bf16.mxu0 %v8688_v43  ;;  %2618 = vmatmul.mubr.bf16.gmra.mrb[148].mxu1 %v7919_v25 }
 0x23a   : > { %2625 = vmatprep.mubr.bf16.mxu1 %v7920_v17 }
 0x23c   : > { %6884 = vmatpush3.bf16.msra.mxu0 %v8622_v31 }
 0x23d   : > { %6885 = vmatprep.subr.bf16.mxu0 %v8700_v47 }
 0x23f   : > { %7450 = vmatmul.mubr.msk.bf16.gmra.mrb[168].mxu0 %vm2259_vm5, %v7924_v30 }
 0x240   : > { %6886 = vmatpush3.bf16.msra.mxu0 %v8630_v53  ;;  %7453 = vmatprep.mubr.msk.bf16.mxu0 %vm2259_vm5, %v7928_v22 }
 0x241   : > { %6887 = vmatprep.subr.bf16.mxu0 %v8710_v54  ;;  %2626 = vmatmul.mubr.bf16.gmra.mrb[152].mxu1 %v7922_v18 }
 0x242   : > { %2633 = vmatprep.mubr.bf16.mxu1 %v7925_v40 }
 0x244   : > { %6888 = vmatpush3.bf16.msra.mxu0 %v8637_v49 }
 0x245   : > { %6889 = vmatprep.subr.bf16.mxu0 %v8720_v8 }
 0x247   : > { %7454 = vmatmul.mubr.msk.bf16.gmra.mrb[172].mxu0 %vm2259_vm5, %v7929_v20 }
 0x248   : > { %6890 = vmatpush3.bf16.msra.mxu0 %v8644_v3  ;;  %2901 = vmatprep.mubr.bf16.mxu0 %v7935_v4 }
 0x249   : > { %6891 = vmatprep.subr.bf16.mxu0 %v8729_v42  ;;  %2634 = vmatmul.mubr.bf16.gmra.mrb[156].mxu1 %v7927_v27 }
 0x24a   : > { %2641 = vmatprep.mubr.bf16.mxu1 %v7930_v21 }
 0x24c   : > { %6892 = vmatpush3.bf16.msra.mxu0 %v8650_v32 }
 0x24d   : > { %6893 = vmatprep.subr.bf16.mxu0 %v8737_v41 }
 0x250   : > { %6894 = vmatpush3.bf16.msra.mxu0 %v8656_v61 }
 0x251   : > { %6895 = vmatprep.subr.bf16.mxu0 %v8745_v36  ;;  %2642 = vmatmul.mubr.bf16.gmra.mrb[160].mxu1 %v7932_v11 }
 0x252   : > { %2649 = vmatprep.mubr.bf16.mxu1 %v6318_v59 }
 0x254   : > { %6896 = vmatpush3.bf16.msra.mxu0 %v8666_v57 }
 0x255   : > { %7471 = vmatprep.subr.bf16.mxu0 %v8758_v15 }
 0x257   : > { %2902 = vmatmul.mubr.bf16.vlgmr.msra.gmra.mrb[176].mxu0 %v7933_v44 }
 0x258   : > { %7472 = vmatpush3.bf16.msra.mxu0 %v8758_v15  ;;  %2909 = vmatprep.mubr.bf16.mxu0 %v7938_v51  ;;  %v7970_v15 = vld [vmem:[%s9810_s8 + $0x1dc] ss:$12 sps:$4 sm:$0xff]  }
 0x259   : > { %2650 = vmatmul.mubr.bf16.gmra.mrb[164].mxu1 %v6317_v48  ;;  %7485 = vmatprep.subr.bf16.mxu0 %v8108_v0 }
 0x25a   : > { %7459 = vmatprep.mubr.msk.bf16.mxu1 %vm2259_vm5, %v7941_v19 }
 0x25f   : > { %2910 = vmatmul.mubr.bf16.gmra.mrb[180].mxu0 %v7940_v37 }
 0x260   : > { %2917 = vmatprep.mubr.bf16.mxu0 %v7943_v46 }
 0x261   : > { %7460 = vmatmul.mubr.msk.bf16.vlgmr.msra.gmra.mrb[168].mxu1 %vm2259_vm5, %v7942_v12 }
 0x262   : > { %6941 = vmatpush3.bf16.msra.mxu1 %v8611_v29  ;;  %7463 = vmatprep.mubr.msk.bf16.mxu1 %vm2259_vm5, %v7949_v56  ;;  %v7954_v29 = vld [vmem:[%s9810_s8 + $0x170] ss:$12 sps:$4 sm:$0xff]  }
 0x263   : > { %6942 = vmatprep.subr.bf16.mxu1 %v8688_v43  ;;  %v7951_v43 = vld [vmem:[%s9810_s8 + $0x16c] ss:$12 sps:$4 sm:$0xff]  }
 0x266   : > { %6943 = vmatpush3.bf16.msra.mxu1 %v8622_v31  ;;  %v7948_v31 = vld [vmem:[%s9810_s8 + $0x150] ss:$12 sps:$4 sm:$0xff]  }
 0x267   : > { %2918 = vmatmul.mubr.bf16.gmra.mrb[184].mxu0 %v7945_v38  ;;  %6944 = vmatprep.subr.bf16.mxu1 %v8700_v47  ;;  %v7955_v47 = vld [vmem:[%s9810_s8 + $0x188] ss:$0 sps:$4 sm:$0x11]  }
 0x268   : > { %2925 = vmatprep.mubr.bf16.mxu0 %v7946_v14 }
 0x269   : > { %7464 = vmatmul.mubr.msk.bf16.gmra.mrb[172].mxu1 %vm2259_vm5, %v7950_v58 }
 0x26a   : > { %6945 = vmatpush3.bf16.msra.mxu1 %v8630_v53  ;;  %7467 = vmatprep.mubr.msk.bf16.mxu1 %vm2259_vm5, %v7954_v29  ;;  %v7960_v53 = vld [vmem:[%s9810_s8 + $0x190] ss:$12 sps:$4 sm:$0xff]  }
 0x26b   : > { %6946 = vmatprep.subr.bf16.mxu1 %v8710_v54  ;;  %v6346_v54 = vld [vmem:[%s9810_s8 + $0x180] sm:$0x11] }
 0x26c   : > { %v6364_v10 = vcombine.high %v6346_v54, %v6346_v54 }
 0x26e   : > { %6947 = vmatpush3.bf16.msra.mxu1 %v8637_v49  ;;  %v7953_v49 = vld [vmem:[%s9810_s8 + $0x168] ss:$12 sps:$4 sm:$0xff]  }
 0x26f   : > { %2926 = vmatmul.mubr.bf16.gmra.mrb[188].mxu0 %v7948_v31  ;;  %6948 = vmatprep.subr.bf16.mxu1 %v8720_v8  ;;  %v6363_v8 = vcombine.low %v6346_v54, %v6346_v54 }
 0x270   : > { %2933 = vmatprep.mubr.bf16.mxu0 %v7951_v43 }
 0x271   : > { %7468 = vmatmul.mubr.msk.bf16.gmra.mrb[176].mxu1 %vm2259_vm5, %v7955_v47 }
 0x272   : > { %6949 = vmatpush3.bf16.msra.mxu1 %v8644_v3  ;;  %3193 = vmatprep.mubr.bf16.mxu1 %v7960_v53  ;;  %v7961_v3 = vld [vmem:[%s9810_s8 + $0x194] ss:$12 sps:$4 sm:$0xff]  }
 0x273   : > { %6950 = vmatprep.subr.bf16.mxu1 %v8729_v42  ;;  %v7958_v42 = vld [vmem:[%s9810_s8 + $0x18c] ss:$12 sps:$4 sm:$0xff]  }
 0x276   : > { %6951 = vmatpush3.bf16.msra.mxu1 %v8650_v32  ;;  %v7963_v32 = vld [vmem:[%s9810_s8 + $0x1a8] ss:$12 sps:$4 sm:$0xff]  }
 0x277   : > { %2934 = vmatmul.mubr.bf16.gmra.mrb[192].mxu0 %v7953_v49  ;;  %6952 = vmatprep.subr.bf16.mxu1 %v8737_v41  ;;  %v7969_v41 = vld [vmem:[%s9810_s8 + $0x1c4] ss:$12 sps:$4 sm:$0xff]  }
 0x278   : > { %2941 = vmatprep.mubr.bf16.mxu0 %v6364_v10 }
 0x27a   : > { %6953 = vmatpush3.bf16.msra.mxu1 %v8656_v61  ;;  %v7962_v61 = vld [vmem:[%s9810_s8 + $0x1ac] ss:$12 sps:$4 sm:$0xff]  }
 0x27b   : > { %6954 = vmatprep.subr.bf16.mxu1 %v8745_v36  ;;  %v7966_v36 = vld [vmem:[%s9810_s8 + $0x1c0] ss:$12 sps:$4 sm:$0xff]  }
 0x27e   : > { %6955 = vmatpush3.bf16.msra.mxu1 %v8666_v57  ;;  %v7965_v57 = vld [vmem:[%s9810_s8 + $0x1a4] ss:$12 sps:$4 sm:$0xff]  }
 0x27f   : > { %2942 = vmatmul.mubr.bf16.gmra.mrb[196].mxu0 %v6363_v8  ;;  %7509 = vmatprep.subr.bf16.mxu1 %v8108_v0 }
 0x280   : > { %7473 = vmatprep.mubr.msk.bf16.mxu0 %vm2259_vm5, %v7961_v3 }
 0x281   : > { %3194 = vmatmul.mubr.bf16.vlgmr.msra.gmra.mrb[180].mxu1 %v7958_v42 }
 0x282   : > { %3201 = vmatprep.mubr.bf16.mxu1 %v7963_v32 }
 0x287   : > { %7474 = vmatmul.mubr.msk.bf16.vlgmr.msra.gmra.mrb[200].mxu0 %vm2259_vm5, %v7962_v61 }
 0x288   : > { %7477 = vmatprep.mubr.msk.bf16.mxu0 %vm2259_vm5, %v7969_v41 }
 0x289   : > { %3202 = vmatmul.mubr.bf16.gmra.mrb[184].mxu1 %v7965_v57 }
 0x28a   : > { %3209 = vmatprep.mubr.bf16.mxu1 %v7966_v36 }
 0x28f   : > { %7478 = vmatmul.mubr.msk.bf16.gmra.mrb[204].mxu0 %vm2259_vm5, %v7970_v15 }
 0x290   : > { %7481 = vmatprep.mubr.msk.bf16.mxu0 %vm2259_vm5, %v7977_v28 }
 0x291   : > { %3210 = vmatmul.mubr.bf16.gmra.mrb[188].mxu1 %v7968_v26 }
 0x292   : > { %3217 = vmatprep.mubr.bf16.mxu1 %v7971_v63 }
 0x297   : > { %7482 = vmatmul.mubr.msk.bf16.gmra.mrb[208].mxu0 %vm2259_vm5, %v7978_v13  ;;  %vm4607_vm5 = vcmask 392192  }
 0x298   : > { %7489 = vmatprep.mubr.msk.bf16.mxu0 %vm8109_vm1, %v8108_v0 }
 0x299   : > { %3218 = vmatmul.mubr.bf16.gmra.mrb[192].mxu1 %v7973_v62 }
 0x29a   : > { %3225 = vmatprep.mubr.bf16.mxu1 %v7974_v34 }
 0x2a1   : > { %3226 = vmatmul.mubr.bf16.gmra.mrb[196].mxu1 %v7976_v45 }
 0x2a2   : > { %3233 = vmatprep.mubr.bf16.mxu1 %v6410_v60 }
 0x2a9   : > { %3234 = vmatmul.mubr.bf16.gmra.mrb[200].mxu1 %v6409_v2 }
 0x2aa   : > { %7513 = vmatprep.mubr.msk.bf16.mxu1 %vm8109_vm1, %v8108_v0 }
 0x2da   : > { %v6779_v39 = vpop.f32.mrb[140].mxu0 }
 0x2db   : > { %v6780_v7 = vpop.f32.mrb[141].mxu0 }
 0x2dc   : > { %v6781_v24 = vadd.f32 %v6780_v7, %v6779_v39  ;;  %v6782_v16 = vpop.f32.mrb[142].mxu0 }
 0x2dd   : > { %v6783_v9 = vpop.f32.mrb[143].mxu0 }
 0x2de   : > { %v6784_v52 = vadd.f32 %v6783_v9, %v6782_v16 }
 0x2e2   : > { %v6785_v35 = vpop.f32.mrb[144].mxu0 }
 0x2e3   : > { %v6786_v1 = vpop.f32.mrb[145].mxu0 }
 0x2e4   : > { %v6787_v6 = vadd.f32 %v6786_v1, %v6785_v35  ;;  %v6788_v55 = vpop.f32.mrb[146].mxu0  ;;  %v7433_v50 = vpop.f32.mrb[132].mxu1 }
 0x2e5   : > { %v6789_v25 = vpop.f32.mrb[147].mxu0  ;;  %v2399_v17 = vpop.f32.mrb[133].mxu1 }
 0x2e6   : > { %v6790_v30 = vadd.f32 %v6789_v25, %v6788_v55  ;;  %v9037_v22 = vadd.f32 %v7433_v50, %v6787_v6  ;;  %v9039_v18 = vadd.f32 %v6781_v24, %v2399_v17  ;;  %v7434_v40 = vpop.f32.mrb[134].mxu1 }
 0x2e7   : > { %v2402_v20 = vpop.f32.mrb[135].mxu1 }
 0x2e8   : > { %v9041_v4 = vadd.f32 %v7434_v40, %v6790_v30  ;;  %v9043_v27 = vadd.f32 %v6784_v52, %v2402_v20 }
 0x2ea   : > { %v6791_v21 = vpop.f32.mrb[148].mxu0  ;;  %v2446_v5 = vpack.c.bf16 %v9041_v4, %v9037_v22  ;;  %v2445_v11 = vpack.c.bf16 %v9043_v27, %v9039_v18  ;;  %v7990_v22 = vld [vmem:[%s9804_s2 + $0x30] sm:$0xff]  }
 0x2eb   : > { %v6792_v59 = vpop.f32.mrb[149].mxu0 }
 0x2ec   : > { %v6793_v44 = vadd.f32 %v6792_v59, %v6791_v21  ;;  %v6794_v51 = vpop.f32.mrb[150].mxu0  ;;  %v7437_v48 = vpop.f32.mrb[136].mxu1 }
 0x2ed   : > { %v6795_v19 = vpop.f32.mrb[151].mxu0  ;;  %v2415_v37 = vpop.f32.mrb[137].mxu1 }
 0x2ee   : > { %v6796_v46 = vadd.f32 %v6795_v19, %v6794_v51  ;;  %v9049_v12 = vadd.f32 %v6793_v44, %v2415_v37  ;;  %v7438_v56 = vpop.f32.mrb[138].mxu1 }
 0x2ef   : > { %v2418_v38 = vpop.f32.mrb[139].mxu1 }
 0x2f0   : > { %v9051_v14 = vadd.f32 %v6796_v46, %v2418_v38 }
 0x2f2   : > { %v6797_v58 = vpop.f32.mrb[152].mxu0  ;;  %v2447_v29 = vpack.c.bf16 %v9051_v14, %v9049_v12  ;;  %v7991_v12 = vld [vmem:[%s9804_s2 + $0x38] sm:$0xff]  }
 0x2f3   : > { %v6798_v31 = vpop.f32.mrb[153].mxu0 }
 0x2f4   : > { %v6799_v43 = vadd.f32 %v6798_v31, %v6797_v58  ;;  %v6800_v47 = vpop.f32.mrb[154].mxu0  ;;  %v7441_v53 = vpop.f32.mrb[140].mxu1 }
 0x2f5   : > { %v6801_v54 = vpop.f32.mrb[155].mxu0  ;;  %v2431_v49 = vpop.f32.mrb[141].mxu1 }
 0x2f6   : > { %v9055_v10 = vadd.f32 %v7437_v48, %v6799_v43  ;;  %v6802_v8 = vadd.f32 %v6801_v54, %v6800_v47  ;;  %v7442_v3 = vpop.f32.mrb[142].mxu1 }
 0x2f7   : > { %v2434_v42 = vpop.f32.mrb[143].mxu1 }
 0x2f8   : > { %v9057_v32 = vadd.f32 %v7438_v56, %v6802_v8 }
 0x2fa   : > { %v6803_v61 = vpop.f32.mrb[156].mxu0  ;;  %v2448_v41 = vpack.c.bf16 %v9057_v32, %v9055_v10  ;;  %v7995_v10 = vld [vmem:[%s9804_s2 + $0x28] sm:$0xff]  }
 0x2fb   : > { %v6804_v57 = vpop.f32.mrb[157].mxu0 }
 0x2fc   : > { %v6805_v36 = vadd.f32 %v6804_v57, %v6803_v61  ;;  %v6806_v15 = vpop.f32.mrb[158].mxu0 }
 0x2fd   : > { %v6807_v28 = vpop.f32.mrb[159].mxu0 }
 0x2fe   : > { %v6808_v26 = vadd.f32 %v6807_v28, %v6806_v15  ;;  %v9061_v63 = vadd.f32 %v6805_v36, %v2431_v49 }
 0x300   : > { %v9063_v13 = vadd.f32 %v6808_v26, %v2434_v42 }
 0x302   : > { %v6809_v62 = vpop.f32.mrb[160].mxu0  ;;  %v2449_v34 = vpack.c.bf16 %v9063_v13, %v9061_v63 }
 0x303   : > { %v6810_v33 = vpop.f32.mrb[161].mxu0 }
 0x304   : > { %v6811_v45 = vadd.f32 %v6810_v33, %v6809_v62  ;;  %v6812_v60 = vpop.f32.mrb[162].mxu0  ;;  %v6838_v2 = vpop.f32.mrb[144].mxu1 }
 0x305   : > { %v6813_v39 = vpop.f32.mrb[163].mxu0  ;;  %v6839_v7 = vpop.f32.mrb[145].mxu1 }
 0x306   : > { %v9067_v24 = vadd.f32 %v7441_v53, %v6811_v45  ;;  %v6840_v16 = vadd.f32 %v6839_v7, %v6838_v2  ;;  %v6841_v9 = vpop.f32.mrb[146].mxu1 }
 0x307   : > { %v6842_v52 = vpop.f32.mrb[147].mxu1 }
 0x308   : > { %v6843_v35 = vadd.f32 %v6842_v52, %v6841_v9 }
 0x30a   : > { %v7447_v1 = vpop.f32.mrb[164].mxu0 }
 0x30b   : > { %v2691_v6 = vpop.f32.mrb[165].mxu0 }
 0x30c   : > { %v2692_v55 = vadd.f32 %v6840_v16, %v2691_v6  ;;  %v6844_v50 = vpop.f32.mrb[148].mxu1  ;;  %v7448_v25 = vpop.f32.mrb[166].mxu0 }
 0x30d   : > { %v6845_v17 = vpop.f32.mrb[149].mxu1  ;;  %v2694_v30 = vpop.f32.mrb[167].mxu0 }
 0x30e   : > { %v6846_v40 = vadd.f32 %v6845_v17, %v6844_v50  ;;  %v2695_v20 = vadd.f32 %v6843_v35, %v2694_v30  ;;  %v6847_v21 = vpop.f32.mrb[150].mxu1 }
 0x30f   : > { %v6848_v59 = vpop.f32.mrb[151].mxu1 }
 0x310   : > { %v2700_v44 = vadd.f32 %v7447_v1, %v6846_v40  ;;  %v6849_v51 = vadd.f32 %v6848_v59, %v6847_v21  ;;  %v2737_v48 = vpack.c.bf16 %v2695_v20, %v2692_v55 }
 0x312   : > { %v2703_v19 = vadd.f32 %v7448_v25, %v6849_v51  ;;  %3333 = vrot.lane.b32.xlu0 %v2737_v48, %s8111_s14  ;;  %v7451_v37 = vpop.f32.mrb[168].mxu0 }
 0x313   : > { %v2707_v46 = vpop.f32.mrb[169].mxu0 }
 0x314   : > { %v2738_v56 = vpack.c.bf16 %v2703_v19, %v2700_v44  ;;  %v6850_v38 = vpop.f32.mrb[152].mxu1  ;;  %v7452_v58 = vpop.f32.mrb[170].mxu0 }
 0x315   : > { %v6851_v31 = vpop.f32.mrb[153].mxu1  ;;  %v2710_v43 = vpop.f32.mrb[171].mxu0 }
 0x316   : > { %3335 = vrot.lane.b32.xlu1 %v2738_v56, %s8111_s14  ;;  %v6852_v47 = vadd.f32 %v6851_v31, %v6850_v38  ;;  %v6853_v53 = vpop.f32.mrb[154].mxu1 }
 0x317   : > { %v6854_v54 = vpop.f32.mrb[155].mxu1 }
 0x318   : > { %v6855_v49 = vadd.f32 %v6854_v54, %v6853_v53  ;;  %v9071_v8 = vadd.f32 %v6852_v47, %v2707_v46 }
 0x31a   : > { %v9073_v3 = vadd.f32 %v6855_v49, %v2710_v43  ;;  %v7455_v42 = vpop.f32.mrb[172].mxu0 }
 0x31b   : > { %v2723_v61 = vpop.f32.mrb[173].mxu0 }
 0x31c   : > { %v6856_v57 = vpop.f32.mrb[156].mxu1  ;;  %v2739_v36 = vpack.c.bf16 %v9073_v3, %v9071_v8  ;;  %v7456_v15 = vpop.f32.mrb[174].mxu0 }
 0x31d   : > { %v6857_v28 = vpop.f32.mrb[157].mxu1  ;;  %v2726_v26 = vpop.f32.mrb[175].mxu0 }
 0x31e   : > { %v6858_v62 = vadd.f32 %v6857_v28, %v6856_v57  ;;  %v6859_v33 = vpop.f32.mrb[158].mxu1 }
 0x31f   : > { %v6860_v45 = vpop.f32.mrb[159].mxu1 }
 0x320   : > { %v9077_v60 = vadd.f32 %v7451_v37, %v6858_v62  ;;  %v6861_v2 = vadd.f32 %v6860_v45, %v6859_v33 }
 0x322   : > { %v9079_v39 = vadd.f32 %v7452_v58, %v6861_v2 }
 0x324   : > { %v6862_v7 = vpop.f32.mrb[160].mxu1  ;;  %v2740_v16 = vpack.c.bf16 %v9079_v39, %v9077_v60 }
 0x325   : > { %v6863_v9 = vpop.f32.mrb[161].mxu1 }
 0x326   : > { %v6864_v52 = vadd.f32 %v6863_v9, %v6862_v7  ;;  %v6865_v35 = vpop.f32.mrb[162].mxu1 }
 0x327   : > { %v6866_v1 = vpop.f32.mrb[163].mxu1 }
 0x328   : > { %v6867_v6 = vadd.f32 %v6866_v1, %v6865_v35  ;;  %v9083_v55 = vadd.f32 %v6864_v52, %v2723_v61 }
 0x32a   : > { %v9085_v50 = vadd.f32 %v6867_v6, %v2726_v26  ;;  %v6897_v25 = vpop.f32.mrb[176].mxu0 }
 0x32b   : > { %v6898_v17 = vpop.f32.mrb[177].mxu0 }
 0x32c   : > { %v6868_v30 = vpop.f32.mrb[164].mxu1  ;;  %v2741_v40 = vpack.c.bf16 %v9085_v50, %v9083_v55  ;;  %v6899_v20 = vadd.f32 %v6898_v17, %v6897_v25  ;;  %v6900_v21 = vpop.f32.mrb[178].mxu0 }
 0x32d   : > { %v6869_v59 = vpop.f32.mrb[165].mxu1  ;;  %v6901_v44 = vpop.f32.mrb[179].mxu0 }
 0x32e   : > { %v6870_v51 = vadd.f32 %v6869_v59, %v6868_v30  ;;  %v6871_v48 = vpop.f32.mrb[166].mxu1  ;;  %v6902_v19 = vadd.f32 %v6901_v44, %v6900_v21 }
 0x32f   : > { %v6872_v37 = vpop.f32.mrb[167].mxu1 }
 0x330   : > { %v9089_v46 = vadd.f32 %v7455_v42, %v6870_v51 }
 0x332   : > { %v6903_v56 = vpop.f32.mrb[180].mxu0 }
 0x333   : > { %v6904_v38 = vpop.f32.mrb[181].mxu0 }
 0x334   : > { %v7461_v58 = vpop.f32.mrb[168].mxu1  ;;  %v6905_v31 = vadd.f32 %v6904_v38, %v6903_v56  ;;  %v6906_v43 = vpop.f32.mrb[182].mxu0 }
 0x335   : > { %v2983_v47 = vpop.f32.mrb[169].mxu1  ;;  %v6907_v53 = vpop.f32.mrb[183].mxu0 }
 0x336   : > { %v2984_v54 = vadd.f32 %v6899_v20, %v2983_v47  ;;  %v7462_v49 = vpop.f32.mrb[170].mxu1  ;;  %v2992_v61 = vadd.f32 %v7461_v58, %v6905_v31  ;;  %v6908_v57 = vadd.f32 %v6907_v53, %v6906_v43 }
 0x337   : > { %v2986_v15 = vpop.f32.mrb[171].mxu1 }
 0x338   : > { %v2987_v28 = vadd.f32 %v6902_v19, %v2986_v15  ;;  %v2995_v26 = vadd.f32 %v7462_v49, %v6908_v57 }
 0x33a   : > { %v3029_v62 = vpack.c.bf16 %v2987_v28, %v2984_v54  ;;  %v3030_v33 = vpack.c.bf16 %v2995_v26, %v2992_v61  ;;  %v6909_v45 = vpop.f32.mrb[184].mxu0 }
 0x33b   : > { %v6910_v2 = vpop.f32.mrb[185].mxu0 }
 0x33c   : > { %3351 = vrot.lane.b32.xlu0 %v3029_v62, %s8112_s15  ;;  %v6911_v42 = vadd.f32 %v6910_v2, %v6909_v45  ;;  %v6912_v7 = vpop.f32.mrb[186].mxu0  ;;  %v7465_v9 = vpop.f32.mrb[172].mxu1 }
 0x33d   : > { %v6913_v52 = vpop.f32.mrb[187].mxu0  ;;  %v2999_v35 = vpop.f32.mrb[173].mxu1 }
 0x33e   : > { %v6914_v1 = vadd.f32 %v6913_v52, %v6912_v7  ;;  %v9092_v6 = vadd.f32 %v6911_v42, %v2999_v35  ;;  %v7466_v25 = vpop.f32.mrb[174].mxu1 }
 0x33f   : > { %v3002_v17 = vpop.f32.mrb[175].mxu1 }
 0x340   : > { %3353 = vrot.lane.b32.xlu0 %v3030_v33, %s8112_s15  ;;  %v9095_v30 = vadd.f32 %v6914_v1, %v3002_v17 }
 0x342   : > { %v6915_v20 = vpop.f32.mrb[188].mxu0  ;;  %v3031_v21 = vpack.c.bf16 %v9095_v30, %v9092_v6 }
 0x343   : > { %v6916_v59 = vpop.f32.mrb[189].mxu0 }
 0x344   : > { %3337 = vrot.lane.b32.xlu0 %v2739_v36, %s8111_s14  ;;  %v6917_v44 = vadd.f32 %v6916_v59, %v6915_v20  ;;  %v6918_v51 = vpop.f32.mrb[190].mxu0  ;;  %v7469_v48 = vpop.f32.mrb[176].mxu1 }
 0x345   : > { %v6919_v19 = vpop.f32.mrb[191].mxu0  ;;  %v3015_v37 = vpop.f32.mrb[177].mxu1 }
 0x346   : > { %v9103_v56 = vadd.f32 %v7465_v9, %v6917_v44  ;;  %v6920_v38 = vadd.f32 %v6919_v19, %v6918_v51  ;;  %v7470_v58 = vpop.f32.mrb[178].mxu1 }
 0x347   : > { %v3018_v31 = vpop.f32.mrb[179].mxu1 }
 0x348   : > { %v9105_v43 = vadd.f32 %v7466_v25, %v6920_v38  ;;  %v7981_v25 = vld [vmem:[%s9804_s2] sm:$0xff]  }
 0x349   : > { %7510 = vmatpush3.bf16.msra.mxu1 %v7981_v25 }
 0x34a   : > { %v6921_v47 = vpop.f32.mrb[192].mxu0  ;;  %v3032_v53 = vpack.c.bf16 %v9105_v43, %v9103_v56  ;;  %7511 = vmatprep.subr.bf16.mxu1 %v8108_v0  ;;  %v2742_v56 = vpack.c.bf16 %v9089_v46, %v9089_v46  ;;  %v4111_v46 = vld [vmem:[%s9809_s7] sm:$0xff] }
 0x34b   : > { %v6922_v54 = vpop.f32.mrb[193].mxu0 }
 0x34c   : > { %v6923_v49 = vadd.f32 %v6922_v54, %v6921_v47  ;;  %v6924_v8 = vpop.f32.mrb[194].mxu0 }
 0x34d   : > { %v6925_v3 = vpop.f32.mrb[195].mxu0 }
 0x34e   : > { %v6926_v36 = vadd.f32 %v6925_v3, %v6924_v8  ;;  %v9109_v61 = vadd.f32 %v6923_v49, %v3015_v37  ;;  %v7984_v3 = vld [vmem:[%s9804_s2 + $0x10] sm:$0xff]  }
 0x34f   : > { %7486 = vmatpush3.bf16.msra.mxu0 %v7984_v3 }
 0x350   : > { %v9111_v57 = vadd.f32 %v6926_v36, %v3018_v31  ;;  %7487 = vmatprep.subr.bf16.mxu0 %v8108_v0 }
 0x352   : > { %v6927_v15 = vpop.f32.mrb[196].mxu0  ;;  %v3033_v28 = vpack.c.bf16 %v9111_v57, %v9109_v61  ;;  %v4112_v61 = vld [vmem:[%s9809_s7 + $0x8] sm:$0xff]  ;;  %v8114_v57 = vmov 0  }
 0x353   : > { %v6928_v26 = vpop.f32.mrb[197].mxu0  ;;  %7821 = vset.pattern.permute.xlu0 %v8114_v57  ;;  %7822 = vset.pattern.permute.xlu1 %v8114_v57 }
 0x354   : > { %v6929_v62 = vadd.f32 %v6928_v26, %v6927_v15  ;;  %v6930_v33 = vpop.f32.mrb[198].mxu0  ;;  %v6956_v45 = vpop.f32.mrb[180].mxu1 }
 0x355   : > { %v6931_v2 = vpop.f32.mrb[199].mxu0  ;;  %v6957_v42 = vpop.f32.mrb[181].mxu1 }
 0x356   : > { %v9115_v7 = vadd.f32 %v7469_v48, %v6929_v62  ;;  %v6958_v9 = vadd.f32 %v6957_v42, %v6956_v45  ;;  %v6959_v52 = vpop.f32.mrb[182].mxu1  ;;  %v7982_v48 = vld [vmem:[%s9804_s2 + $0x8] sm:$0xff]  }
 0x357   : > { %v6960_v35 = vpop.f32.mrb[183].mxu1  ;;  %7512 = vmatpush3.bf16.msra.mxu1 %v7982_v48 }
 0x358   : > { %v6961_v1 = vadd.f32 %v6960_v35, %v6959_v52  ;;  %7557 = vmatprep.subr.bf16.mxu1 %v8108_v0 }
 0x35a   : > { %v7475_v17 = vpop.f32.mrb[200].mxu0 }
 0x35b   : > { %v3275_v20 = vpop.f32.mrb[201].mxu0 }
 0x35c   : > { %v3276_v59 = vadd.f32 %v6958_v9, %v3275_v20  ;;  %v6962_v44 = vpop.f32.mrb[184].mxu1  ;;  %v7476_v51 = vpop.f32.mrb[202].mxu0  ;;  %v7985_v9 = vld [vmem:[%s9804_s2 + $0x18] sm:$0xff]  }
 0x35d   : > { %v6963_v19 = vpop.f32.mrb[185].mxu1  ;;  %v3278_v37 = vpop.f32.mrb[203].mxu0  ;;  %7488 = vmatpush3.bf16.msra.mxu0 %v7985_v9  ;;  %v4117_v9 = vld [vmem:[%s9809_s7 + $0x30] sm:$0xff] }
 0x35e   : > { %v6964_v38 = vadd.f32 %v6963_v19, %v6962_v44  ;;  %v3279_v58 = vadd.f32 %v6961_v1, %v3278_v37  ;;  %v6965_v31 = vpop.f32.mrb[186].mxu1  ;;  %7533 = vmatprep.subr.bf16.mxu0 %v8108_v0 }
 0x35f   : > { %v6966_v47 = vpop.f32.mrb[187].mxu1 }
 0x360   : > { %v3284_v54 = vadd.f32 %v7475_v17, %v6964_v38  ;;  %v3321_v49 = vpack.c.bf16 %v3279_v58, %v3276_v59  ;;  %v6967_v8 = vadd.f32 %v6966_v47, %v6965_v31 }
 0x362   : > { %v3287_v36 = vadd.f32 %v7476_v51, %v6967_v8  ;;  %3369 = vrot.lane.b32.xlu1 %v3321_v49, %s8113_s24  ;;  %v7479_v15 = vpop.f32.mrb[204].mxu0 }
 0x363   : > { %v3291_v26 = vpop.f32.mrb[205].mxu0 }
 0x364   : > { %v6968_v62 = vpop.f32.mrb[188].mxu1  ;;  %v3322_v33 = vpack.c.bf16 %v3287_v36, %v3284_v54  ;;  %v7480_v45 = vpop.f32.mrb[206].mxu0 }
 0x365   : > { %v6969_v2 = vpop.f32.mrb[189].mxu1  ;;  %v3294_v42 = vpop.f32.mrb[207].mxu0 }
 0x366   : > { %v6970_v52 = vadd.f32 %v6969_v2, %v6968_v62  ;;  %v6971_v35 = vpop.f32.mrb[190].mxu1  ;;  %3371 = vrot.lane.b32.xlu1 %v3322_v33, %s8113_s24  ;;  %v4115_v2 = vld [vmem:[%s9809_s7 + $0x20] sm:$0xff] }
 0x367   : > { %v6972_v1 = vpop.f32.mrb[191].mxu1 }
 0x368   : > { %v6973_v25 = vadd.f32 %v6972_v1, %v6971_v35  ;;  %v3292_v17 = vadd.f32 %v6970_v52, %v3291_v26  ;;  %v4118_v52 = vld [vmem:[%s9809_s7 + $0x38] sm:$0xff]  ;;  %v4119_v35 = vld [vmem:[%s9809_s7 + $0x40] sm:$0x7f] }
 0x36a   : > { %v3295_v20 = vadd.f32 %v6973_v25, %v3294_v42  ;;  %3355 = vrot.lane.b32.xlu1 %v3031_v21, %s8112_s15  ;;  %v7483_v59 = vpop.f32.mrb[208].mxu0  ;;  %v4116_v42 = vld [vmem:[%s9809_s7 + $0x28] sm:$0xff] }
 0x36b   : > { %v3307_v44 = vpop.f32.mrb[209].mxu0 }
 0x36c   : > { %v3323_v51 = vpack.c.bf16 %v3295_v20, %v3292_v17  ;;  %v6974_v48 = vpop.f32.mrb[192].mxu1  ;;  %v7484_v19 = vpop.f32.mrb[210].mxu0 }
 0x36d   : > { %v6975_v37 = vpop.f32.mrb[193].mxu1  ;;  %v3310_v38 = vpop.f32.mrb[211].mxu0 }
 0x36e   : > { %v6976_v58 = vadd.f32 %v6975_v37, %v6974_v48  ;;  %v6977_v31 = vpop.f32.mrb[194].mxu1  ;;  %3339 = vrot.lane.b32.xlu1 %v2740_v16, %s8111_s14  ;;  %3373 = vrot.lane.b32.xlu0 %v3323_v51, %s8113_s24 }
 0x36f   : > { %v6978_v47 = vpop.f32.mrb[195].mxu1 }
 0x370   : > { %v3300_v54 = vadd.f32 %v7479_v15, %v6976_v58  ;;  %v6979_v6 = vadd.f32 %v6978_v47, %v6977_v31 }
 0x372   : > { %v3303_v30 = vadd.f32 %v7480_v45, %v6979_v6  ;;  %3357 = vrot.lane.b32.xlu0 %v3032_v53, %s8112_s15 }
 0x374   : > { %v6980_v21 = vpop.f32.mrb[196].mxu1  ;;  %v3324_v49 = vpack.c.bf16 %v3303_v30, %v3300_v54 }
 0x375   : > { %v6981_v8 = vpop.f32.mrb[197].mxu1 }
 0x376   : > { %v6982_v3 = vadd.f32 %v6981_v8, %v6980_v21  ;;  %v6983_v36 = vpop.f32.mrb[198].mxu1  ;;  %3375 = vrot.lane.b32.xlu1 %v3324_v49, %s8113_s24  ;;  %3341 = vrot.lane.b32.xlu0 %v2741_v40, %s8111_s14  ;;  %v3034_v40 = vpack.c.bf16 %v9115_v7, %v9115_v7  ;;  %v4114_v7 = vld [vmem:[%s9809_s7 + $0x18] sm:$0xff] }
 0x377   : > { %v6984_v60 = vpop.f32.mrb[199].mxu1 }
 0x378   : > { %v6985_v39 = vadd.f32 %v6984_v60, %v6983_v36  ;;  %v3308_v16 = vadd.f32 %v6982_v3, %v3307_v44 }
 0x37a   : > { %v3311_v15 = vadd.f32 %v6985_v39, %v3310_v38  ;;  %3359 = vrot.lane.b32.xlu1 %v3033_v28, %s8112_s15  ;;  %v4113_v28 = vld [vmem:[%s9809_s7 + $0x10] sm:$0xff] }
 0x37c   : > { %v3325_v43 = vpack.c.bf16 %v3311_v15, %v3308_v16  ;;  %v6986_v53 = vpop.f32.mrb[200].mxu1 }
 0x37d   : > { %v6987_v26 = vpop.f32.mrb[201].mxu1 }
 0x37e   : > { %v6988_v62 = vadd.f32 %v6987_v26, %v6986_v53  ;;  %3343 = vrot.lane.b32.xlu1 %v2742_v56, %s8111_s14  ;;  %3377 = vrot.lane.b32.xlu0 %v3325_v43, %s8113_s24  ;;  %v6989_v55 = vpop.f32.mrb[202].mxu1  ;;  %v7994_v53 = vld [vmem:[%s9804_s2 + $0x20] sm:$0xff]   ;;  %s382_s14 = scalar_lea.vmem %s9813_s11, %s9815_s18 }
 0x37f   : > { %v6990_v50 = vpop.f32.mrb[203].mxu1 }
 0x380   : > { %v3316_v33 = vadd.f32 %v7483_v59, %v6988_v62 }
 0x382   : > { %v3326_v45 = vpack.c.bf16 %v3316_v33, %v3316_v33  ;;  %3361 = vrot.lane.b32.xlu0 %v3034_v40, %s8112_s15 }
 0x384   : > { %3379 = vrot.lane.b32.xlu1 %v3326_v45, %s8113_s24  ;;  %v3334_v1 = vpop.permute.xlu0 %3333 }
 0x385   : > { %v3384_v20 = vsel %vm3381_vm7, %v2445_v11, %v3334_v1 }
 0x386   : > { %4122 = vperm.xlu0 %7821, %v4111_v46  }
 0x388   : > { %4127 = vperm.xlu1 %7822, %v4112_v61   ;;  %v3336_v17 = vpop.permute.xlu1 %3335 }
 0x389   : > { %v3387_v38 = vsel %vm3381_vm7, %v2446_v5, %v3336_v17 }
 0x38a   : > { %4137 = vperm.xlu0 %7821, %v4114_v7  }
 0x38c   : > { %4132 = vperm.xlu1 %7822, %v4113_v28  }
 0x38e   : > { %4147 = vperm.xlu0 %7821, %v4116_v42  }
 0x390   : > { %4142 = vperm.xlu1 %7822, %v4115_v2  }
 0x392   : > { %4157 = vperm.xlu0 %7821, %v4118_v52  }
 0x394   : > { %4152 = vperm.xlu1 %7822, %v4117_v9  }
 0x398   : > { %4162 = vperm.xlu1 %7822, %v4119_v35  }
 0x3ae   : > { %v3352_v25 = vpop.permute.xlu0 %3351 }
 0x3af   : > { %v3402_v59 = vsel %vm3400_vm8, %v3384_v20, %v3352_v25  ;;  %v2450_v25 = vpack.c.bf16 %v9067_v24, %v9067_v24 }
 0x3b2   : > { %v3354_v51 = vpop.permute.xlu0 %3353 }
 0x3b3   : > { %v3404_v58 = vsel %vm3400_vm8, %v3387_v38, %v3354_v51 }
 0x3b6   : > { %v3338_v47 = vpop.permute.xlu0 %3337 }
 0x3b7   : > { %v3390_v4 = vsel %vm3381_vm7, %v2447_v29, %v3338_v47 }
 0x3d4   : > { %v3370_v44 = vpop.permute.xlu1 %3369 }
 0x3d5   : > { %v3415_v48 = vsel %vm3413_vm9, %v3402_v59, %v3370_v44 }
 0x3d6   : > { %v6418_v19 = vcombine.low %v3415_v48, %v3415_v48  ;;  %v6419_v37 = vcombine.high %v3415_v48, %v3415_v48  ;;  %v3479_v48 = vld [vmem:[#allocation2 + $0x28] sm:$0x1] }
 0x3d8   : > { %3466 = vst.msk [vmem:[#allocation2] sm:$0xf] %vm3465_vm10, %v6418_v19  ;;  %3467 = vst.msk [vmem:[#allocation2 + $0x4] sm:$0xf] %vm3465_vm10, %v6419_v37  ;;  %v3372_v18 = vpop.permute.xlu1 %3371 }
 0x3d9   : > { %v3417_v27 = vsel %vm3413_vm9, %v3404_v58, %v3372_v18 }
 0x3da   : > { %v6420_v11 = vcombine.low %v3417_v27, %v3417_v27  ;;  %v6421_v31 = vcombine.high %v3417_v27, %v3417_v27 }
 0x3dc   : > { %3468 = vst.msk [vmem:[#allocation2 + $0x8] sm:$0xf] %vm3465_vm10, %v6420_v11  ;;  %3469 = vst.msk [vmem:[#allocation2 + $0xc] sm:$0xf] %vm3465_vm10, %v6421_v31  ;;  %v3356_v54 = vpop.permute.xlu1 %3355 }
 0x3dd   : > { %v3406_v6 = vsel %vm3400_vm8, %v3390_v4, %v3356_v54 }
 0x3df   : > { %v7983_v5 = vld [vmem:[#allocation2] sm:$0xff]  }
 0x3e0   : > { %v3374_v30 = vpop.permute.xlu0 %3373  ;;  %7514 = vmatmul.mubr.msk.bf16.vlgmr.msra.gmra.mrb[204].mxu1 %vm3574_vm11, %v7983_v5  ;;  %v3526_v49 = vshll.u32 %v7983_v5, 16  ;;  %v3340_v36 = vpop.permute.xlu1 %3339  ;;  %v3524_v16 = vshrl.u32 %v7983_v5, 16 }
 0x3e1   : > { %v3419_v21 = vsel %vm3413_vm9, %v3406_v6, %v3374_v30  ;;  %7517 = vmatprep.mubr.msk.bf16.mxu1 %vm8109_vm1, %v8108_v0  ;;  %7558 = vmatpush3.bf16.msra.mxu1 %v7990_v22  ;;  %v3393_v15 = vsel %vm3381_vm7, %v2448_v41, %v3340_v36 }
 0x3e2   : > { %v6422_v8 = vcombine.low %v3419_v21, %v3419_v21  ;;  %v6423_v3 = vcombine.high %v3419_v21, %v3419_v21  ;;  %v3528_v29 = vrot.slane %v3526_v49, 1  ;;  %7559 = vmatprep.subr.bf16.mxu1 %v8108_v0 }
 0x3e3   : > { %v7986_v14 = vld [vmem:[#allocation2 + $0x8] sm:$0xff]  }
 0x3e4   : > { %3470 = vst.msk [vmem:[#allocation2 + $0x10] sm:$0xf] %vm3465_vm10, %v6422_v8  ;;  %3471 = vst.msk [vmem:[#allocation2 + $0x14] sm:$0xf] %vm3465_vm10, %v6423_v3  ;;  %v3358_v60 = vpop.permute.xlu0 %3357  ;;  %v3531_v39 = vshll.u32 %v7986_v14, 16  ;;  %v3529_v43 = vor.u32 %v3528_v29, %v3524_v16  ;;  %v3535_v46 = vshrl.u32 %v7986_v14, 16 }
 0x3e5   : > { %7560 = vmatpush3.bf16.msra.mxu1 %v7991_v12  ;;  %v3408_v26 = vsel %vm3400_vm8, %v3393_v15, %v3358_v60  ;;  %v7992_v6 = vld [vmem:[#allocation2 + $0x4] sm:$0xfe]  }
 0x3e6   : > { %v3533_v56 = vrot.slane %v3531_v39, 1  ;;  %v7997_v30 = vld [vmem:[#allocation2 + $0x4] sm:$0xff]   ;;  %v3980_v8 = vrot.slane %v7992_v6, 1 }
 0x3e7   : > { %v3796_v12 = vshll.u32 %v7997_v30, 16  ;;  %v3794_v15 = vshrl.u32 %v7997_v30, 16 }
 0x3e8   : > { %v3376_v62 = vpop.permute.xlu1 %3375  ;;  %7518 = vmatmul.mubr.msk.bf16.gmra.mrb[208].mxu1 %vm3574_vm11, %v7986_v14  ;;  %v3534_v50 = vsel %vm508_vm3, %v3529_v43, %v3533_v56  ;;  %v3342_v41 = vpop.permute.xlu0 %3341  ;;  %v3537_v7 = vor.u32 %v3535_v46, %v3533_v56 }
 0x3e9   : > { %v3421_v55 = vsel %vm3413_vm9, %v3408_v26, %v3376_v62  ;;  %7490 = vmatmul.mubr.msk.bf16.vlgmr.msra.gmra.mrb[212].mxu0 %vm3574_vm11, %v3534_v50  ;;  %7521 = vmatprep.mubr.msk.bf16.mxu1 %vm8109_vm1, %v8108_v0  ;;  %v3396_v28 = vsel %vm3381_vm7, %v2449_v34, %v3342_v41  ;;  %v3798_v39 = vrot.slane %v3796_v12, 1 }
 0x3ea   : > { %v6424_v40 = vcombine.low %v3421_v55, %v3421_v55  ;;  %v6425_v33 = vcombine.high %v3421_v55, %v3421_v55  ;;  %7493 = vmatprep.mubr.msk.bf16.mxu0 %vm8109_vm1, %v8108_v0  ;;  %7534 = vmatpush3.bf16.msra.mxu0 %v7994_v53 }
 0x3eb   : > { %v7987_v32 = vld [vmem:[#allocation2 + $0x10] sm:$0xff]   ;;  %7535 = vmatprep.subr.bf16.mxu0 %v8108_v0  ;;  %v3799_v53 = vor.u32 %v3798_v39, %v3794_v15 }
 0x3ec   : > { %3472 = vst.msk [vmem:[#allocation2 + $0x18] sm:$0xf] %vm3465_vm10, %v6424_v40  ;;  %3473 = vst.msk [vmem:[#allocation2 + $0x1c] sm:$0xf] %vm3465_vm10, %v6425_v33  ;;  %v3360_v45 = vpop.permute.xlu1 %3359  ;;  %v3539_v61 = vshll.u32 %v7987_v32, 16  ;;  %v3543_v59 = vshrl.u32 %v7987_v32, 16 }
 0x3ed   : > { %v3410_v42 = vsel %vm3400_vm8, %v3396_v28, %v3360_v45  ;;  %v7993_v4 = vld [vmem:[#allocation2 + $0xc] sm:$0xff]  }
 0x3ee   : > { %v3541_v2 = vrot.slane %v3539_v61, 1  ;;  %7536 = vmatpush3.bf16.msra.mxu0 %v7995_v10  ;;  %v3981_v21 = vrot.slane %v7993_v4, 1  ;;  %v7998_v49 = vld [vmem:[#allocation2 + $0xc] sm:$0xff]  }
 0x3ef   : > { %v3801_v60 = vshll.u32 %v7998_v49, 16  ;;  %v3805_v33 = vshrl.u32 %v7998_v49, 16 }
 0x3f0   : > { %v3378_v9 = vpop.permute.xlu0 %3377  ;;  %v3344_v52 = vpop.permute.xlu1 %3343  ;;  %7522 = vmatmul.mubr.msk.bf16.gmra.mrb[212].mxu1 %vm3574_vm11, %v7987_v32  ;;  %v3542_v1 = vsel %vm508_vm3, %v3537_v7, %v3541_v2  ;;  %v3545_v37 = vor.u32 %v3543_v59, %v3541_v2  ;;  %v3982_v14 = vsel %vm1730_vm4, %v3980_v8, %v3981_v21 }
 0x3f1   : > { %v3423_v35 = vsel %vm3413_vm9, %v3410_v42, %v3378_v9  ;;  %7494 = vmatmul.mubr.msk.bf16.gmra.mrb[216].mxu0 %vm3574_vm11, %v3542_v1  ;;  %7525 = vmatprep.mubr.msk.bf16.mxu1 %vm8109_vm1, %v8108_v0  ;;  %v3399_v34 = vsel %vm3381_vm7, %v2450_v25, %v3344_v52  ;;  %v3803_v56 = vrot.slane %v3801_v60, 1  ;;  %vm4630_vm7 = vcmask 516096  }
 0x3f2   : > { %v6426_v17 = vcombine.low %v3423_v35, %v3423_v35  ;;  %v6427_v63 = vcombine.high %v3423_v35, %v3423_v35  ;;  %7497 = vmatprep.mubr.msk.bf16.mxu0 %vm8109_vm1, %v8108_v0 }
 0x3f3   : > { %v7988_v13 = vld [vmem:[#allocation2 + $0x18] sm:$0xff]   ;;  %v3804_v55 = vsel %vm508_vm3, %v3799_v53, %v3803_v56  ;;  %v3807_v41 = vor.u32 %v3805_v33, %v3803_v56 }
 0x3f4   : > { %3474 = vst.msk [vmem:[#allocation2 + $0x20] sm:$0xf] %vm3465_vm10, %v6426_v17  ;;  %3475 = vst.msk [vmem:[#allocation2 + $0x24] sm:$0xf] %vm3465_vm10, %v6427_v63  ;;  %v3362_v20 = vpop.permute.xlu0 %3361  ;;  %v3547_v44 = vshll.u32 %v7988_v13, 16  ;;  %v3551_v31 = vshrl.u32 %v7988_v13, 16 }
 0x3f5   : > { %v3412_v24 = vsel %vm3400_vm8, %v3399_v34, %v3362_v20  ;;  %v7996_v36 = vld [vmem:[#allocation2 + $0x14] sm:$0xff]   ;;  %vm4702_vm10 = vcmask 523264  }
 0x3f6   : > { %v3380_v51 = vpop.permute.xlu1 %3379  ;;  %v3549_v38 = vrot.slane %v3547_v44, 1  ;;  %v3983_v16 = vrot.slane %v7996_v36, 1  ;;  %v8000_v43 = vld [vmem:[#allocation2 + $0x14] sm:$0xff]  }
 0x3f7   : > { %v3425_v19 = vsel %vm3413_vm9, %v3412_v24, %v3380_v51  ;;  %v3809_v50 = vshll.u32 %v8000_v43, 16  ;;  %v3813_v2 = vshrl.u32 %v8000_v43, 16  ;;  %vm4631_vm9 = vmand %vm4630_vm7, %vm3477_vm13 }
 0x3f8   : > { %v6428_v58 = vcombine.low %v3425_v19, %v3425_v19  ;;  %7526 = vmatmul.mubr.msk.bf16.gmra.mrb[216].mxu1 %vm3574_vm11, %v7988_v13  ;;  %v3550_v18 = vsel %vm508_vm3, %v3545_v37, %v3549_v38  ;;  %v3553_v54 = vor.u32 %v3551_v31, %v3549_v38  ;;  %v3984_v26 = vsel %vm1730_vm4, %v3981_v21, %v3983_v16 }
 0x3f9   : > { %7498 = vmatmul.mubr.msk.bf16.gmra.mrb[220].mxu0 %vm3574_vm11, %v3550_v18  ;;  %7529 = vmatprep.mubr.msk.bf16.mxu1 %vm8109_vm1, %v8108_v0  ;;  %v3811_v10 = vrot.slane %v3809_v50, 1 }
 0x3fa   : > { %v3480_v27 = vsel %vm3478_vm14, %v6428_v58, %v3479_v48  ;;  %7501 = vmatprep.mubr.msk.bf16.mxu0 %vm8109_vm1, %v8108_v0  ;;  %vm5144_vm14 = vcmask 1040384  }
 0x3fb   : > { %3481 = vst [vmem:[#allocation2 + $0x28] sm:$0x1] %v3480_v27  ;;  %v7989_v11 = vld [vmem:[#allocation2 + $0x20] ss:$0 sps:$4 sm:$0xff]   ;;  %v3812_v61 = vsel %vm508_vm3, %v3807_v41, %v3811_v10  ;;  %v3815_v9 = vor.u32 %v3813_v2, %v3811_v10  ;;  %v8003_v52 = vld [vmem:[#allocation2 + $0x24] ss:$0 sps:$4 sm:$0xff]  }
 0x3fc   : > { %v3555_v47 = vshll.u32 %v7989_v11, 16  ;;  %v3559_v3 = vshrl.u32 %v7989_v11, 16  ;;  %v7999_v62 = vld [vmem:[#allocation2 + $0x1c] sm:$0xff]   ;;  %v3825_v17 = vshll.u32 %v8003_v52, 16  ;;  %v3829_v20 = vshrl.u32 %v8003_v52, 16 }
 0x3fd   : > { %v3985_v40 = vrot.slane %v7999_v62, 1  ;;  %v8002_v32 = vld [vmem:[#allocation2 + $0x1c] sm:$0xff]  }
 0x3fe   : > { %v3557_v22 = vrot.slane %v3555_v47, 1  ;;  %v3817_v28 = vshll.u32 %v8002_v32, 16  ;;  %v3821_v25 = vshrl.u32 %v8002_v32, 16  ;;  %v3827_v13 = vrot.slane %v3825_v17, 1 }
 0x3ff   : > { %v3986_v45 = vsel %vm1730_vm4, %v3983_v16, %v3985_v40 }
 0x400   : > { %7530 = vmatmul.mubr.msk.bf16.gmra.mrb[220].mxu1 %vm3574_vm11, %v7989_v11  ;;  %v3558_v5 = vsel %vm508_vm3, %v3553_v54, %v3557_v22  ;;  %v3561_v29 = vor.u32 %v3559_v3, %v3557_v22  ;;  %v3819_v42 = vrot.slane %v3817_v28, 1  ;;  %v3831_v24 = vor.u32 %v3829_v20, %v3827_v13 }
 0x401   : > { %7502 = vmatmul.mubr.msk.bf16.gmra.mrb[224].mxu0 %vm3574_vm11, %v3558_v5  ;;  %7561 = vmatprep.mubr.msk.bf16.mxu1 %vm8109_vm1, %v8108_v0 }
 0x402   : > { %7505 = vmatprep.mubr.msk.bf16.mxu0 %vm8109_vm1, %v8108_v0  ;;  %v8001_v46 = vld [vmem:[#allocation2 + $0x24] sm:$0x1f]   ;;  %v3820_v1 = vsel %vm508_vm3, %v3815_v9, %v3819_v42  ;;  %v3823_v63 = vor.u32 %v3821_v25, %v3819_v42 }
 0x403   : > { %v3987_v7 = vrot.slane %v8001_v46, 1 }
 0x404   : > { %v3828_v34 = vsel %vm508_vm3, %v3823_v63, %v3827_v13 }
 0x405   : > { %v3988_v35 = vsel %vm1730_vm4, %v3985_v40, %v3987_v7  ;;  %vm4306_vm4 = vcmask 1043456  }
 0x408   : > { %7562 = vmatmul.mubr.msk.bf16.vlgmr.msra.gmra.mrb[224].mxu1 %vm3574_vm11, %v3982_v14 }
 0x409   : > { %7506 = vmatmul.mubr.msk.bf16.gmra.mrb[228].mxu0 %vm3574_vm11, %v3561_v29  ;;  %7565 = vmatprep.mubr.msk.bf16.mxu1 %vm8109_vm1, %v8108_v0 }
 0x40a   : > { %7537 = vmatprep.mubr.msk.bf16.mxu0 %vm8109_vm1, %v8108_v0 }
 0x410   : > { %7566 = vmatmul.mubr.msk.bf16.gmra.mrb[228].mxu1 %vm3574_vm11, %v3984_v26 }
 0x411   : > { %7538 = vmatmul.mubr.msk.bf16.vlgmr.msra.gmra.mrb[232].mxu0 %vm3574_vm11, %v3804_v55  ;;  %7569 = vmatprep.mubr.msk.bf16.mxu1 %vm8109_vm1, %v8108_v0 }
 0x412   : > { %7541 = vmatprep.mubr.msk.bf16.mxu0 %vm8109_vm1, %v8108_v0 }
 0x418   : > { %7570 = vmatmul.mubr.msk.bf16.gmra.mrb[232].mxu1 %vm3574_vm11, %v3986_v45 }
 0x419   : > { %7542 = vmatmul.mubr.msk.bf16.gmra.mrb[236].mxu0 %vm3574_vm11, %v3812_v61  ;;  %7573 = vmatprep.mubr.msk.bf16.mxu1 %vm8109_vm1, %v8108_v0 }
 0x41a   : > { %7545 = vmatprep.mubr.msk.bf16.mxu0 %vm8109_vm1, %v8108_v0 }
 0x420   : > { %7574 = vmatmul.mubr.msk.bf16.gmra.mrb[236].mxu1 %vm3574_vm11, %v3988_v35 }
 0x421   : > { %7546 = vmatmul.mubr.msk.bf16.gmra.mrb[240].mxu0 %vm3574_vm11, %v3820_v1  ;;  %7577 = vmatprep.mubr.msk.bf16.mxu1 %vm8109_vm1, %v8108_v0 }
 0x422   : > { %7549 = vmatprep.mubr.msk.bf16.mxu0 %vm8109_vm1, %v8108_v0 }
 0x428   : > { %7578 = vmatmul.mubr.msk.bf16.gmra.mrb[240].mxu1 %vm3574_vm11, %v3987_v7 }
 0x429   : > { %7550 = vmatmul.mubr.msk.bf16.gmra.mrb[244].mxu0 %vm3574_vm11, %v3828_v34 }
 0x42a   : > { %7553 = vmatprep.mubr.msk.bf16.mxu0 %vm8109_vm1, %v8108_v0 }
 0x431   : > { %7554 = vmatmul.mubr.msk.bf16.gmra.mrb[248].mxu0 %vm3574_vm11, %v3831_v24 }
 0x4b3   : > { %v3718_v59 = vpop.f32.mrb[204].mxu1 }
 0x4b4   : > { %v7515_v44 = vpop.f32.mrb[205].mxu1 }
 0x4b5   : > { %v3721_v51 = vpop.f32.mrb[206].mxu1 }
 0x4b6   : > { %v7516_v48 = vpop.f32.mrb[207].mxu1 }
 0x4bb   : > { %v3726_v19 = vpop.f32.mrb[208].mxu1 }
 0x4bc   : > { %v3624_v37 = vpop.f32.mrb[212].mxu0  ;;  %v7519_v38 = vpop.f32.mrb[209].mxu1 }
 0x4bd   : > { %v3719_v58 = vadd.f32 %v3718_v59, %v3624_v37  ;;  %v7491_v18 = vpop.f32.mrb[213].mxu0  ;;  %v3729_v27 = vpop.f32.mrb[210].mxu1  ;;  %v9337_v59 = vld [vmem:[%s9808_s6 + $0x1] ss:$0 sm:$0xff] }
 0x4be   : > { %v3627_v11 = vpop.f32.mrb[214].mxu0  ;;  %v7520_v31 = vpop.f32.mrb[211].mxu1 }
 0x4bf   : > { %v3722_v47 = vadd.f32 %v3721_v51, %v3627_v11  ;;  %v7492_v54 = vpop.f32.mrb[215].mxu0 }
 0x4c3   : > { %v3734_v22 = vpop.f32.mrb[212].mxu1 }
 0x4c4   : > { %v3632_v4 = vpop.f32.mrb[216].mxu0  ;;  %v7523_v5 = vpop.f32.mrb[213].mxu1 }
 0x4c5   : > { %v3727_v6 = vadd.f32 %v3726_v19, %v3632_v4  ;;  %v7495_v30 = vpop.f32.mrb[217].mxu0  ;;  %v3737_v21 = vpop.f32.mrb[214].mxu1 }
 0x4c6   : > { %v3635_v49 = vpop.f32.mrb[218].mxu0  ;;  %v7524_v8 = vpop.f32.mrb[215].mxu1 }
 0x4c7   : > { %v9322_v3 = vadd.f32 %v3729_v27, %v3635_v49  ;;  %v7496_v12 = vpop.f32.mrb[219].mxu0  ;;  %v9339_v19 = vpop.permute.xlu0 %4122 }
 0x4c8   : > { %v9346_v27 = vpop.permute.xlu1 %4127 }
 0x4cb   : > { %v3742_v14 = vpop.f32.mrb[216].mxu1 }
 0x4cc   : > { %v3640_v29 = vpop.f32.mrb[220].mxu0  ;;  %v7527_v36 = vpop.f32.mrb[217].mxu1 }
 0x4cd   : > { %v9324_v60 = vadd.f32 %v3734_v22, %v3640_v29  ;;  %v7499_v39 = vpop.f32.mrb[221].mxu0  ;;  %v3745_v16 = vpop.f32.mrb[218].mxu1  ;;  %v8005_v22 = vld [vmem:[%s9811_s9 + $0x10] sm:$0xff]  }
 0x4ce   : > { %v3643_v15 = vpop.f32.mrb[222].mxu0  ;;  %v7528_v56 = vpop.f32.mrb[219].mxu1  ;;  %7605 = vmatprep.mubr.msk.bf16.mxu1 %vm4298_vm15, %v8005_v22 }
 0x4cf   : > { %v9326_v43 = vadd.f32 %v3737_v21, %v3643_v15  ;;  %v7500_v53 = vpop.f32.mrb[223].mxu0  ;;  %v9367_v56 = vpop.permute.xlu1 %4132 }
 0x4d0   : > { %v9369_v53 = vpop.permute.xlu0 %4137 }
 0x4d3   : > { %v3750_v26 = vpop.f32.mrb[220].mxu1 }
 0x4d4   : > { %v3648_v62 = vpop.f32.mrb[224].mxu0  ;;  %v7531_v55 = vpop.f32.mrb[221].mxu1 }
 0x4d5   : > { %v9328_v50 = vadd.f32 %v3742_v14, %v3648_v62  ;;  %v7503_v40 = vpop.f32.mrb[225].mxu0  ;;  %v3753_v33 = vpop.f32.mrb[222].mxu1 }
 0x4d6   : > { %v3651_v10 = vpop.f32.mrb[226].mxu0  ;;  %v7532_v32 = vpop.f32.mrb[223].mxu1 }
 0x4d7   : > { %v9330_v41 = vadd.f32 %v3745_v16, %v3651_v10  ;;  %v7504_v45 = vpop.f32.mrb[227].mxu0 }
 0x4db   : > { %v4050_v46 = vpop.f32.mrb[224].mxu1 }
 0x4dc   : > { %v3656_v61 = vpop.f32.mrb[228].mxu0  ;;  %v7563_v28 = vpop.f32.mrb[225].mxu1 }
 0x4dd   : > { %v9332_v7 = vadd.f32 %v3750_v26, %v3656_v61  ;;  %v7507_v2 = vpop.f32.mrb[229].mxu0  ;;  %v4053_v42 = vpop.f32.mrb[226].mxu1 }
 0x4de   : > { %v3659_v9 = vpop.f32.mrb[230].mxu0  ;;  %v7564_v52 = vpop.f32.mrb[227].mxu1 }
 0x4df   : > { %v7508_v35 = vpop.f32.mrb[231].mxu0 }
 0x4e3   : > { %v4058_v1 = vpop.f32.mrb[228].mxu1 }
 0x4e4   : > { %v3893_v25 = vpop.f32.mrb[232].mxu0  ;;  %v7567_v17 = vpop.f32.mrb[229].mxu1 }
 0x4e5   : > { %v3931_v63 = vadd.f32 %v3893_v25, %v3719_v58  ;;  %v7539_v13 = vpop.f32.mrb[233].mxu0  ;;  %v4061_v34 = vpop.f32.mrb[230].mxu1 }
 0x4e6   : > { %v3896_v20 = vpop.f32.mrb[234].mxu0  ;;  %v7568_v24 = vpop.f32.mrb[231].mxu1 }
 0x4e7   : > { %v4088_v44 = vadd.f32 %v4050_v46, %v3931_v63  ;;  %v3932_v51 = vadd.f32 %v3896_v20, %v3722_v47  ;;  %v7540_v48 = vpop.f32.mrb[235].mxu0  ;;  %v8004_v47 = vld [vmem:[%s9811_s9] sm:$0xff]   ;;  %v9383_v63 = vpop.permute.xlu1 %4142 }
 0x4e8   : > { %7591 = vmatprep.mubr.msk.bf16.mxu0 %vm4298_vm15, %v8004_v47 }
 0x4e9   : > { %v4089_v37 = vadd.f32 %v4053_v42, %v3932_v51  ;;  %v9342_v38 = vadd.f32 %v9337_v59, %v4088_v44 }
 0x4eb   : > { %v4165_v58 = vmul.f32 %v9339_v19, %v9342_v38  ;;  %v4066_v18 = vpop.f32.mrb[232].mxu1  ;;  %v9349_v11 = vadd.f32 %v9337_v59, %v4089_v37 }
 0x4ec   : > { %v3901_v31 = vpop.f32.mrb[236].mxu0  ;;  %v7571_v54 = vpop.f32.mrb[233].mxu1 }
 0x4ed   : > { %v4166_v4 = vmul.f32 %v9346_v27, %v9349_v11  ;;  %v3933_v5 = vadd.f32 %v3901_v31, %v3727_v6  ;;  %v7543_v30 = vpop.f32.mrb[237].mxu0  ;;  %v4069_v21 = vpop.f32.mrb[234].mxu1  ;;  %v4174_v12 = vsel %vm3400_vm8, %v4165_v58, 0.0 }
 0x4ee   : > { %v3904_v49 = vpop.f32.mrb[238].mxu0  ;;  %v7572_v8 = vpop.f32.mrb[235].mxu1 }
 0x4ef   : > { %v4175_v14 = vsel %vm3400_vm8, %v4166_v4, 0.0  ;;  %v4090_v29 = vadd.f32 %v4058_v1, %v3933_v5  ;;  %v3934_v36 = vadd.f32 %v3904_v49, %v9322_v3  ;;  %v7544_v39 = vpop.f32.mrb[239].mxu0  ;;  %v4153_v8 = vpop.permute.xlu1 %4152 }
 0x4f0   : > { %v4176_v16 = vadd.f32 %v4175_v14, %v4174_v12 }
 0x4f1   : > { %v4091_v15 = vadd.f32 %v4061_v34, %v3934_v36  ;;  %v9365_v6 = vadd.f32 %v9337_v59, %v4090_v29  ;;  %v9386_v34 = vpop.permute.xlu0 %4147 }
 0x4f3   : > { %v4167_v26 = vmul.f32 %v9367_v56, %v9365_v6  ;;  %v4074_v62 = vpop.f32.mrb[236].mxu1  ;;  %v9374_v55 = vadd.f32 %v9337_v59, %v4091_v15 }
 0x4f4   : > { %v3909_v40 = vpop.f32.mrb[240].mxu0  ;;  %v7575_v33 = vpop.f32.mrb[237].mxu1 }
 0x4f5   : > { %v4177_v3 = vsel %vm3400_vm8, %v4167_v26, 0.0  ;;  %v4168_v10 = vmul.f32 %v9369_v53, %v9374_v55  ;;  %v3935_v32 = vadd.f32 %v3909_v40, %v9324_v60  ;;  %v7547_v45 = vpop.f32.mrb[241].mxu0  ;;  %v4077_v46 = vpop.f32.mrb[238].mxu1 }
 0x4f6   : > { %v4178_v61 = vadd.f32 %v4177_v3, %v4176_v16  ;;  %v3912_v28 = vpop.f32.mrb[242].mxu0  ;;  %v7576_v2 = vpop.f32.mrb[239].mxu1 }
 0x4f7   : > { %v4179_v42 = vsel %vm3400_vm8, %v4168_v10, 0.0  ;;  %v4092_v9 = vadd.f32 %v4066_v18, %v3935_v32  ;;  %v3936_v52 = vadd.f32 %v3912_v28, %v9326_v43  ;;  %v7548_v35 = vpop.f32.mrb[243].mxu0  ;;  %v4163_v32 = vpop.permute.xlu1 %4162 }
 0x4f8   : > { %v4180_v1 = vadd.f32 %v4179_v42, %v4178_v61 }
 0x4f9   : > { %v4093_v25 = vadd.f32 %v4069_v21, %v3936_v52  ;;  %v4106_v17 = vadd.f32 %v9337_v59, %v4092_v9 }
 0x4fb   : > { %v4169_v13 = vmul.f32 %v9383_v63, %v4106_v17  ;;  %v4082_v60 = vpop.f32.mrb[240].mxu1  ;;  %v4107_v20 = vadd.f32 %v9337_v59, %v4093_v25 }
 0x4fc   : > { %v3917_v24 = vpop.f32.mrb[244].mxu0  ;;  %v7579_v44 = vpop.f32.mrb[241].mxu1 }
 0x4fd   : > { %v4181_v51 = vsel %vm3400_vm8, %v4169_v13, 0.0  ;;  %v4170_v43 = vmul.f32 %v9386_v34, %v4107_v20  ;;  %v3937_v48 = vadd.f32 %v3917_v24, %v9328_v50  ;;  %v7551_v37 = vpop.f32.mrb[245].mxu0  ;;  %v4085_v58 = vpop.f32.mrb[242].mxu1 }
 0x4fe   : > { %v4182_v18 = vadd.f32 %v4181_v51, %v4180_v1  ;;  %v3920_v31 = vpop.f32.mrb[246].mxu0  ;;  %v7580_v54 = vpop.f32.mrb[243].mxu1 }
 0x4ff   : > { %v4183_v47 = vsel %vm3400_vm8, %v4170_v43, 0.0  ;;  %v4094_v22 = vadd.f32 %v4074_v62, %v3937_v48  ;;  %v3938_v4 = vadd.f32 %v3920_v31, %v9330_v41  ;;  %v7552_v5 = vpop.f32.mrb[247].mxu0  ;;  %v4158_v50 = vpop.permute.xlu0 %4157 }
 0x500   : > { %v4184_v30 = vadd.f32 %v4183_v47, %v4182_v18 }
 0x501   : > { %v4095_v21 = vadd.f32 %v4077_v46, %v3938_v4  ;;  %v4108_v49 = vadd.f32 %v9337_v59, %v4094_v22 }
 0x503   : > { %v4171_v12 = vmul.f32 %v4153_v8, %v4108_v49  ;;  %v4109_v14 = vadd.f32 %v9337_v59, %v4095_v21 }
 0x504   : > { %v3925_v29 = vpop.f32.mrb[248].mxu0 }
 0x505   : > { %v4185_v36 = vsel %vm3400_vm8, %v4171_v12, 0.0  ;;  %v4172_v39 = vmul.f32 %v4158_v50, %v4109_v14  ;;  %v3939_v16 = vadd.f32 %v3925_v29, %v9332_v7  ;;  %v7555_v15 = vpop.f32.mrb[249].mxu0 }
 0x506   : > { %v4186_v26 = vadd.f32 %v4185_v36, %v4184_v30  ;;  %v3928_v62 = vpop.f32.mrb[250].mxu0 }
 0x507   : > { %v4187_v41 = vsel %vm3400_vm8, %v4172_v39, 0.0  ;;  %v4096_v40 = vadd.f32 %v4082_v60, %v3939_v16  ;;  %v7556_v33 = vpop.f32.mrb[251].mxu0 }
 0x508   : > { %v4188_v3 = vadd.f32 %v4187_v41, %v4186_v26 }
 0x509   : > { %v4110_v10 = vadd.f32 %v9337_v59, %v4096_v40 }
 0x50b   : > { %v4173_v45 = vmul.f32 %v4163_v32, %v4110_v10 }
 0x50d   : > { %v4190_v46 = vsel %vm4189_vm0, %v4173_v45, 0.0 }
 0x50e   : > { %v4191_v61 = vadd.f32 %v4190_v46, %v4188_v3 }
 0x510   : > { %v4192_v28 = vrot.slane %v4191_v61, 4 }
 0x512   : > { %v4193_v2 = vadd.f32 %v4192_v28, %v4191_v61 }
 0x514   : > { %v4194_v42 = vrot.slane %v4193_v2, 2 }
 0x516   : > { %v4195_v7 = vadd.f32 %v4194_v42, %v4193_v2 }
 0x518   : > { %v4196_v9 = vrot.slane %v4195_v7, 1 }
 0x51a   : > { %v4197_v52 = vadd.f32 %v4196_v9, %v4195_v7 }
 0x51c   : > { %v4198_v35 = vmul.f32 0.015625, %v4197_v52 }
 0x51e   : > { %v4199_v1 = vsub.f32 %v9342_v38, %v4198_v35  ;;  %v4200_v25 = vsub.f32 %v9349_v11, %v4198_v35  ;;  %v4201_v13 = vsub.f32 %v9365_v6, %v4198_v35  ;;  %v4202_v59 = vsub.f32 %v9374_v55, %v4198_v35 }
 0x51f   : > { %v4203_v60 = vsub.f32 %v4106_v17, %v4198_v35  ;;  %v4204_v24 = vsub.f32 %v4107_v20, %v4198_v35  ;;  %v4205_v44 = vsub.f32 %v4108_v49, %v4198_v35  ;;  %v4206_v51 = vsub.f32 %v4109_v14, %v4198_v35 }
 0x520   : > { %v4207_v43 = vsub.f32 %v4110_v10, %v4198_v35  ;;  %v4208_v48 = vmul.f32 %v4199_v1, %v9339_v19  ;;  %v4209_v37 = vmul.f32 %v4200_v25, %v9346_v27  ;;  %v4210_v58 = vmul.f32 %v4201_v13, %v9367_v56 }
 0x521   : > { %v4211_v18 = vmul.f32 %v4202_v59, %v9369_v53  ;;  %v4212_v11 = vmul.f32 %v4203_v60, %v9383_v63  ;;  %v4213_v17 = vmul.f32 %v4204_v24, %v9386_v34  ;;  %v4214_v19 = vmul.f32 %v4205_v44, %v4153_v8 }
 0x522   : > { %v4217_v38 = vmul.f32 %v4208_v48, %v4208_v48  ;;  %v4218_v31 = vmul.f32 %v4209_v37, %v4209_v37  ;;  %v4219_v6 = vmul.f32 %v4210_v58, %v4210_v58  ;;  %v4215_v4 = vmul.f32 %v4206_v51, %v4158_v50 }
 0x523   : > { %v4220_v20 = vmul.f32 %v4211_v18, %v4211_v18  ;;  %v4221_v22 = vmul.f32 %v4212_v11, %v4212_v11  ;;  %v4222_v53 = vmul.f32 %v4213_v17, %v4213_v17  ;;  %v4216_v63 = vmul.f32 %v4207_v43, %v4163_v32 }
 0x524   : > { %v4226_v55 = vsel %vm3400_vm8, %v4217_v38, 0.0  ;;  %v4227_v54 = vsel %vm3400_vm8, %v4218_v31, 0.0  ;;  %v4229_v27 = vsel %vm3400_vm8, %v4219_v6, 0.0  ;;  %v4223_v21 = vmul.f32 %v4214_v19, %v4214_v19 }
 0x525   : > { %v4228_v47 = vadd.f32 %v4227_v54, %v4226_v55  ;;  %v4231_v5 = vsel %vm3400_vm8, %v4220_v20, 0.0  ;;  %v4233_v49 = vsel %vm3400_vm8, %v4221_v22, 0.0  ;;  %v4224_v34 = vmul.f32 %v4215_v4, %v4215_v4 }
 0x526   : > { %v4235_v14 = vsel %vm3400_vm8, %v4222_v53, 0.0  ;;  %v4225_v36 = vmul.f32 %v4216_v63, %v4216_v63  ;;  %v4237_v8 = vsel %vm3400_vm8, %v4223_v21, 0.0  ;;  %v4307_v22 = vsel %vm4305_vm2, 4294967295, %v8110_v23  ;;  %v8006_v53 = vld [vmem:[%s9811_s9 + $0x8] sm:$0x1f]   ;;  %v8010_v63 = vld [vmem:[%s9811_s9 + $0x30] sm:$0xff]  }
 0x527   : > { %v4230_v56 = vadd.f32 %v4229_v27, %v4228_v47  ;;  %v4239_v16 = vsel %vm3400_vm8, %v4224_v34, 0.0  ;;  %v8009_v21 = vld [vmem:[%s9811_s9 + $0x28] sm:$0x1f]   ;;  %vm5366_vm2 = vcmask 785408  }
 0x528   : > { %v4241_v15 = vsel %vm4189_vm0, %v4225_v36, 0.0  ;;  %vm5140_vm0 = vcmask 154624  }
 0x529   : > { %v4232_v30 = vadd.f32 %v4231_v5, %v4230_v56  ;;  %v4308_v56 = vsel %vm4306_vm4, %v4307_v22, 0  ;;  %v8007_v5 = vld [vmem:[%s9811_s9 + $0x18] sm:$0x1f]   ;;  %vm5378_vm4 = vmand %vm5144_vm14, %vm3477_vm13 }
 0x52a   : > { %v4632_v22 = vld [vmem:[#allocation3 + $0xc] sm:$0x1] }
 0x52b   : > { %v4234_v12 = vadd.f32 %v4233_v49, %v4232_v30  ;;  %v8008_v30 = vld [vmem:[%s9811_s9 + $0x20] sm:$0xff]   ;;  %v8011_v49 = vld [vmem:[%s9811_s9 + $0x38] sm:$0x1f]  }
 0x52d   : > { %v4236_v29 = vadd.f32 %v4235_v14, %v4234_v12 }
 0x52f   : > { %v4238_v39 = vadd.f32 %v4237_v8, %v4236_v29 }
 0x531   : > { %v4240_v50 = vadd.f32 %v4239_v16, %v4238_v39 }
 0x533   : > { %v4242_v26 = vadd.f32 %v4241_v15, %v4240_v50 }
 0x535   : > { %v4243_v62 = vrot.slane %v4242_v26, 4 }
 0x537   : > { %v4244_v41 = vadd.f32 %v4243_v62, %v4242_v26 }
 0x539   : > { %v4245_v40 = vrot.slane %v4244_v41, 2 }
 0x53b   : > { %v4246_v33 = vadd.f32 %v4245_v40, %v4244_v41  ;;  %v8012_v41 = vld [vmem:[%s9805_s3] sm:$0xff]   ;;  %v8013_v40 = vld [vmem:[%s9805_s3 + $0x8] sm:$0xff]  }
 0x53d   : > { %v4247_v3 = vrot.slane %v4246_v33, 1 }
 0x53f   : > { %v4248_v10 = vadd.f32 %v4247_v3, %v4246_v33 }
 0x541   : > { %v4249_v32 = vmul.f32 0.015625, %v4248_v10 }
 0x543   : > { %v4250_v45 = vadd.f32 1e-05, %v4249_v32 }
 0x545   : > { %8089 = vrsqrt.f32 %v4250_v45  ;;  %v8014_v45 = vld [vmem:[%s9805_s3 + $0x20] sm:$0xff]  }
 0x54f   : > { %v8090_v46 = vpop.eup %8089 }
 0x550   : > { %v4252_v61 = vmul.f32 %v8090_v46, %v4199_v1  ;;  %v4253_v28 = vmul.f32 %v8090_v46, %v4200_v25  ;;  %v4254_v2 = vmul.f32 %v8090_v46, %v4201_v13  ;;  %v4255_v42 = vmul.f32 %v8090_v46, %v4202_v59 }
 0x551   : > { %v4256_v7 = vmul.f32 %v8090_v46, %v4203_v60  ;;  %v4257_v9 = vmul.f32 %v8090_v46, %v4204_v24  ;;  %v4258_v52 = vmul.f32 %v8090_v46, %v4205_v44  ;;  %v4259_v35 = vmul.f32 %v8090_v46, %v4206_v51 }
 0x552   : > { %v4260_v48 = vmul.f32 %v8090_v46, %v4207_v43  ;;  %v4261_v37 = vmul.f32 0.2, %v4252_v61  ;;  %v4262_v58 = vmul.f32 0.2, %v4253_v28  ;;  %v4263_v18 = vmul.f32 0.2, %v4254_v2 }
 0x553   : > { %v4264_v38 = vmul.f32 0.2, %v4255_v42  ;;  %v4265_v31 = vmul.f32 0.2, %v4256_v7  ;;  %v4266_v11 = vmul.f32 0.2, %v4257_v9 }
 0x554   : > { %v4267_v6 = vmul.f32 0.2, %v4258_v52  ;;  %v4268_v55 = vmul.f32 0.2, %v4259_v35  ;;  %v4270_v17 = vmax.f32 %v4252_v61, %v4261_v37  ;;  %v4271_v20 = vmax.f32 %v4253_v28, %v4262_v58  ;;  %v8017_v37 = vld [vmem:[%s9805_s3 + $0x18] sm:$0xff]   ;;  %v8020_v58 = vld [vmem:[%s9805_s3 + $0x30] sm:$0xff]  }
 0x555   : > { %v4272_v54 = vmax.f32 %v4254_v2, %v4263_v18  ;;  %v4273_v1 = vmax.f32 %v4255_v42, %v4264_v38  ;;  %v4274_v25 = vmax.f32 %v4256_v7, %v4265_v31  ;;  %v4275_v13 = vmax.f32 %v4257_v9, %v4266_v11  ;;  %v8015_v9 = vld [vmem:[%s9805_s3 + $0x10] sm:$0xff]   ;;  %v9485_v18 = vld [vmem:[%s9805_s3 + $0x60] sm:$0xff]   ;;  %v8023_v38 = vld [vmem:[%s9805_s3 + $0x38] sm:$0xff]  }
 0x556   : > { %v4276_v59 = vmax.f32 %v4258_v52, %v4267_v6  ;;  %v4277_v60 = vmax.f32 %v4259_v35, %v4268_v55  ;;  %v4279_v24 = vpack.c.bf16 %v4271_v20, %v4270_v17  ;;  %v4269_v47 = vmul.f32 0.2, %v4260_v48  ;;  %v9494_v31 = vld [vmem:[%s9805_s3 + $0x40] sm:$0xff]   ;;  %v5066_v11 = vld [vmem:[%s9809_s7 + $0x8] sm:$0xff]  ;;  %v5067_v17 = vld [vmem:[%s9809_s7 + $0x10] sm:$0x7] }
 0x557   : > { %v4280_v44 = vpack.c.bf16 %v4273_v1, %v4272_v54  ;;  %v4281_v51 = vpack.c.bf16 %v4275_v13, %v4274_v25  ;;  %v5065_v6 = vld [vmem:[%s9809_s7] sm:$0xff]  ;;  %v8117_v55 = vmov 1  }
 0x558   : > { %v4282_v43 = vpack.c.bf16 %v4277_v60, %v4276_v59  ;;  %7581 = vmatprep.subr.bf16.mxu0 %v4279_v24  ;;  %7595 = vmatprep.subr.bf16.mxu1 %v4279_v24  ;;  %v4278_v19 = vmax.f32 %v4260_v48, %v4269_v47  ;;  %v8016_v48 = vld [vmem:[%s9805_s3 + $0x28] sm:$0xff]  }
 0x559   : > { %7582 = vmatpush3.bf16.msra.mxu0 %v4279_v24  ;;  %7596 = vmatpush3.bf16.msra.mxu1 %v4279_v24 }
 0x55a   : > { %7583 = vmatprep.subr.bf16.mxu0 %v4280_v44  ;;  %7597 = vmatprep.subr.bf16.mxu1 %v4280_v44  ;;  %v4283_v27 = vpack.c.bf16 %v4278_v19, %v4278_v19 }
 0x55b   : > { %7824 = vset.pattern.permute.xlu1 %v8117_v55  ;;  %7823 = vset.pattern.permute.xlu0 %v8117_v55 }
 0x55c   : > { %v4310_v4 = vand.u32 %v4308_v56, %v4283_v27 }
 0x55d   : > { %7584 = vmatpush3.bf16.msra.mxu0 %v4280_v44  ;;  %7598 = vmatpush3.bf16.msra.mxu1 %v4280_v44 }
 0x55e   : > { %7585 = vmatprep.subr.bf16.mxu0 %v4281_v51  ;;  %7599 = vmatprep.subr.bf16.mxu1 %v4281_v51 }
 0x561   : > { %7586 = vmatpush3.bf16.msra.mxu0 %v4281_v51  ;;  %7600 = vmatpush3.bf16.msra.mxu1 %v4281_v51 }
 0x562   : > { %7587 = vmatprep.subr.bf16.mxu0 %v4282_v43  ;;  %7601 = vmatprep.subr.bf16.mxu1 %v4282_v43 }
 0x565   : > { %7588 = vmatpush3.bf16.msra.mxu0 %v4282_v43  ;;  %7602 = vmatpush3.bf16.msra.mxu1 %v4282_v43 }
 0x566   : > { %7589 = vmatprep.subr.bf16.mxu0 %v4310_v4  ;;  %7603 = vmatprep.subr.bf16.mxu1 %v4310_v4 }
 0x569   : > { %7590 = vmatpush3.bf16.msra.mxu0 %v4310_v4  ;;  %7604 = vmatpush3.bf16.msra.mxu1 %v4310_v4 }
 0x56a   : > { %7609 = vmatprep.subr.bf16.mxu0 %v4279_v24  ;;  %7623 = vmatprep.subr.bf16.mxu1 %v4279_v24 }
 0x56c   : > { %7592 = vmatmul.mubr.msk.bf16.vlgmr.msra.gmra.mrb[252].mxu0 %vm4298_vm15, %v8006_v53  ;;  %7606 = vmatmul.mubr.msk.bf16.vlgmr.msra.gmra.mrb[244].mxu1 %vm4298_vm15, %v8007_v5 }
 0x56d   : > { %7610 = vmatpush3.bf16.msra.mxu0 %v4279_v24  ;;  %7624 = vmatpush3.bf16.msra.mxu1 %v4279_v24 }
 0x56e   : > { %7611 = vmatprep.subr.bf16.mxu0 %v4280_v44  ;;  %7625 = vmatprep.subr.bf16.mxu1 %v4280_v44 }
 0x56f   : > { %7619 = vmatprep.mubr.msk.bf16.mxu0 %vm4298_vm15, %v8008_v30  ;;  %7633 = vmatprep.mubr.msk.bf16.mxu1 %vm4298_vm15, %v8010_v63 }
 0x571   : > { %7612 = vmatpush3.bf16.msra.mxu0 %v4280_v44  ;;  %7626 = vmatpush3.bf16.msra.mxu1 %v4280_v44 }
 0x572   : > { %7613 = vmatprep.subr.bf16.mxu0 %v4281_v51  ;;  %7627 = vmatprep.subr.bf16.mxu1 %v4281_v51 }
 0x575   : > { %7614 = vmatpush3.bf16.msra.mxu0 %v4281_v51  ;;  %7628 = vmatpush3.bf16.msra.mxu1 %v4281_v51 }
 0x576   : > { %7615 = vmatprep.subr.bf16.mxu0 %v4282_v43  ;;  %7629 = vmatprep.subr.bf16.mxu1 %v4282_v43 }
 0x579   : > { %7616 = vmatpush3.bf16.msra.mxu0 %v4282_v43  ;;  %7630 = vmatpush3.bf16.msra.mxu1 %v4282_v43 }
 0x57a   : > { %7617 = vmatprep.subr.bf16.mxu0 %v4310_v4  ;;  %7631 = vmatprep.subr.bf16.mxu1 %v4310_v4 }
 0x57d   : > { %7618 = vmatpush3.bf16.msra.mxu0 %v4310_v4  ;;  %7632 = vmatpush3.bf16.msra.mxu1 %v4310_v4 }
 0x57e   : > { %7649 = vmatprep.subr.bf16.mxu1 %v8012_v41  ;;  %7637 = vmatprep.subr.bf16.mxu0 %v8014_v45 }
 0x580   : > { %7620 = vmatmul.mubr.msk.bf16.vlgmr.msra.gmra.mrb[0].mxu0 %vm4298_vm15, %v8009_v21  ;;  %7634 = vmatmul.mubr.msk.bf16.vlgmr.msra.gmra.mrb[248].mxu1 %vm4298_vm15, %v8011_v49  ;;  %vm5145_vm15 = vcmask 1041408  }
 0x581   : > { %7650 = vmatpush3.bf16.msra.mxu1 %v8012_v41  ;;  %7638 = vmatpush3.bf16.msra.mxu0 %v8014_v45 }
 0x582   : > { %7651 = vmatprep.subr.bf16.mxu1 %v8013_v40  ;;  %7639 = vmatprep.subr.bf16.mxu0 %v8016_v48 }
 0x585   : > { %7652 = vmatpush3.bf16.msra.mxu1 %v8013_v40  ;;  %7640 = vmatpush3.bf16.msra.mxu0 %v8016_v48 }
 0x586   : > { %7653 = vmatprep.subr.bf16.mxu1 %v8015_v9  ;;  %7641 = vmatprep.subr.bf16.mxu0 %v8020_v58 }
 0x589   : > { %7654 = vmatpush3.bf16.msra.mxu1 %v8015_v9  ;;  %7642 = vmatpush3.bf16.msra.mxu0 %v8020_v58  ;;  %v8032_v58 = vld [vmem:[%s9805_s3 + $0x50] sm:$0xff]  }
 0x58a   : > { %7655 = vmatprep.subr.bf16.mxu1 %v8017_v37  ;;  %7643 = vmatprep.subr.bf16.mxu0 %v8023_v38 }
 0x58d   : > { %7656 = vmatpush3.bf16.msra.mxu1 %v8017_v37  ;;  %7644 = vmatpush3.bf16.msra.mxu0 %v8023_v38  ;;  %v8033_v38 = vld [vmem:[%s9805_s3 + $0x58] sm:$0xff]  }
 0x58e   : > { %7673 = vmatprep.subr.bf16.mxu1 %v9485_v18  ;;  %7661 = vmatprep.subr.bf16.mxu0 %v9494_v31 }
 0x63f   : > { %v7607_v12 = vpop.f32.mrb[244].mxu1  ;;  %v9445_v34 = vpop.f32.mrb[252].mxu0 }
 0x640   : > { %v4418_v14 = vpop.f32.mrb[245].mxu1  ;;  %v9447_v29 = vpop.f32.mrb[253].mxu0 }
 0x641   : > { %v7608_v36 = vpop.f32.mrb[246].mxu1  ;;  %v9449_v8 = vpop.f32.mrb[254].mxu0 }
 0x642   : > { %v4434_v39 = vpack.c.bf16 %v7608_v36, %v7607_v12  ;;  %v4421_v16 = vpop.f32.mrb[247].mxu1  ;;  %v4362_v50 = vpack.c.bf16 %v9449_v8, %v9445_v34  ;;  %v9453_v15 = vpop.f32.mrb[255].mxu0  ;;  %v8024_v12 = vld [vmem:[%s9805_s3 + $0x68] sm:$0xff]  }
 0x643   : > { %v4433_v26 = vpack.c.bf16 %v4421_v16, %v4418_v14  ;;  %v4361_v62 = vpack.c.bf16 %v9453_v15, %v9447_v29 }
 0x644   : > { %4583 = vrot.lane.b32.xlu0 %v4434_v39, %s8112_s15 }
 0x648   : > { %4581 = vrot.lane.b32.xlu0 %v4433_v26, %s8112_s15 }
 0x653   : > { %v7621_v33 = vpop.f32.mrb[0].mxu0  ;;  %v7635_v3 = vpop.f32.mrb[248].mxu1 }
 0x654   : > { %v4490_v10 = vpop.f32.mrb[1].mxu0  ;;  %v4562_v32 = vpop.f32.mrb[249].mxu1 }
 0x655   : > { %v7622_v46 = vpop.f32.mrb[2].mxu0  ;;  %v7636_v61 = vpop.f32.mrb[250].mxu1 }
 0x656   : > { %v4506_v28 = vpack.c.bf16 %v7622_v46, %v7621_v33  ;;  %v4493_v2 = vpop.f32.mrb[3].mxu0  ;;  %v4578_v42 = vpack.c.bf16 %v7636_v61, %v7635_v3  ;;  %v4565_v7 = vpop.f32.mrb[251].mxu1 }
 0x657   : > { %v4505_v52 = vpack.c.bf16 %v4493_v2, %v4490_v10  ;;  %v4577_v35 = vpack.c.bf16 %v4565_v7, %v4562_v32  ;;  %v8029_v32 = vld [vmem:[%s9805_s3 + $0x70] sm:$0xff]   ;;  %v8030_v7 = vld [vmem:[%s9805_s3 + $0x48] sm:$0xff]  }
 0x658   : > { %4589 = vrot.lane.b32.xlu0 %v4506_v28, %s8115_s30 }
 0x659   : > { %4587 = vrot.lane.b32.xlu1 %v4505_v52, %s8115_s30 }
 0x65c   : > { %5070 = vperm.xlu0 %7823, %v5065_v6  }
 0x65d   : > { %4593 = vrot.lane.b32.xlu1 %v4577_v35, %s8116_s21  ;;  %v8031_v35 = vld [vmem:[%s9805_s3 + $0x78] sm:$0xff]  }
 0x660   : > { %7832 = vset.pattern.permute.xlu0 %v8114_v57 }
 0x661   : > { %4595 = vrot.lane.b32.xlu1 %v4578_v42, %s8116_s21 }
 0x665   : > { %5075 = vperm.xlu1 %7824, %v5066_v11  }
 0x669   : > { %5080 = vperm.xlu1 %7824, %v5067_v17  }
 0x6b6   : > { %v4584_v20 = vpop.permute.xlu0 %4583 }
 0x6b7   : > { %v4602_v43 = vsel %vm3400_vm8, %v4362_v50, %v4584_v20 }
 0x6ba   : > { %v4582_v54 = vpop.permute.xlu0 %4581 }
 0x6bb   : > { %v4599_v25 = vsel %vm3400_vm8, %v4361_v62, %v4582_v54  ;;  %vm4972_vm8 = vcmask 1044480  }
 0x6ca   : > { %v4590_v60 = vpop.permute.xlu0 %4589 }
 0x6cb   : > { %v4588_v1 = vpop.permute.xlu1 %4587  ;;  %v4606_v47 = vsel %vm3574_vm11, %v4602_v43, %v4590_v60 }
 0x6cc   : > { %v4604_v13 = vsel %vm3574_vm11, %v4599_v25, %v4588_v1 }
 0x6cf   : > { %v4594_v59 = vpop.permute.xlu1 %4593 }
 0x6d0   : > { %v4609_v24 = vsel %vm4607_vm5, %v4604_v13, %v4594_v59 }
 0x6d1   : > { %v6513_v44 = vcombine.low %v4609_v24, %v4609_v24  ;;  %v6514_v51 = vcombine.high %v4609_v24, %v4609_v24 }
 0x6d3   : > { %4627 = vst.msk [vmem:[#allocation3] sm:$0xf] %vm4626_vm6, %v6513_v44  ;;  %4628 = vst.msk [vmem:[#allocation3 + $0x4] sm:$0xf] %vm4626_vm6, %v6514_v51  ;;  %v4596_v19 = vpop.permute.xlu1 %4595 }
 0x6d4   : > { %v4611_v27 = vsel %vm4607_vm5, %v4606_v47, %v4596_v19 }
 0x6d5   : > { %v6515_v56 = vcombine.low %v4611_v27, %v4611_v27  ;;  %v6516_v4 = vcombine.high %v4611_v27, %v4611_v27 }
 0x6d7   : > { %4629 = vst.msk [vmem:[#allocation3 + $0x8] sm:$0xf] %vm4626_vm6, %v6515_v56  ;;  %v4633_v53 = vsel %vm4631_vm9, %v6516_v4, %v4632_v22 }
 0x6d8   : > { %4634 = vst [vmem:[#allocation3 + $0xc] sm:$0x1] %v4633_v53 }
 0x6da   : > { %v4635_v5 = vld [vmem:[#allocation3] sm:$0xf]  ;;  %v4636_v30 = vld [vmem:[#allocation3 + $0x4] sm:$0xf] }
 0x6db   : > { %v4833_v63 = vld [vmem:[#allocation3] sm:$0xc]  ;;  %v6525_v21 = vcombine.low %v4635_v5, %v4636_v30  ;;  %v6571_v5 = vld [vmem:[%s9808_s6 + $0x2] ss:$0 sm:$0xff] }
 0x6dc   : > { %v6547_v49 = vcombine.low %v4833_v63, %v4636_v30  ;;  %v8025_v34 = vld [vmem:[#allocation3] sm:$0xf8]  }
 0x6dd   : > { %7657 = vmatprep.mubr.msk.bf16.mxu1 %vm4702_vm10, %v6525_v21  ;;  %v4666_v14 = vshll.u32 %v6525_v21, 16  ;;  %v4664_v16 = vshrl.u32 %v6525_v21, 16  ;;  %v4973_v26 = vrot.slane %v8025_v34, 3  ;;  %v5071_v21 = vpop.permute.xlu0 %5070 }
 0x6de   : > { %v4852_v29 = vshrl.u32 %v6547_v49, 16  ;;  %v8022_v36 = vld [vmem:[#allocation3 + $0x8] ss:$0 sps:$4 sm:$0x33]   ;;  %v4855_v8 = vshll.u32 %v6547_v49, 16 }
 0x6df   : > { %v8026_v39 = vld [vmem:[#allocation3 + $0x8] sm:$0x1f]   ;;  %7658 = vmatmul.mubr.msk.bf16.vlgmr.msra.gmra.mrb[252].mxu1 %vm4702_vm10, %v8022_v36  ;;  %v4668_v50 = vrot.slane %v4666_v14, 1  ;;  %v4671_v15 = vshll.u32 %v8022_v36, 16  ;;  %v4675_v3 = vshrl.u32 %v8022_v36, 16 }
 0x6e0   : > { %7674 = vmatpush3.bf16.msra.mxu1 %v9485_v18  ;;  %v4974_v62 = vrot.slane %v8026_v39, 3  ;;  %v8028_v41 = vld [vmem:[#allocation3 + $0x8] ss:$0 sps:$4 sm:$0xff]   ;;  %v4854_v10 = vrot.slane %v4852_v29, 2  ;;  %v4857_v46 = vrot.slane %v4855_v8, 3 }
 0x6e1   : > { %7675 = vmatprep.subr.bf16.mxu1 %v8024_v12  ;;  %v4669_v40 = vor.u32 %v4668_v50, %v4664_v16  ;;  %v4673_v33 = vrot.slane %v4671_v15, 1  ;;  %v4860_v61 = vshrl.u32 %v8028_v41, 16  ;;  %v4863_v28 = vshll.u32 %v8028_v41, 16 }
 0x6e2   : > { %v4975_v45 = vsel %vm4972_vm8, %v4973_v26, %v4974_v62  ;;  %v4858_v48 = vor.u32 %v4857_v46, %v4854_v10 }
 0x6e3   : > { %7681 = vmatprep.mubr.msk.bf16.mxu1 %vm4702_vm10, %v4975_v45  ;;  %v4674_v2 = vsel %vm508_vm3, %v4669_v40, %v4673_v33  ;;  %v4677_v42 = vor.u32 %v4675_v3, %v4673_v33  ;;  %v4862_v9 = vrot.slane %v4860_v61, 2  ;;  %v4865_v52 = vrot.slane %v4863_v28, 3 }
 0x6e4   : > { %7676 = vmatpush3.bf16.msra.mxu1 %v8024_v12  ;;  %7645 = vmatprep.mubr.msk.bf16.mxu0 %vm4702_vm10, %v4674_v2  ;;  %v5076_v22 = vpop.permute.xlu1 %5075  ;;  %vm5089_vm3 = vcmask 256000  }
 0x6e5   : > { %7646 = vmatmul.mubr.msk.bf16.vlgmr.msra.gmra.mrb[4].mxu0 %vm4702_vm10, %v4677_v42  ;;  %7677 = vmatprep.subr.bf16.mxu1 %v8029_v32  ;;  %v4866_v37 = vor.u32 %v4865_v52, %v4862_v9 }
 0x6e6   : > { %7662 = vmatpush3.bf16.msra.mxu0 %v9494_v31 }
 0x6e7   : > { %7663 = vmatprep.subr.bf16.mxu0 %v8030_v7  ;;  %v4867_v18 = vsel %vm4850_vm12, %v4858_v48, %v4866_v37 }
 0x6e8   : > { %7678 = vmatpush3.bf16.msra.mxu1 %v8029_v32  ;;  %7669 = vmatprep.mubr.msk.bf16.mxu0 %vm4702_vm10, %v4867_v18  ;;  %v5081_v14 = vpop.permute.xlu1 %5080 }
 0x6e9   : > { %7679 = vmatprep.subr.bf16.mxu1 %v8031_v35 }
 0x6ea   : > { %7664 = vmatpush3.bf16.msra.mxu0 %v8030_v7 }
 0x6eb   : > { %7665 = vmatprep.subr.bf16.mxu0 %v8032_v58 }
 0x6ec   : > { %7680 = vmatpush3.bf16.msra.mxu1 %v8031_v35 }
 0x6ed   : > { %7701 = vmatprep.subr.bf16.mxu1 %v8108_v0 }
 0x6ee   : > { %7666 = vmatpush3.bf16.msra.mxu0 %v8032_v58 }
 0x6ef   : > { %7682 = vmatmul.mubr.msk.bf16.vlgmr.msra.gmra.mrb[0].mxu1 %vm4702_vm10, %v4974_v62  ;;  %7667 = vmatprep.subr.bf16.mxu0 %v8033_v38 }
 0x6f0   : > { %7705 = vmatprep.mubr.msk.bf16.mxu1 %vm8109_vm1, %v8108_v0 }
 0x6f2   : > { %7668 = vmatpush3.bf16.msra.mxu0 %v8033_v38 }
 0x6f3   : > { %7685 = vmatprep.subr.bf16.mxu0 %v8108_v0 }
 0x6f5   : > { %7670 = vmatmul.mubr.msk.bf16.vlgmr.msra.gmra.mrb[8].mxu0 %vm4702_vm10, %v4866_v37 }
 0x6f6   : > { %7689 = vmatprep.mubr.msk.bf16.mxu0 %vm8109_vm1, %v8108_v0 }
 0x7b2   : > { %v7659_v31 = vpop.f32.mrb[252].mxu1 }
 0x7b3   : > { %v4819_v11 = vpop.f32.mrb[253].mxu1 }
 0x7b4   : > { %v7660_v6 = vpop.f32.mrb[254].mxu1 }
 0x7b5   : > { %v4822_v55 = vpop.f32.mrb[255].mxu1 }
 0x7b8   : > { %v7647_v17 = vpop.f32.mrb[4].mxu0 }
 0x7b9   : > { %v4828_v20 = vadd.f32 %v7659_v31, %v7647_v17  ;;  %v4743_v54 = vpop.f32.mrb[5].mxu0 }
 0x7ba   : > { %v4820_v1 = vadd.f32 %v4819_v11, %v4743_v54  ;;  %v7648_v25 = vpop.f32.mrb[6].mxu0 }
 0x7bb   : > { %v4746_v13 = vpop.f32.mrb[7].mxu0 }
 0x7bc   : > { %v4823_v59 = vadd.f32 %v4822_v55, %v4746_v13 }
 0x7c2   : > { %v7683_v60 = vpop.f32.mrb[0].mxu1 }
 0x7c3   : > { %v5040_v24 = vpop.f32.mrb[1].mxu1 }
 0x7c4   : > { %v7684_v44 = vpop.f32.mrb[2].mxu1 }
 0x7c5   : > { %v5043_v51 = vpop.f32.mrb[3].mxu1 }
 0x7c8   : > { %v7671_v43 = vpop.f32.mrb[8].mxu0 }
 0x7c9   : > { %v4948_v47 = vadd.f32 %v7671_v43, %v4828_v20  ;;  %v4932_v19 = vpop.f32.mrb[9].mxu0 }
 0x7ca   : > { %v4946_v27 = vadd.f32 %v4932_v19, %v4820_v1  ;;  %v7672_v56 = vpop.f32.mrb[10].mxu0 }
 0x7cb   : > { %v5056_v4 = vadd.f32 %v7683_v60, %v4948_v47  ;;  %v4935_v53 = vpop.f32.mrb[11].mxu0 }
 0x7cc   : > { %v5054_v30 = vadd.f32 %v5040_v24, %v4946_v27  ;;  %v4947_v63 = vadd.f32 %v4935_v53, %v4823_v59 }
 0x7cd   : > { %v5064_v12 = vadd.f32 %v6571_v5, %v5056_v4 }
 0x7ce   : > { %v5055_v49 = vadd.f32 %v5043_v51, %v4947_v63  ;;  %v5062_v34 = vadd.f32 %v6571_v5, %v5054_v30  ;;  %v8036_v30 = vld [vmem:[%s9812_s10 + $0x10] sm:$0x1f]   ;;  %v8037_v63 = vld [vmem:[%s9812_s10 + $0x18] sm:$0x1f]  }
 0x7cf   : > { %v5085_v39 = vmul.f32 %v5081_v14, %v5064_v12 }
 0x7d0   : > { %v5063_v29 = vadd.f32 %v6571_v5, %v5055_v49  ;;  %v5083_v36 = vmul.f32 %v5071_v21, %v5062_v34  ;;  %v8034_v5 = vld [vmem:[%s9812_s10] sm:$0x1f]  }
 0x7d1   : > { %v5090_v26 = vsel %vm5089_vm3, %v5085_v39, 0.0  ;;  %v8040_v49 = vld [vmem:[%s9806_s4 + $0x40] sm:$0xff]  }
 0x7d2   : > { %v5084_v8 = vmul.f32 %v5076_v22, %v5063_v29  ;;  %v5086_v16 = vsel %vm3574_vm11, %v5083_v36, 0.0  ;;  %v8043_v36 = vld [vmem:[%s9806_s4 + $0x18] sm:$0xff]  }
 0x7d4   : > { %v5087_v50 = vsel %vm3574_vm11, %v5084_v8, 0.0  ;;  %v8045_v8 = vld [vmem:[%s9806_s4 + $0x20] sm:$0xff]  }
 0x7d5   : > { %v5088_v15 = vadd.f32 %v5087_v50, %v5086_v16 }
 0x7d7   : > { %v5091_v62 = vadd.f32 %v5090_v26, %v5088_v15  ;;  %v8046_v26 = vld [vmem:[%s9806_s4 + $0x58] sm:$0xff]  }
 0x7d9   : > { %v5092_v41 = vrot.slane %v5091_v62, 4 }
 0x7db   : > { %v5093_v40 = vadd.f32 %v5092_v41, %v5091_v62  ;;  %v8047_v62 = vld [vmem:[%s9806_s4 + $0x28] sm:$0xff]  }
 0x7dd   : > { %v5094_v33 = vrot.slane %v5093_v40, 2 }
 0x7df   : > { %v5095_v3 = vadd.f32 %v5094_v33, %v5093_v40 }
 0x7e1   : > { %v5096_v10 = vrot.slane %v5095_v3, 1 }
 0x7e3   : > { %v5097_v32 = vadd.f32 %v5096_v10, %v5095_v3 }
 0x7e5   : > { %v5098_v45 = vmul.f32 0.0625, %v5097_v32 }
 0x7e7   : > { %v5099_v46 = vsub.f32 %v5062_v34, %v5098_v45  ;;  %v5100_v61 = vsub.f32 %v5063_v29, %v5098_v45  ;;  %v5101_v28 = vsub.f32 %v5064_v12, %v5098_v45  ;;  %v8039_v12 = vld [vmem:[%s9806_s4 + $0x8] sm:$0xff]   ;;  %v8044_v29 = vld [vmem:[%s9806_s4 + $0x50] sm:$0xff]  }
 0x7e8   : > { %v8042_v34 = vld [vmem:[%s9806_s4 + $0x48] sm:$0xff]  }
 0x7e9   : > { %v5102_v2 = vmul.f32 %v5099_v46, %v5071_v21  ;;  %v5103_v42 = vmul.f32 %v5100_v61, %v5076_v22  ;;  %v5104_v7 = vmul.f32 %v5101_v28, %v5081_v14  ;;  %v5146_v22 = vsel %vm5144_vm14, 4294967295, %v8110_v23  ;;  %v8035_v23 = vld [vmem:[%s9812_s10 + $0x8] sm:$0x1f]   ;;  %v8038_v21 = vld [vmem:[%s9806_s4] sm:$0xff]   ;;  %v8041_v14 = vld [vmem:[%s9806_s4 + $0x10] sm:$0xff]  }
 0x7ea   : > { %v5147_v4 = vsel %vm5145_vm15, %v5146_v22, 0 }
 0x7eb   : > { %v5105_v9 = vmul.f32 %v5102_v2, %v5102_v2  ;;  %v5106_v52 = vmul.f32 %v5103_v42, %v5103_v42  ;;  %v5107_v35 = vmul.f32 %v5104_v7, %v5104_v7  ;;  %v8049_v42 = vld [vmem:[%s9806_s4 + $0x60] sm:$0xff]   ;;  %v8050_v7 = vld [vmem:[%s9806_s4 + $0x30] sm:$0xff]  }
 0x7ed   : > { %v5108_v48 = vsel %vm3574_vm11, %v5105_v9, 0.0  ;;  %v5109_v37 = vsel %vm3574_vm11, %v5106_v52, 0.0  ;;  %v5111_v18 = vsel %vm5089_vm3, %v5107_v35, 0.0  ;;  %v8051_v9 = vld [vmem:[%s9806_s4 + $0x68] sm:$0xff]   ;;  %v8052_v52 = vld [vmem:[%s9806_s4 + $0x38] sm:$0xff]  }
 0x7ee   : > { %v5110_v58 = vadd.f32 %v5109_v37, %v5108_v48 }
 0x7f0   : > { %v5112_v38 = vadd.f32 %v5111_v18, %v5110_v58  ;;  %v8053_v58 = vld [vmem:[%s9806_s4 + $0x70] sm:$0xff]  }
 0x7f2   : > { %v5113_v31 = vrot.slane %v5112_v38, 4 }
 0x7f4   : > { %v5114_v11 = vadd.f32 %v5113_v31, %v5112_v38  ;;  %v8056_v31 = vld [vmem:[%s9806_s4 + $0x78] sm:$0xff]  }
 0x7f6   : > { %v5115_v6 = vrot.slane %v5114_v11, 2 }
 0x7f8   : > { %v5116_v55 = vadd.f32 %v5115_v6, %v5114_v11  ;;  %v5843_v11 = vld [vmem:[%s9809_s7] sm:$0x1f]  ;;  %v8120_v6 = vmov 2  }
 0x7f9   : > { %7825 = vset.pattern.permute.xlu1 %v8120_v6 }
 0x7fa   : > { %v5117_v17 = vrot.slane %v5116_v55, 1 }
 0x7fc   : > { %v5118_v20 = vadd.f32 %v5117_v17, %v5116_v55 }
 0x7fe   : > { %v5119_v54 = vmul.f32 0.0625, %v5118_v20 }
 0x800   : > { %v5120_v1 = vadd.f32 1e-05, %v5119_v54 }
 0x802   : > { %8091 = vrsqrt.f32 %v5120_v1 }
 0x80c   : > { %v8092_v25 = vpop.eup %8091 }
 0x80d   : > { %v5122_v13 = vmul.f32 %v8092_v25, %v5099_v46  ;;  %v5123_v59 = vmul.f32 %v8092_v25, %v5100_v61  ;;  %v5124_v60 = vmul.f32 %v8092_v25, %v5101_v28  ;;  %v5379_v25 = vld [vmem:[#allocation4 + $0x4] sm:$0x1] }
 0x80f   : > { %v5125_v24 = vmul.f32 0.2, %v5122_v13  ;;  %v5126_v44 = vmul.f32 0.2, %v5123_v59  ;;  %v5127_v51 = vmul.f32 0.2, %v5124_v60 }
 0x811   : > { %v5128_v43 = vmax.f32 %v5122_v13, %v5125_v24  ;;  %v5129_v47 = vmax.f32 %v5123_v59, %v5126_v44  ;;  %v5130_v19 = vmax.f32 %v5124_v60, %v5127_v51 }
 0x813   : > { %v5131_v27 = vpack.c.bf16 %v5129_v47, %v5128_v43  ;;  %v5132_v56 = vpack.c.bf16 %v5130_v19, %v5130_v19  ;;  %v8057_v43 = vld [vmem:[%s9806_s4 + $0xc8] sm:$0xff]  }
 0x815   : > { %7686 = vmatpush3.bf16.msra.mxu0 %v5131_v27  ;;  %7702 = vmatpush3.bf16.msra.mxu1 %v5131_v27  ;;  %v5149_v53 = vand.u32 %v5147_v4, %v5132_v56  ;;  %v8059_v56 = vld [vmem:[%s9806_s4 + $0xd0] sm:$0xff]  }
 0x816   : > { %7687 = vmatprep.subr.bf16.mxu0 %v8108_v0  ;;  %7703 = vmatprep.subr.bf16.mxu1 %v8108_v0 }
 0x819   : > { %7688 = vmatpush3.bf16.msra.mxu0 %v5149_v53  ;;  %7704 = vmatpush3.bf16.msra.mxu1 %v5149_v53 }
 0x81a   : > { %7693 = vmatprep.subr.bf16.mxu0 %v8108_v0  ;;  %7717 = vmatprep.subr.bf16.mxu1 %v8108_v0 }
 0x81c   : > { %7690 = vmatmul.mubr.msk.bf16.vlgmr.msra.gmra.mrb[12].mxu0 %vm5140_vm0, %v8034_v5  ;;  %7706 = vmatmul.mubr.msk.bf16.vlgmr.msra.gmra.mrb[4].mxu1 %vm5140_vm0, %v8036_v30  ;;  %v8061_v5 = vld [vmem:[%s9806_s4 + $0xd8] sm:$0xff]   ;;  %v8062_v30 = vld [vmem:[%s9806_s4 + $0x90] sm:$0xff]  }
 0x81d   : > { %7694 = vmatpush3.bf16.msra.mxu0 %v5131_v27  ;;  %7697 = vmatprep.mubr.msk.bf16.mxu0 %vm8109_vm1, %v8108_v0 }
 0x81e   : > { %7695 = vmatprep.subr.bf16.mxu0 %v8108_v0  ;;  %7733 = vmatprep.mubr.msk.bf16.mxu1 %vm8109_vm1, %v8108_v0 }
 0x81f   : > { %7718 = vmatpush3.bf16.msra.mxu1 %v8040_v49  ;;  %v8066_v49 = vld [vmem:[%s9806_s4 + $0xa0] sm:$0xff]  }
 0x820   : > { %7719 = vmatprep.subr.bf16.mxu1 %v8108_v0 }
 0x821   : > { %7696 = vmatpush3.bf16.msra.mxu0 %v5149_v53 }
 0x822   : > { %7709 = vmatprep.subr.bf16.mxu0 %v8108_v0 }
 0x823   : > { %7720 = vmatpush3.bf16.msra.mxu1 %v8042_v34  ;;  %v8068_v34 = vld [vmem:[%s9806_s4 + $0xa8] sm:$0xff]  }
 0x824   : > { %7698 = vmatmul.mubr.msk.bf16.vlgmr.msra.gmra.mrb[16].mxu0 %vm5140_vm0, %v8035_v23  ;;  %7721 = vmatprep.subr.bf16.mxu1 %v8108_v0  ;;  %v8063_v23 = vld [vmem:[%s9806_s4 + $0xe0] sm:$0xff]  }
 0x825   : > { %7710 = vmatpush3.bf16.msra.mxu0 %v5131_v27  ;;  %7713 = vmatprep.mubr.msk.bf16.mxu0 %vm8109_vm1, %v8108_v0  ;;  %v8058_v27 = vld [vmem:[%s9806_s4 + $0x80] sm:$0xff]  }
 0x826   : > { %7711 = vmatprep.subr.bf16.mxu0 %v8108_v0 }
 0x827   : > { %7722 = vmatpush3.bf16.msra.mxu1 %v8044_v29 }
 0x828   : > { %7723 = vmatprep.subr.bf16.mxu1 %v8108_v0 }
 0x829   : > { %7712 = vmatpush3.bf16.msra.mxu0 %v5149_v53  ;;  %v8060_v53 = vld [vmem:[%s9806_s4 + $0x88] sm:$0xff]  }
 0x82a   : > { %7737 = vmatprep.subr.bf16.mxu0 %v8108_v0 }
 0x82b   : > { %7724 = vmatpush3.bf16.msra.mxu1 %v8046_v26 }
 0x82c   : > { %7714 = vmatmul.mubr.msk.bf16.vlgmr.msra.gmra.mrb[20].mxu0 %vm5140_vm0, %v8037_v63  ;;  %7725 = vmatprep.subr.bf16.mxu1 %v8108_v0  ;;  %v8064_v63 = vld [vmem:[%s9806_s4 + $0x98] sm:$0xff]  }
 0x82d   : > { %7753 = vmatprep.mubr.msk.bf16.mxu0 %vm8109_vm1, %v8108_v0  ;;  %7738 = vmatpush3.bf16.msra.mxu0 %v8038_v21  ;;  %v8065_v21 = vld [vmem:[%s9806_s4 + $0xe8] sm:$0xff]  }
 0x82e   : > { %7739 = vmatprep.subr.bf16.mxu0 %v8108_v0 }
 0x82f   : > { %7726 = vmatpush3.bf16.msra.mxu1 %v8049_v42  ;;  %v8084_v42 = vld [vmem:[%s9807_s5 + $0x28] sm:$0xff]  }
 0x830   : > { %7727 = vmatprep.subr.bf16.mxu1 %v8108_v0 }
 0x831   : > { %7740 = vmatpush3.bf16.msra.mxu0 %v8039_v12  ;;  %v8067_v12 = vld [vmem:[%s9806_s4 + $0xf0] sm:$0xff]  }
 0x832   : > { %7741 = vmatprep.subr.bf16.mxu0 %v8108_v0 }
 0x833   : > { %7728 = vmatpush3.bf16.msra.mxu1 %v8051_v9  ;;  %v8085_v9 = vld [vmem:[%s9807_s5 + $0x70] sm:$0xff]  }
 0x834   : > { %7729 = vmatprep.subr.bf16.mxu1 %v8108_v0 }
 0x835   : > { %7742 = vmatpush3.bf16.msra.mxu0 %v8041_v14  ;;  %v8069_v14 = vld [vmem:[%s9806_s4 + $0xf8] sm:$0xff]  }
 0x836   : > { %7743 = vmatprep.subr.bf16.mxu0 %v8108_v0 }
 0x837   : > { %7730 = vmatpush3.bf16.msra.mxu1 %v8053_v58 }
 0x838   : > { %7731 = vmatprep.subr.bf16.mxu1 %v8108_v0 }
 0x839   : > { %7744 = vmatpush3.bf16.msra.mxu0 %v8043_v36 }
 0x83a   : > { %7745 = vmatprep.subr.bf16.mxu0 %v8108_v0 }
 0x83b   : > { %7732 = vmatpush3.bf16.msra.mxu1 %v8056_v31 }
 0x83c   : > { %7757 = vmatprep.subr.bf16.mxu1 %v8108_v0 }
 0x83d   : > { %7746 = vmatpush3.bf16.msra.mxu0 %v8045_v8  ;;  %v8071_v8 = vld [vmem:[%s9806_s4 + $0xb0] sm:$0xff]  }
 0x83e   : > { %7747 = vmatprep.subr.bf16.mxu0 %v8108_v0 }
 0x841   : > { %7748 = vmatpush3.bf16.msra.mxu0 %v8047_v62 }
 0x842   : > { %7749 = vmatprep.subr.bf16.mxu0 %v8108_v0 }
 0x845   : > { %7750 = vmatpush3.bf16.msra.mxu0 %v8050_v7 }
 0x846   : > { %7751 = vmatprep.subr.bf16.mxu0 %v8108_v0 }
 0x849   : > { %7752 = vmatpush3.bf16.msra.mxu0 %v8052_v52 }
 0x84a   : > { %7777 = vmatprep.subr.bf16.mxu0 %v8108_v0 }
 0x8ef   : > { %v5185_v39 = vpop.f32.mrb[12].mxu0  ;;  %v5291_v16 = vpop.f32.mrb[4].mxu1 }
 0x8f0   : > { %v7691_v50 = vpop.f32.mrb[13].mxu0  ;;  %v7707_v15 = vpop.f32.mrb[5].mxu1 }
 0x8f1   : > { %v5188_v41 = vpop.f32.mrb[14].mxu0  ;;  %v5294_v40 = vpop.f32.mrb[6].mxu1  ;;  %v8072_v15 = vld [vmem:[%s9806_s4 + $0xb8] sm:$0xff]  }
 0x8f2   : > { %v5192_v33 = vpack.c.bf16 %v5188_v41, %v5185_v39  ;;  %v7692_v3 = vpop.f32.mrb[15].mxu0  ;;  %v5298_v10 = vpack.c.bf16 %v5294_v40, %v5291_v16  ;;  %v7708_v32 = vpop.f32.mrb[7].mxu1  ;;  %v8073_v40 = vld [vmem:[%s9807_s5 + $0x40] sm:$0xff]  }
 0x8f3   : > { %v8075_v3 = vld [vmem:[%s9807_s5 + $0x48] sm:$0xff]   ;;  %v8078_v32 = vld [vmem:[%s9807_s5 + $0x10] sm:$0xff]  }
 0x8f4   : > { %5356 = vrot.lane.b32.xlu1 %v5298_v10, %s8118_s28  ;;  %v8077_v10 = vld [vmem:[%s9807_s5 + $0x50] sm:$0xff]  }
 0x8f7   : > { %v5238_v45 = vpop.f32.mrb[16].mxu0 }
 0x8f8   : > { %v7699_v46 = vpop.f32.mrb[17].mxu0  ;;  %5846 = vperm.xlu1 %7825, %v5843_v11  }
 0x8f9   : > { %v5241_v61 = vpop.f32.mrb[18].mxu0  ;;  %v8080_v46 = vld [vmem:[%s9807_s5 + $0x18] sm:$0xff]  }
 0x8fa   : > { %v5245_v28 = vpack.c.bf16 %v5241_v61, %v5238_v45  ;;  %v7700_v2 = vpop.f32.mrb[19].mxu0  ;;  %v8079_v45 = vld [vmem:[%s9807_s5 + $0x58] sm:$0xff]   ;;  %v8081_v61 = vld [vmem:[%s9807_s5 + $0x60] sm:$0xff]  }
 0x8fb   : > { %v8083_v2 = vld [vmem:[%s9807_s5 + $0x68] sm:$0xff]  }
 0x8fc   : > { %5353 = vrot.lane.b32.xlu0 %v5245_v28, %s8115_s30  ;;  %7831 = vset.pattern.permute.xlu1 %v8114_v57  ;;  %v8055_v57 = vld [vmem:[%s9806_s4 + $0xc0] sm:$0xff]  }
 0x8fd   : > { %v8082_v28 = vld [vmem:[%s9807_s5 + $0x20] sm:$0xff]  }
 0x8ff   : > { %v5344_v35 = vpop.f32.mrb[20].mxu0 }
 0x900   : > { %v7715_v48 = vpop.f32.mrb[21].mxu0 }
 0x901   : > { %v5347_v37 = vpop.f32.mrb[22].mxu0 }
 0x902   : > { %v5351_v18 = vpack.c.bf16 %v5347_v37, %v5344_v35  ;;  %v7716_v38 = vpop.f32.mrb[23].mxu0  ;;  %v8086_v37 = vld [vmem:[%s9807_s5 + $0x30] sm:$0xff]  }
 0x904   : > { %5359 = vrot.lane.b32.xlu0 %v5351_v18, %s8119_s22 }
 0x966   : > { %v5357_v20 = vpop.permute.xlu1 %5356 }
 0x96e   : > { %v5354_v55 = vpop.permute.xlu0 %5353 }
 0x96f   : > { %v5363_v17 = vsel %vm3574_vm11, %v5192_v33, %v5354_v55  ;;  %v8074_v33 = vld [vmem:[%s9807_s5] sm:$0xff]   ;;  %vm6070_vm11 = vcmask 24576  }
 0x970   : > { %v5365_v54 = vsel %vm4702_vm10, %v5363_v17, %v5357_v20 }
 0x976   : > { %v5360_v1 = vpop.permute.xlu0 %5359 }
 0x977   : > { %v5368_v13 = vsel %vm5366_vm2, %v5365_v54, %v5360_v1 }
 0x978   : > { %v6586_v59 = vcombine.low %v5368_v13, %v5368_v13  ;;  %v6587_v60 = vcombine.high %v5368_v13, %v5368_v13 }
 0x97a   : > { %5376 = vst [vmem:[#allocation4] sm:$0xf] %v6586_v59  ;;  %v5380_v24 = vsel %vm5378_vm4, %v6587_v60, %v5379_v25  ;;  %v6671_v59 = vld [vmem:[%s9808_s6 + $0x3] ss:$0 sm:$0xff] }
 0x97b   : > { %5381 = vst [vmem:[#allocation4 + $0x4] sm:$0x1] %v5380_v24 }
 0x981   : > { %v5382_v44 = vld [vmem:[#allocation4] sm:$0x7] }
 0x982   : > { %v6604_v51 = vcombine.low %v5382_v44, %v5382_v44  ;;  %7754 = vmatmul.mubr.bf16.vlgmr.msra.gmra.mrb[24].mxu0 %v5382_v44  ;;  %v8048_v29 = vld [vmem:[#allocation4] ss:$0 sps:$4 sm:$0xee]   ;;  %v8070_v36 = vld [vmem:[#allocation4] sm:$0x1c]  }
 0x983   : > { %7778 = vmatpush3.bf16.msra.mxu0 %v8055_v57  ;;  %7793 = vmatprep.mubr.msk.bf16.mxu0 %vm8109_vm1, %v8108_v0  ;;  %v5746_v39 = vrot.slane %v8070_v36, 2  ;;  %v5625_v16 = vshrl.u32 %v8048_v29, 16  ;;  %v5628_v50 = vshll.u32 %v8048_v29, 16  ;;  %v5847_v57 = vpop.permute.xlu1 %5846 }
 0x984   : > { %v5422_v47 = vshll.u32 %v6604_v51, 16  ;;  %7779 = vmatprep.subr.bf16.mxu0 %v8108_v0  ;;  %v5420_v19 = vshrl.u32 %v6604_v51, 16 }
 0x985   : > { %v5627_v26 = vrot.slane %v5625_v16, 1  ;;  %v5630_v62 = vrot.slane %v5628_v50, 2  ;;  %v8088_v16 = vld [vmem:[%s9807_s5 + $0x38] sm:$0xff]  }
 0x986   : > { %v5424_v22 = vrot.slane %v5422_v47, 1 }
 0x987   : > { %7780 = vmatpush3.bf16.msra.mxu0 %v8057_v43  ;;  %v5631_v41 = vor.u32 %v5630_v62, %v5627_v26  ;;  %v5922_v62 = vld [vmem:[%s9808_s6 + $0x4] sm:$0x1] }
 0x988   : > { %v5425_v4 = vor.u32 %v5424_v22, %v5420_v19  ;;  %7781 = vmatprep.subr.bf16.mxu0 %v8108_v0  ;;  %5925 = vperm.xlu1 %7831, %v5922_v62  }
 0x98a   : > { %7734 = vmatmul.mubr.bf16.vlgmr.msra.gmra.mrb[8].mxu1 %v5425_v4 }
 0x98b   : > { %7758 = vmatpush3.bf16.msra.mxu1 %v8058_v27  ;;  %7782 = vmatpush3.bf16.msra.mxu0 %v8059_v56 }
 0x98c   : > { %7759 = vmatprep.subr.bf16.mxu1 %v8108_v0  ;;  %7783 = vmatprep.subr.bf16.mxu0 %v8108_v0 }
 0x98d   : > { %7773 = vmatprep.mubr.msk.bf16.mxu1 %vm8109_vm1, %v8108_v0  ;;  %vm5850_vm1 = vcmask 520192  }
 0x98f   : > { %7760 = vmatpush3.bf16.msra.mxu1 %v8060_v53  ;;  %7784 = vmatpush3.bf16.msra.mxu0 %v8061_v5 }
 0x990   : > { %7761 = vmatprep.subr.bf16.mxu1 %v8108_v0  ;;  %7785 = vmatprep.subr.bf16.mxu0 %v8108_v0 }
 0x993   : > { %7762 = vmatpush3.bf16.msra.mxu1 %v8062_v30  ;;  %7786 = vmatpush3.bf16.msra.mxu0 %v8063_v23 }
 0x994   : > { %7763 = vmatprep.subr.bf16.mxu1 %v8108_v0  ;;  %7787 = vmatprep.subr.bf16.mxu0 %v8108_v0 }
 0x997   : > { %7764 = vmatpush3.bf16.msra.mxu1 %v8064_v63  ;;  %7788 = vmatpush3.bf16.msra.mxu0 %v8065_v21 }
 0x998   : > { %7765 = vmatprep.subr.bf16.mxu1 %v8108_v0  ;;  %7789 = vmatprep.subr.bf16.mxu0 %v8108_v0 }
 0x99b   : > { %7766 = vmatpush3.bf16.msra.mxu1 %v8066_v49  ;;  %7790 = vmatpush3.bf16.msra.mxu0 %v8067_v12 }
 0x99c   : > { %7767 = vmatprep.subr.bf16.mxu1 %v8108_v0  ;;  %7791 = vmatprep.subr.bf16.mxu0 %v8108_v0 }
 0x99f   : > { %7768 = vmatpush3.bf16.msra.mxu1 %v8068_v34  ;;  %7792 = vmatpush3.bf16.msra.mxu0 %v8069_v14 }
 0x9a0   : > { %7769 = vmatprep.subr.bf16.mxu1 %v8108_v0 }
 0x9a2   : > { %7794 = vmatmul.mubr.bf16.vlgmr.msra.gmra.mrb[28].mxu0 %v5746_v39  ;;  %v8087_v39 = vld [vmem:[%s9807_s5 + $0x78] sm:$0xff]  }
 0x9a3   : > { %7770 = vmatpush3.bf16.msra.mxu1 %v8071_v8 }
 0x9a4   : > { %7771 = vmatprep.subr.bf16.mxu1 %v8108_v0  ;;  %v8076_v0 = vld [vmem:[%s9807_s5 + $0x8] sm:$0xff]  }
 0x9a7   : > { %7772 = vmatpush3.bf16.msra.mxu1 %v8072_v15 }
 0x9a8   : > { %7127 = vmatprep.subr.bf16.mxu1 %v8073_v40 }
 0x9aa   : > { %7774 = vmatmul.mubr.bf16.vlgmr.msra.gmra.mrb[12].mxu1 %v5631_v41 }
 0x9ab   : > { %7128 = vmatpush3.bf16.msra.mxu1 %v8074_v33 }
 0x9ac   : > { %7129 = vmatprep.subr.bf16.mxu1 %v8075_v3 }
 0x9af   : > { %7130 = vmatpush3.bf16.msra.mxu1 %v8076_v0 }
 0x9b0   : > { %7131 = vmatprep.subr.bf16.mxu1 %v8077_v10 }
 0x9b3   : > { %7132 = vmatpush3.bf16.msra.mxu1 %v8078_v32 }
 0x9b4   : > { %7133 = vmatprep.subr.bf16.mxu1 %v8079_v45 }
 0x9b7   : > { %7134 = vmatpush3.bf16.msra.mxu1 %v8080_v46 }
 0x9b8   : > { %7135 = vmatprep.subr.bf16.mxu1 %v8081_v61 }
 0x9bb   : > { %7136 = vmatpush3.bf16.msra.mxu1 %v8082_v28 }
 0x9bc   : > { %7137 = vmatprep.subr.bf16.mxu1 %v8083_v2 }
 0x9bf   : > { %7138 = vmatpush3.bf16.msra.mxu1 %v8084_v42 }
 0x9c0   : > { %7139 = vmatprep.subr.bf16.mxu1 %v8085_v9 }
 0x9c3   : > { %7140 = vmatpush3.bf16.msra.mxu1 %v8086_v37 }
 0x9c4   : > { %7141 = vmatprep.subr.bf16.mxu1 %v8087_v39 }
 0x9c7   : > { %7142 = vmatpush3.bf16.msra.mxu1 %v8088_v16 }
 0xa07   : > { %v5926_v9 = vpop.permute.xlu1 %5925 }
 0xa55   : > { %v5597_v7 = vpop.f32.mrb[24].mxu0 }
 0xa56   : > { %v7755_v52 = vpop.f32.mrb[25].mxu0 }
 0xa57   : > { %v5600_v35 = vpop.f32.mrb[26].mxu0 }
 0xa58   : > { %v7756_v48 = vpop.f32.mrb[27].mxu0 }
 0xa5d   : > { %v5509_v58 = vpop.f32.mrb[8].mxu1 }
 0xa5e   : > { %v5598_v18 = vadd.f32 %v5597_v7, %v5509_v58  ;;  %v7735_v38 = vpop.f32.mrb[9].mxu1 }
 0xa5f   : > { %v5512_v31 = vpop.f32.mrb[10].mxu1 }
 0xa60   : > { %v7736_v11 = vpop.f32.mrb[11].mxu1 }
 0xa75   : > { %v5830_v6 = vpop.f32.mrb[28].mxu0 }
 0xa76   : > { %v7795_v55 = vpop.f32.mrb[29].mxu0 }
 0xa77   : > { %v5833_v17 = vpop.f32.mrb[30].mxu0 }
 0xa78   : > { %v7796_v20 = vpop.f32.mrb[31].mxu0 }
 0xa7d   : > { %v5715_v54 = vpop.f32.mrb[12].mxu1 }
 0xa7e   : > { %v5721_v1 = vadd.f32 %v5715_v54, %v5598_v18  ;;  %v7775_v25 = vpop.f32.mrb[13].mxu1 }
 0xa7f   : > { %v5718_v13 = vpop.f32.mrb[14].mxu1 }
 0xa80   : > { %v5836_v60 = vadd.f32 %v5830_v6, %v5721_v1  ;;  %v7776_v24 = vpop.f32.mrb[15].mxu1 }
 0xa82   : > { %v5842_v44 = vadd.f32 %v6671_v59, %v5836_v60 }
 0xa84   : > { %v5849_v51 = vmul.f32 %v5847_v57, %v5842_v44 }
 0xa86   : > { %v5851_v43 = vsel %vm5850_vm1, %v5849_v51, 0.0 }
 0xa87   : > { %v5852_v47 = vrot.slane %v5851_v43, 4 }
 0xa89   : > { %v5853_v19 = vadd.f32 %v5852_v47, %v5851_v43 }
 0xa8b   : > { %v5854_v22 = vrot.slane %v5853_v19, 2 }
 0xa8d   : > { %v5855_v27 = vadd.f32 %v5854_v22, %v5853_v19 }
 0xa8f   : > { %v5856_v56 = vrot.slane %v5855_v27, 1 }
 0xa91   : > { %v5857_v4 = vadd.f32 %v5856_v56, %v5855_v27 }
 0xa93   : > { %v5858_v53 = vmul.f32 0.25, %v5857_v4 }
 0xa95   : > { %v5859_v5 = vsub.f32 %v5842_v44, %v5858_v53 }
 0xa97   : > { %v5860_v30 = vmul.f32 %v5859_v5, %v5847_v57 }
 0xa99   : > { %v5861_v23 = vmul.f32 %v5860_v30, %v5860_v30 }
 0xa9b   : > { %v5862_v63 = vsel %vm5850_vm1, %v5861_v23, 0.0 }
 0xa9c   : > { %v5863_v21 = vrot.slane %v5862_v63, 4 }
 0xa9e   : > { %v5864_v49 = vadd.f32 %v5863_v21, %v5862_v63 }
 0xaa0   : > { %v5865_v12 = vrot.slane %v5864_v49, 2 }
 0xaa2   : > { %v5866_v34 = vadd.f32 %v5865_v12, %v5864_v49 }
 0xaa4   : > { %v5867_v14 = vrot.slane %v5866_v34, 1 }
 0xaa6   : > { %v5868_v29 = vadd.f32 %v5867_v14, %v5866_v34 }
 0xaa8   : > { %v5869_v36 = vmul.f32 0.25, %v5868_v29 }
 0xaaa   : > { %v5870_v8 = vadd.f32 1e-05, %v5869_v36 }
 0xaac   : > { %8093 = vrsqrt.f32 %v5870_v8 }
 0xab6   : > { %v8094_v50 = vpop.eup %8093 }
 0xab7   : > { %v5872_v15 = vmul.f32 %v8094_v50, %v5859_v5 }
 0xab9   : > { %v5873_v26 = vmul.f32 0.2, %v5872_v15 }
 0xabb   : > { %v5874_v41 = vmax.f32 %v5872_v15, %v5873_v26 }
 0xabd   : > { %v5876_v40 = vrot.slane %v5874_v41, 1  ;;  %v5882_v33 = vrot.slane %v5874_v41, 4  ;;  %v5880_v45 = vrot.slane %v5874_v41, 3 }
 0xabf   : > { %v7826_v3 = vpack.i.bf16 %v5876_v40, %v5882_v33 }
 0xac1   : > { %7827 = vrot.lane.b32.xlu0 %v7826_v3, %s8118_s28 }
 0xb33   : > { %v7828_v0 = vpop.permute.xlu0 %7827 }
 0xb34   : > { %v7830_v10 = vunpack.i.h.bf16 %v7828_v0  ;;  %v7829_v32 = vunpack.i.l.bf16 %v7828_v0 }
 0xb36   : > { %v5886_v46 = vsel %vm4702_vm10, %v5874_v41, %v7830_v10  ;;  %v5887_v61 = vsel %vm4702_vm10, %v5880_v45, %v7829_v32 }
 0xb37   : > { %v5888_v28 = vpack.c.bf16 %v5886_v46, %v5886_v46  ;;  %v5889_v2 = vpack.c.bf16 %v5887_v61, %v5887_v61 }
 0xb39   : > { %6056 = vmatprep.mubr.bf16.mxu1 %v5889_v2 }
 0xb3a   : > { %6057 = vmatmul.mubr.bf16.vlgmr.msra.gmra.mrb[16].mxu1 %v5888_v28 }
 0xc0d   : > { %v7143_v42 = vpop.f32.mrb[16].mxu1 }
 0xc0e   : > { %v7144_v7 = vpop.f32.mrb[17].mxu1 }
 0xc0f   : > { %v7145_v52 = vadd.f32 %v7144_v7, %v7143_v42  ;;  %v7146_v35 = vpop.f32.mrb[18].mxu1 }
 0xc10   : > { %v7147_v48 = vpop.f32.mrb[19].mxu1 }
 0xc11   : > { %v6059_v37 = vadd.f32 %v7145_v52, %v5926_v9 }
 0xc13   : > { %v6688_v58 = vmul.f32 -1.442695, %v6059_v37 }
 0xc15   : > { %8095 = vpow2.f32 %v6688_v58 }
 0xc1f   : > { %v8096_v18 = vpop.eup %8095 }
 0xc20   : > { %v6067_v38 = vadd.f32 1.0, %v8096_v18 }
 0xc22   : > { %8097 = vrcp.f32 %v6067_v38 }
 0xc2c   : > { %v8098_v31 = vpop.eup %8097 }
 0xc2d   : > { %6071 = vst.msk [vmem:[%s382_s14] sm:$0x1] %vm6070_vm11, %v8098_v31 }
 0xc2e PF: > { %s21_s17 = sadd.s32 1, %s8106_s17  }
 0xc2f   : > { %p18_p4 = scmp.ge.s32.totalorder %s21_s17, 4  }
 0xc31   :  { %20 = sbr.rel (!%p18_p4) target bundleno = 1 (0x1), region = 115 }

</bundles_post_ra>
